<compile_context>
chip_gen: v5e
topology: v5e:2x2
jax: 0.10.0
libtpu: 0.0.40
codegen_flags: <defaults>
</compile_context>

<pallas_src>
import functools

import jax
import jax.numpy as jnp
from jax.experimental import pallas as pl
from jax.experimental.pallas import tpu as pltpu


# ----------------------------------------------------------------------------
# Fused Pallas kernel: maxpool(2) -> [conv3x3 -> BN -> ReLU] x 2
# ----------------------------------------------------------------------------
def _down_kernel(x_ref,                               # (N, H, 2, W, 2*Cin)
                 w1_ref, g1_ref, be1_ref,             # (9, CP, CP) bf16, (1, CP)*2
                 w2_ref, g2_ref, be2_ref,             # (9, CP, CP) bf16, (1, CP)*2
                 o_ref,                               # (N*H*W, CP) lane-dense
                 pad_ref, acc_ref,                    # VMEM scratch
                 *, N, H, W, Cin, CP, eps):
    f32 = jnp.float32
    R = N * H * W

    # ---- fused 2x2 max pool (stride 2) -------------------------------------
    # dim 2 of x_ref is the H-parity; the last dim packs (W-parity, Cin).
    xa = x_ref[:, :, 0, :, :]
    xb = x_ref[:, :, 1, :, :]
    hm = jnp.maximum(xa, xb)                            # (N, H, W, 2*Cin)
    pooled = jnp.maximum(hm[..., :Cin], hm[..., Cin:])  # (N, H, W, Cin)

    # ---- zero the shared halo-padded buffer ONCE ---------------------------
    # Halo ring and lanes >= the true channel count stay exactly zero for both
    # convs; each conv only rewrites the interior below.
    pad_ref[...] = jnp.zeros(pad_ref.shape, pad_ref.dtype)

    def conv_bn_relu(act, c_in, w_ref, g_ref, be_ref):
        # act: (N, H, W, c_in) fp32.  Interior write only (bf16); halo stays 0.
        pad_ref[:, 1:H + 1, 1:W + 1, 0:c_in] = act.astype(pad_ref.dtype)

        # 3x3 'same' conv as 9 accumulating per-tap matmuls (bf16 in, fp32 acc).
        for k in range(9):
            kh, kw = k // 3, k % 3
            tap = pad_ref[:, kh:kh + H, kw:kw + W, :].reshape(R, CP)   # bf16
            contrib = jax.lax.dot_general(
                tap, w_ref[k],
                dimension_numbers=(((1,), (0,)), ((), ())),
                preferred_element_type=f32)                            # (R, CP)
            if k == 0:
                acc_ref[...] = contrib
            else:
                acc_ref[...] += contrib
        y = acc_ref[...]                                               # (R, CP) fp32

        # BatchNorm2d training-mode forward: batch stats over (N, H, W),
        # biased variance, single pass (sum / sum-of-squares), fp32.
        mean = jnp.mean(y, axis=0, keepdims=True)                      # (1, CP)
        msq = jnp.mean(y * y, axis=0, keepdims=True)
        var = jnp.maximum(msq - mean * mean, 0.0)
        scale = g_ref[...] * jax.lax.rsqrt(var + eps)
        shift = be_ref[...] - mean * scale
        return jnp.maximum(y * scale + shift, 0.0)                     # (R, CP)

    a1 = conv_bn_relu(pooled, Cin, w1_ref, g1_ref, be1_ref)
    a2 = conv_bn_relu(a1.reshape(N, H, W, CP), CP, w2_ref, g2_ref, be2_ref)

    o_ref[...] = a2.astype(o_ref.dtype)          # full, unmasked lane-dense store


# ----------------------------------------------------------------------------
# Wrapper: NCHW in / NCHW out (matches the PyTorch `down` module)
# ----------------------------------------------------------------------------
def down_forward(x_nchw, params, eps=1e-5):
    N, Cin, Hin, Win = x_nchw.shape
    assert Hin % 2 == 0 and Win % 2 == 0, "MaxPool2d(2) expects even spatial dims"
    H, W = Hin // 2, Win // 2
    Cout = params["w1"].shape[-1]
    CP = 128                       # lane width; channels zero-padded to it so the
    assert Cin <= CP and Cout <= CP  # MXU sees K=N=128 and all stores are lane-dense

    # NCHW -> NHWC, plus a reshape exposing the 2x2 pooling windows as
    # (H-parity, W-parity packed with channels).  The input is tiny, so any HBM
    # relayout this implies is negligible; with Cin >= 128 one would instead pool
    # from plain NHWC inside the kernel.
    x_nhwc = jnp.transpose(x_nchw, (0, 2, 3, 1))
    x_packed = x_nhwc.reshape(N, H, 2, W, 2 * Cin)

    def pad_w(w, ci):              # HWIO -> (9, CP, CP) bf16, zero-padded channels
        w = jnp.pad(w, ((0, 0), (0, 0), (0, CP - ci), (0, CP - Cout)))
        return w.reshape(9, CP, CP).astype(jnp.bfloat16)

    def pad_v(v):                  # (Cout,) -> (1, CP) fp32, zero-padded
        return jnp.pad(v, (0, CP - Cout)).reshape(1, CP).astype(jnp.float32)

    w1 = pad_w(params["w1"], Cin)
    w2 = pad_w(params["w2"], Cout)

    R = N * H * W
    kernel = functools.partial(_down_kernel, N=N, H=H, W=W, Cin=Cin, CP=CP, eps=eps)

    out_flat = pl.pallas_call(
        kernel,
        out_shape=jax.ShapeDtypeStruct((R, CP), jnp.float32),
        scratch_shapes=[
            pltpu.VMEM((N, H + 2, W + 2, CP), jnp.bfloat16),  # shared zero-haloed pad buf
            pltpu.VMEM((R, CP), jnp.float32),                 # fp32 conv accumulator
        ],
    )(x_packed,
      w1, pad_v(params["gamma1"]), pad_v(params["beta1"]),
      w2, pad_v(params["gamma2"]), pad_v(params["beta2"]))

    out = out_flat[:, :Cout].reshape(N, H, W, Cout)
    return jnp.transpose(out, (0, 3, 1, 2))                   # NHWC -> NCHW


# ----------------------------------------------------------------------------
# Pure-JAX reference (same bf16 matmul inputs / fp32 accumulation as the kernel;
# keeps the conv bias, which training-mode BN cancels -> also checks that claim)
# ----------------------------------------------------------------------------
def _ref_forward(x_nchw, params, eps=1e-5):
    bf16, f32 = jnp.bfloat16, jnp.float32
    x = jnp.transpose(x_nchw, (0, 2, 3, 1))
    x = jax.lax.reduce_window(x, -jnp.inf, jax.lax.max,
                              window_dimensions=(1, 2, 2, 1),
                              window_strides=(1, 2, 2, 1),
                              padding="VALID")

    def conv(h, w, b):
        y = jax.lax.conv_general_dilated(
            h.astype(bf16), w.astype(bf16), window_strides=(1, 1), padding="SAME",
            dimension_numbers=("NHWC", "HWIO", "NHWC"),
            preferred_element_type=f32)
        return y + b[None, None, None, :]

    def bn_relu(y, g, be):
        mean = jnp.mean(y, axis=(0, 1, 2))
        var = jnp.mean(jnp.square(y - mean[None, None, None, :]), axis=(0, 1, 2))
        s = g / jnp.sqrt(var + eps)
        o = be - mean * s
        return jnp.maximum(y * s + o, 0.0)

    h = bn_relu(conv(x, params["w1"], params["b1"]),
                params["gamma1"], params["beta1"])
    h = bn_relu(conv(h, params["w2"], params["b2"]),
                params["gamma2"], params["beta2"])
    return jnp.transpose(h, (0, 3, 1, 2))


# ----------------------------------------------------------------------------
# main
# ----------------------------------------------------------------------------
if __name__ == "__main__":
    N, C_in, C_out, H, W = 2, 4, 8, 16, 16

    keys = jax.random.split(jax.random.PRNGKey(0), 9)
    params = {
        "w1": 0.1 * jax.random.normal(keys[0], (3, 3, C_in, C_out), jnp.float32),
        "b1": 0.1 * jax.random.normal(keys[1], (C_out,), jnp.float32),
        "gamma1": 1.0 + 0.1 * jax.random.normal(keys[2], (C_out,), jnp.float32),
        "beta1": 0.1 * jax.random.normal(keys[3], (C_out,), jnp.float32),
        "w2": 0.1 * jax.random.normal(keys[4], (3, 3, C_out, C_out), jnp.float32),
        "b2": 0.1 * jax.random.normal(keys[5], (C_out,), jnp.float32),
        "gamma2": 1.0 + 0.1 * jax.random.normal(keys[6], (C_out,), jnp.float32),
        "beta2": 0.1 * jax.random.normal(keys[7], (C_out,), jnp.float32),
    }
    x = jax.random.normal(keys[8], (N, C_in, H, W), jnp.float32)

    out = jax.block_until_ready(down_forward(x, params))
    ref = jax.block_until_ready(_ref_forward(x, params))

    assert out.shape == (N, C_out, H // 2, W // 2), out.shape
    # bf16 matmul inputs (in both kernel and reference) -> 5e-3 tolerance.
    assert jnp.allclose(out, ref, rtol=5e-3, atol=5e-3), (
        "mismatch vs JAX reference: max abs diff = "
        f"{float(jnp.max(jnp.abs(out - ref)))}")

    print("KERNEL_OK")
</pallas_src>

<mosaic_0001>
module attributes {stable_mosaic.version = 11 : i64} {
  func.func @_down_kernel(%arg0: memref<2x8x2x8x8xf32, #tpu.memory_space<vmem>>, %arg1: memref<9x128x128xbf16, #tpu.memory_space<vmem>>, %arg2: memref<1x128xf32, #tpu.memory_space<vmem>>, %arg3: memref<1x128xf32, #tpu.memory_space<vmem>>, %arg4: memref<9x128x128xbf16, #tpu.memory_space<vmem>>, %arg5: memref<1x128xf32, #tpu.memory_space<vmem>>, %arg6: memref<1x128xf32, #tpu.memory_space<vmem>>, %arg7: memref<128x128xf32, #tpu.memory_space<vmem>>, %arg8: memref<2x10x10x128xbf16, #tpu.memory_space<vmem>>, %arg9: memref<128x128xf32, #tpu.memory_space<vmem>>) attributes {dimension_semantics = [], scalar_prefetch = 0 : i64, scratch_operands = 2 : i64, tpu.core_type = #tpu.core_type<tc>} {
    %c0 = arith.constant 0 : index
    %c0_0 = arith.constant 0 : index
    %c0_1 = arith.constant 0 : index
    %c0_2 = arith.constant 0 : index
    %c0_3 = arith.constant 0 : index
    %0 = vector.load %arg0[%c0, %c0_0, %c0_1, %c0_2, %c0_3] : memref<2x8x2x8x8xf32, #tpu.memory_space<vmem>>, vector<2x8x1x8x8xf32>
    %1 = vector.shape_cast %0 : vector<2x8x1x8x8xf32> to vector<2x8x8x8xf32>
    %c0_4 = arith.constant 0 : index
    %c0_5 = arith.constant 0 : index
    %c1 = arith.constant 1 : index
    %c0_6 = arith.constant 0 : index
    %c0_7 = arith.constant 0 : index
    %2 = vector.load %arg0[%c0_4, %c0_5, %c1, %c0_6, %c0_7] : memref<2x8x2x8x8xf32, #tpu.memory_space<vmem>>, vector<2x8x1x8x8xf32>
    %3 = vector.shape_cast %2 : vector<2x8x1x8x8xf32> to vector<2x8x8x8xf32>
    %4 = arith.maximumf %1, %3 : vector<2x8x8x8xf32>
    %5 = vector.extract_strided_slice %4 {offsets = [0, 0, 0, 0], sizes = [2, 8, 8, 4], strides = [1, 1, 1, 1]} : vector<2x8x8x8xf32> to vector<2x8x8x4xf32>
    %6 = vector.extract_strided_slice %4 {offsets = [0, 0, 0, 4], sizes = [2, 8, 8, 4], strides = [1, 1, 1, 1]} : vector<2x8x8x8xf32> to vector<2x8x8x4xf32>
    %7 = arith.maximumf %5, %6 : vector<2x8x8x4xf32>
    %cst = arith.constant 0.000000e+00 : bf16
    %8 = vector.broadcast %cst : bf16 to vector<2x10x10x128xbf16>
    %c0_8 = arith.constant 0 : index
    %c0_9 = arith.constant 0 : index
    %c0_10 = arith.constant 0 : index
    %c0_11 = arith.constant 0 : index
    %9 = vector.load %arg8[%c0_8, %c0_9, %c0_10, %c0_11] : memref<2x10x10x128xbf16, #tpu.memory_space<vmem>>, vector<2x10x10x128xbf16>
    tpu.vector_store %arg8[%c0_8, %c0_9, %c0_10, %c0_11], %8 {strides = array<i32>} : memref<2x10x10x128xbf16, #tpu.memory_space<vmem>>, vector<2x10x10x128xbf16>,
    %10 = arith.truncf %7 : vector<2x8x8x4xf32> to vector<2x8x8x4xbf16>
    %c0_12 = arith.constant 0 : index
    %c1_13 = arith.constant 1 : index
    %c1_14 = arith.constant 1 : index
    %c0_15 = arith.constant 0 : index
    %11 = vector.load %arg8[%c0_12, %c1_13, %c1_14, %c0_15] : memref<2x10x10x128xbf16, #tpu.memory_space<vmem>>, vector<2x8x8x4xbf16>
    tpu.vector_store %arg8[%c0_12, %c1_13, %c1_14, %c0_15], %10 {strides = array<i32>} : memref<2x10x10x128xbf16, #tpu.memory_space<vmem>>, vector<2x8x8x4xbf16>,
    %c0_16 = arith.constant 0 : index
    %c0_17 = arith.constant 0 : index
    %c0_18 = arith.constant 0 : index
    %c0_19 = arith.constant 0 : index
    %12 = vector.load %arg8[%c0_16, %c0_17, %c0_18, %c0_19] : memref<2x10x10x128xbf16, #tpu.memory_space<vmem>>, vector<2x8x8x128xbf16>
    %13 = vector.shape_cast %12 : vector<2x8x8x128xbf16> to vector<128x128xbf16>
    %c0_20 = arith.constant 0 : index
    %c0_21 = arith.constant 0 : index
    %c0_22 = arith.constant 0 : index
    %14 = vector.load %arg1[%c0_20, %c0_21, %c0_22] : memref<9x128x128xbf16, #tpu.memory_space<vmem>>, vector<1x128x128xbf16>
    %15 = vector.shape_cast %14 : vector<1x128x128xbf16> to vector<128x128xbf16>
    %cst_23 = arith.constant dense<0.000000e+00> : vector<128x128xf32>
    %16 = tpu.matmul %13, %15, %cst_23 {dimension_numbers = #tpu.dot_dimension_numbers<[1], [0], [0], [1], [0, 0, 1, 1], [], []>} : vector<128x128xbf16>, vector<128x128xbf16>, vector<128x128xf32> -> vector<128x128xf32>
    %c0_24 = arith.constant 0 : index
    %c0_25 = arith.constant 0 : index
    %17 = vector.load %arg9[%c0_24, %c0_25] : memref<128x128xf32, #tpu.memory_space<vmem>>, vector<128x128xf32>
    tpu.vector_store %arg9[%c0_24, %c0_25], %16 {strides = array<i32>} : memref<128x128xf32, #tpu.memory_space<vmem>>, vector<128x128xf32>,
    %c0_26 = arith.constant 0 : index
    %c0_27 = arith.constant 0 : index
    %c1_28 = arith.constant 1 : index
    %c0_29 = arith.constant 0 : index
    %18 = vector.load %arg8[%c0_26, %c0_27, %c1_28, %c0_29] : memref<2x10x10x128xbf16, #tpu.memory_space<vmem>>, vector<2x8x8x128xbf16>
    %19 = vector.shape_cast %18 : vector<2x8x8x128xbf16> to vector<128x128xbf16>
    %c1_30 = arith.constant 1 : index
    %c0_31 = arith.constant 0 : index
    %c0_32 = arith.constant 0 : index
    %20 = vector.load %arg1[%c1_30, %c0_31, %c0_32] : memref<9x128x128xbf16, #tpu.memory_space<vmem>>, vector<1x128x128xbf16>
    %21 = vector.shape_cast %20 : vector<1x128x128xbf16> to vector<128x128xbf16>
    %cst_33 = arith.constant dense<0.000000e+00> : vector<128x128xf32>
    %22 = tpu.matmul %19, %21, %cst_33 {dimension_numbers = #tpu.dot_dimension_numbers<[1], [0], [0], [1], [0, 0, 1, 1], [], []>} : vector<128x128xbf16>, vector<128x128xbf16>, vector<128x128xf32> -> vector<128x128xf32>
    %c0_34 = arith.constant 0 : index
    %c0_35 = arith.constant 0 : index
    %23 = vector.load %arg9[%c0_34, %c0_35] : memref<128x128xf32, #tpu.memory_space<vmem>>, vector<128x128xf32>
    %24 = arith.addf %23, %22 : vector<128x128xf32>
    %c0_36 = arith.constant 0 : index
    %c0_37 = arith.constant 0 : index
    %25 = vector.load %arg9[%c0_36, %c0_37] : memref<128x128xf32, #tpu.memory_space<vmem>>, vector<128x128xf32>
    tpu.vector_store %arg9[%c0_36, %c0_37], %24 {strides = array<i32>} : memref<128x128xf32, #tpu.memory_space<vmem>>, vector<128x128xf32>,
    %c0_38 = arith.constant 0 : index
    %c0_39 = arith.constant 0 : index
    %c2 = arith.constant 2 : index
    %c0_40 = arith.constant 0 : index
    %26 = vector.load %arg8[%c0_38, %c0_39, %c2, %c0_40] : memref<2x10x10x128xbf16, #tpu.memory_space<vmem>>, vector<2x8x8x128xbf16>
    %27 = vector.shape_cast %26 : vector<2x8x8x128xbf16> to vector<128x128xbf16>
    %c2_41 = arith.constant 2 : index
    %c0_42 = arith.constant 0 : index
    %c0_43 = arith.constant 0 : index
    %28 = vector.load %arg1[%c2_41, %c0_42, %c0_43] : memref<9x128x128xbf16, #tpu.memory_space<vmem>>, vector<1x128x128xbf16>
    %29 = vector.shape_cast %28 : vector<1x128x128xbf16> to vector<128x128xbf16>
    %cst_44 = arith.constant dense<0.000000e+00> : vector<128x128xf32>
    %30 = tpu.matmul %27, %29, %cst_44 {dimension_numbers = #tpu.dot_dimension_numbers<[1], [0], [0], [1], [0, 0, 1, 1], [], []>} : vector<128x128xbf16>, vector<128x128xbf16>, vector<128x128xf32> -> vector<128x128xf32>
    %c0_45 = arith.constant 0 : index
    %c0_46 = arith.constant 0 : index
    %31 = vector.load %arg9[%c0_45, %c0_46] : memref<128x128xf32, #tpu.memory_space<vmem>>, vector<128x128xf32>
    %32 = arith.addf %31, %30 : vector<128x128xf32>
    %c0_47 = arith.constant 0 : index
    %c0_48 = arith.constant 0 : index
    %33 = vector.load %arg9[%c0_47, %c0_48] : memref<128x128xf32, #tpu.memory_space<vmem>>, vector<128x128xf32>
    tpu.vector_store %arg9[%c0_47, %c0_48], %32 {strides = array<i32>} : memref<128x128xf32, #tpu.memory_space<vmem>>, vector<128x128xf32>,
    %c0_49 = arith.constant 0 : index
    %c1_50 = arith.constant 1 : index
    %c0_51 = arith.constant 0 : index
    %c0_52 = arith.constant 0 : index
    %34 = vector.load %arg8[%c0_49, %c1_50, %c0_51, %c0_52] : memref<2x10x10x128xbf16, #tpu.memory_space<vmem>>, vector<2x8x8x128xbf16>
    %35 = vector.shape_cast %34 : vector<2x8x8x128xbf16> to vector<128x128xbf16>
    %c3 = arith.constant 3 : index
    %c0_53 = arith.constant 0 : index
    %c0_54 = arith.constant 0 : index
    %36 = vector.load %arg1[%c3, %c0_53, %c0_54] : memref<9x128x128xbf16, #tpu.memory_space<vmem>>, vector<1x128x128xbf16>
    %37 = vector.shape_cast %36 : vector<1x128x128xbf16> to vector<128x128xbf16>
    %cst_55 = arith.constant dense<0.000000e+00> : vector<128x128xf32>
    %38 = tpu.matmul %35, %37, %cst_55 {dimension_numbers = #tpu.dot_dimension_numbers<[1], [0], [0], [1], [0, 0, 1, 1], [], []>} : vector<128x128xbf16>, vector<128x128xbf16>, vector<128x128xf32> -> vector<128x128xf32>
    %c0_56 = arith.constant 0 : index
    %c0_57 = arith.constant 0 : index
    %39 = vector.load %arg9[%c0_56, %c0_57] : memref<128x128xf32, #tpu.memory_space<vmem>>, vector<128x128xf32>
    %40 = arith.addf %39, %38 : vector<128x128xf32>
    %c0_58 = arith.constant 0 : index
    %c0_59 = arith.constant 0 : index
    %41 = vector.load %arg9[%c0_58, %c0_59] : memref<128x128xf32, #tpu.memory_space<vmem>>, vector<128x128xf32>
    tpu.vector_store %arg9[%c0_58, %c0_59], %40 {strides = array<i32>} : memref<128x128xf32, #tpu.memory_space<vmem>>, vector<128x128xf32>,
    %c0_60 = arith.constant 0 : index
    %c1_61 = arith.constant 1 : index
    %c1_62 = arith.constant 1 : index
    %c0_63 = arith.constant 0 : index
    %42 = vector.load %arg8[%c0_60, %c1_61, %c1_62, %c0_63] : memref<2x10x10x128xbf16, #tpu.memory_space<vmem>>, vector<2x8x8x128xbf16>
    %43 = vector.shape_cast %42 : vector<2x8x8x128xbf16> to vector<128x128xbf16>
    %c4 = arith.constant 4 : index
    %c0_64 = arith.constant 0 : index
    %c0_65 = arith.constant 0 : index
    %44 = vector.load %arg1[%c4, %c0_64, %c0_65] : memref<9x128x128xbf16, #tpu.memory_space<vmem>>, vector<1x128x128xbf16>
    %45 = vector.shape_cast %44 : vector<1x128x128xbf16> to vector<128x128xbf16>
    %cst_66 = arith.constant dense<0.000000e+00> : vector<128x128xf32>
    %46 = tpu.matmul %43, %45, %cst_66 {dimension_numbers = #tpu.dot_dimension_numbers<[1], [0], [0], [1], [0, 0, 1, 1], [], []>} : vector<128x128xbf16>, vector<128x128xbf16>, vector<128x128xf32> -> vector<128x128xf32>
    %c0_67 = arith.constant 0 : index
    %c0_68 = arith.constant 0 : index
    %47 = vector.load %arg9[%c0_67, %c0_68] : memref<128x128xf32, #tpu.memory_space<vmem>>, vector<128x128xf32>
    %48 = arith.addf %47, %46 : vector<128x128xf32>
    %c0_69 = arith.constant 0 : index
    %c0_70 = arith.constant 0 : index
    %49 = vector.load %arg9[%c0_69, %c0_70] : memref<128x128xf32, #tpu.memory_space<vmem>>, vector<128x128xf32>
    tpu.vector_store %arg9[%c0_69, %c0_70], %48 {strides = array<i32>} : memref<128x128xf32, #tpu.memory_space<vmem>>, vector<128x128xf32>,
    %c0_71 = arith.constant 0 : index
    %c1_72 = arith.constant 1 : index
    %c2_73 = arith.constant 2 : index
    %c0_74 = arith.constant 0 : index
    %50 = vector.load %arg8[%c0_71, %c1_72, %c2_73, %c0_74] : memref<2x10x10x128xbf16, #tpu.memory_space<vmem>>, vector<2x8x8x128xbf16>
    %51 = vector.shape_cast %50 : vector<2x8x8x128xbf16> to vector<128x128xbf16>
    %c5 = arith.constant 5 : index
    %c0_75 = arith.constant 0 : index
    %c0_76 = arith.constant 0 : index
    %52 = vector.load %arg1[%c5, %c0_75, %c0_76] : memref<9x128x128xbf16, #tpu.memory_space<vmem>>, vector<1x128x128xbf16>
    %53 = vector.shape_cast %52 : vector<1x128x128xbf16> to vector<128x128xbf16>
    %cst_77 = arith.constant dense<0.000000e+00> : vector<128x128xf32>
    %54 = tpu.matmul %51, %53, %cst_77 {dimension_numbers = #tpu.dot_dimension_numbers<[1], [0], [0], [1], [0, 0, 1, 1], [], []>} : vector<128x128xbf16>, vector<128x128xbf16>, vector<128x128xf32> -> vector<128x128xf32>
    %c0_78 = arith.constant 0 : index
    %c0_79 = arith.constant 0 : index
    %55 = vector.load %arg9[%c0_78, %c0_79] : memref<128x128xf32, #tpu.memory_space<vmem>>, vector<128x128xf32>
    %56 = arith.addf %55, %54 : vector<128x128xf32>
    %c0_80 = arith.constant 0 : index
    %c0_81 = arith.constant 0 : index
    %57 = vector.load %arg9[%c0_80, %c0_81] : memref<128x128xf32, #tpu.memory_space<vmem>>, vector<128x128xf32>
    tpu.vector_store %arg9[%c0_80, %c0_81], %56 {strides = array<i32>} : memref<128x128xf32, #tpu.memory_space<vmem>>, vector<128x128xf32>,
    %c0_82 = arith.constant 0 : index
    %c2_83 = arith.constant 2 : index
    %c0_84 = arith.constant 0 : index
    %c0_85 = arith.constant 0 : index
    %58 = vector.load %arg8[%c0_82, %c2_83, %c0_84, %c0_85] : memref<2x10x10x128xbf16, #tpu.memory_space<vmem>>, vector<2x8x8x128xbf16>
    %59 = vector.shape_cast %58 : vector<2x8x8x128xbf16> to vector<128x128xbf16>
    %c6 = arith.constant 6 : index
    %c0_86 = arith.constant 0 : index
    %c0_87 = arith.constant 0 : index
    %60 = vector.load %arg1[%c6, %c0_86, %c0_87] : memref<9x128x128xbf16, #tpu.memory_space<vmem>>, vector<1x128x128xbf16>
    %61 = vector.shape_cast %60 : vector<1x128x128xbf16> to vector<128x128xbf16>
    %cst_88 = arith.constant dense<0.000000e+00> : vector<128x128xf32>
    %62 = tpu.matmul %59, %61, %cst_88 {dimension_numbers = #tpu.dot_dimension_numbers<[1], [0], [0], [1], [0, 0, 1, 1], [], []>} : vector<128x128xbf16>, vector<128x128xbf16>, vector<128x128xf32> -> vector<128x128xf32>
    %c0_89 = arith.constant 0 : index
    %c0_90 = arith.constant 0 : index
    %63 = vector.load %arg9[%c0_89, %c0_90] : memref<128x128xf32, #tpu.memory_space<vmem>>, vector<128x128xf32>
    %64 = arith.addf %63, %62 : vector<128x128xf32>
    %c0_91 = arith.constant 0 : index
    %c0_92 = arith.constant 0 : index
    %65 = vector.load %arg9[%c0_91, %c0_92] : memref<128x128xf32, #tpu.memory_space<vmem>>, vector<128x128xf32>
    tpu.vector_store %arg9[%c0_91, %c0_92], %64 {strides = array<i32>} : memref<128x128xf32, #tpu.memory_space<vmem>>, vector<128x128xf32>,
    %c0_93 = arith.constant 0 : index
    %c2_94 = arith.constant 2 : index
    %c1_95 = arith.constant 1 : index
    %c0_96 = arith.constant 0 : index
    %66 = vector.load %arg8[%c0_93, %c2_94, %c1_95, %c0_96] : memref<2x10x10x128xbf16, #tpu.memory_space<vmem>>, vector<2x8x8x128xbf16>
    %67 = vector.shape_cast %66 : vector<2x8x8x128xbf16> to vector<128x128xbf16>
    %c7 = arith.constant 7 : index
    %c0_97 = arith.constant 0 : index
    %c0_98 = arith.constant 0 : index
    %68 = vector.load %arg1[%c7, %c0_97, %c0_98] : memref<9x128x128xbf16, #tpu.memory_space<vmem>>, vector<1x128x128xbf16>
    %69 = vector.shape_cast %68 : vector<1x128x128xbf16> to vector<128x128xbf16>
    %cst_99 = arith.constant dense<0.000000e+00> : vector<128x128xf32>
    %70 = tpu.matmul %67, %69, %cst_99 {dimension_numbers = #tpu.dot_dimension_numbers<[1], [0], [0], [1], [0, 0, 1, 1], [], []>} : vector<128x128xbf16>, vector<128x128xbf16>, vector<128x128xf32> -> vector<128x128xf32>
    %c0_100 = arith.constant 0 : index
    %c0_101 = arith.constant 0 : index
    %71 = vector.load %arg9[%c0_100, %c0_101] : memref<128x128xf32, #tpu.memory_space<vmem>>, vector<128x128xf32>
    %72 = arith.addf %71, %70 : vector<128x128xf32>
    %c0_102 = arith.constant 0 : index
    %c0_103 = arith.constant 0 : index
    %73 = vector.load %arg9[%c0_102, %c0_103] : memref<128x128xf32, #tpu.memory_space<vmem>>, vector<128x128xf32>
    tpu.vector_store %arg9[%c0_102, %c0_103], %72 {strides = array<i32>} : memref<128x128xf32, #tpu.memory_space<vmem>>, vector<128x128xf32>,
    %c0_104 = arith.constant 0 : index
    %c2_105 = arith.constant 2 : index
    %c2_106 = arith.constant 2 : index
    %c0_107 = arith.constant 0 : index
    %74 = vector.load %arg8[%c0_104, %c2_105, %c2_106, %c0_107] : memref<2x10x10x128xbf16, #tpu.memory_space<vmem>>, vector<2x8x8x128xbf16>
    %75 = vector.shape_cast %74 : vector<2x8x8x128xbf16> to vector<128x128xbf16>
    %c8 = arith.constant 8 : index
    %c0_108 = arith.constant 0 : index
    %c0_109 = arith.constant 0 : index
    %76 = vector.load %arg1[%c8, %c0_108, %c0_109] : memref<9x128x128xbf16, #tpu.memory_space<vmem>>, vector<1x128x128xbf16>
    %77 = vector.shape_cast %76 : vector<1x128x128xbf16> to vector<128x128xbf16>
    %cst_110 = arith.constant dense<0.000000e+00> : vector<128x128xf32>
    %78 = tpu.matmul %75, %77, %cst_110 {dimension_numbers = #tpu.dot_dimension_numbers<[1], [0], [0], [1], [0, 0, 1, 1], [], []>} : vector<128x128xbf16>, vector<128x128xbf16>, vector<128x128xf32> -> vector<128x128xf32>
    %c0_111 = arith.constant 0 : index
    %c0_112 = arith.constant 0 : index
    %79 = vector.load %arg9[%c0_111, %c0_112] : memref<128x128xf32, #tpu.memory_space<vmem>>, vector<128x128xf32>
    %80 = arith.addf %79, %78 : vector<128x128xf32>
    %c0_113 = arith.constant 0 : index
    %c0_114 = arith.constant 0 : index
    %81 = vector.load %arg9[%c0_113, %c0_114] : memref<128x128xf32, #tpu.memory_space<vmem>>, vector<128x128xf32>
    tpu.vector_store %arg9[%c0_113, %c0_114], %80 {strides = array<i32>} : memref<128x128xf32, #tpu.memory_space<vmem>>, vector<128x128xf32>,
    %c0_115 = arith.constant 0 : index
    %c0_116 = arith.constant 0 : index
    %82 = vector.load %arg9[%c0_115, %c0_116] : memref<128x128xf32, #tpu.memory_space<vmem>>, vector<128x128xf32>
    %cst_117 = arith.constant dense<0.000000e+00> : vector<128xf32>
    %83 = vector.multi_reduction <add>, %82, %cst_117 [0] : vector<128x128xf32> to vector<128xf32>
    %84 = vector.shape_cast %83 : vector<128xf32> to vector<1x128xf32>
    %cst_118 = arith.constant 1.280000e+02 : f32
    %85 = vector.broadcast %cst_118 : f32 to vector<1x128xf32>
    %86 = arith.divf %84, %85 : vector<1x128xf32>
    %87 = arith.mulf %82, %82 : vector<128x128xf32>
    %cst_119 = arith.constant dense<0.000000e+00> : vector<128xf32>
    %88 = vector.multi_reduction <add>, %87, %cst_119 [0] : vector<128x128xf32> to vector<128xf32>
    %89 = vector.shape_cast %88 : vector<128xf32> to vector<1x128xf32>
    %cst_120 = arith.constant 1.280000e+02 : f32
    %90 = vector.broadcast %cst_120 : f32 to vector<1x128xf32>
    %91 = arith.divf %89, %90 : vector<1x128xf32>
    %92 = arith.mulf %86, %86 : vector<1x128xf32>
    %93 = arith.subf %91, %92 : vector<1x128xf32>
    %cst_121 = arith.constant 0.000000e+00 : f32
    %94 = vector.broadcast %cst_121 : f32 to vector<1x128xf32>
    %95 = arith.maximumf %93, %94 : vector<1x128xf32>
    %c0_122 = arith.constant 0 : index
    %c0_123 = arith.constant 0 : index
    %96 = vector.load %arg2[%c0_122, %c0_123] : memref<1x128xf32, #tpu.memory_space<vmem>>, vector<1x128xf32>
    %cst_124 = arith.constant 9.99999974E-6 : f32
    %97 = vector.broadcast %cst_124 : f32 to vector<1x128xf32>
    %98 = arith.addf %95, %97 : vector<1x128xf32>
    %99 = math.rsqrt %98 : vector<1x128xf32>
    %100 = arith.mulf %96, %99 : vector<1x128xf32>
    %c0_125 = arith.constant 0 : index
    %c0_126 = arith.constant 0 : index
    %101 = vector.load %arg3[%c0_125, %c0_126] : memref<1x128xf32, #tpu.memory_space<vmem>>, vector<1x128xf32>
    %102 = arith.mulf %86, %100 : vector<1x128xf32>
    %103 = arith.subf %101, %102 : vector<1x128xf32>
    %104 = vector.broadcast %100 : vector<1x128xf32> to vector<128x128xf32>
    %105 = arith.mulf %82, %104 : vector<128x128xf32>
    %106 = vector.broadcast %103 : vector<1x128xf32> to vector<128x128xf32>
    %107 = arith.addf %105, %106 : vector<128x128xf32>
    %cst_127 = arith.constant 0.000000e+00 : f32
    %108 = vector.broadcast %cst_127 : f32 to vector<128x128xf32>
    %109 = arith.maximumf %107, %108 : vector<128x128xf32>
    %110 = vector.shape_cast %109 : vector<128x128xf32> to vector<2x8x8x128xf32>
    %111 = arith.truncf %110 : vector<2x8x8x128xf32> to vector<2x8x8x128xbf16>
    %c0_128 = arith.constant 0 : index
    %c1_129 = arith.constant 1 : index
    %c1_130 = arith.constant 1 : index
    %c0_131 = arith.constant 0 : index
    %112 = vector.load %arg8[%c0_128, %c1_129, %c1_130, %c0_131] : memref<2x10x10x128xbf16, #tpu.memory_space<vmem>>, vector<2x8x8x128xbf16>
    tpu.vector_store %arg8[%c0_128, %c1_129, %c1_130, %c0_131], %111 {strides = array<i32>} : memref<2x10x10x128xbf16, #tpu.memory_space<vmem>>, vector<2x8x8x128xbf16>,
    %c0_132 = arith.constant 0 : index
    %c0_133 = arith.constant 0 : index
    %c0_134 = arith.constant 0 : index
    %c0_135 = arith.constant 0 : index
    %113 = vector.load %arg8[%c0_132, %c0_133, %c0_134, %c0_135] : memref<2x10x10x128xbf16, #tpu.memory_space<vmem>>, vector<2x8x8x128xbf16>
    %114 = vector.shape_cast %113 : vector<2x8x8x128xbf16> to vector<128x128xbf16>
    %c0_136 = arith.constant 0 : index
    %c0_137 = arith.constant 0 : index
    %c0_138 = arith.constant 0 : index
    %115 = vector.load %arg4[%c0_136, %c0_137, %c0_138] : memref<9x128x128xbf16, #tpu.memory_space<vmem>>, vector<1x128x128xbf16>
    %116 = vector.shape_cast %115 : vector<1x128x128xbf16> to vector<128x128xbf16>
    %cst_139 = arith.constant dense<0.000000e+00> : vector<128x128xf32>
    %117 = tpu.matmul %114, %116, %cst_139 {dimension_numbers = #tpu.dot_dimension_numbers<[1], [0], [0], [1], [0, 0, 1, 1], [], []>} : vector<128x128xbf16>, vector<128x128xbf16>, vector<128x128xf32> -> vector<128x128xf32>
    %c0_140 = arith.constant 0 : index
    %c0_141 = arith.constant 0 : index
    %118 = vector.load %arg9[%c0_140, %c0_141] : memref<128x128xf32, #tpu.memory_space<vmem>>, vector<128x128xf32>
    tpu.vector_store %arg9[%c0_140, %c0_141], %117 {strides = array<i32>} : memref<128x128xf32, #tpu.memory_space<vmem>>, vector<128x128xf32>,
    %c0_142 = arith.constant 0 : index
    %c0_143 = arith.constant 0 : index
    %c1_144 = arith.constant 1 : index
    %c0_145 = arith.constant 0 : index
    %119 = vector.load %arg8[%c0_142, %c0_143, %c1_144, %c0_145] : memref<2x10x10x128xbf16, #tpu.memory_space<vmem>>, vector<2x8x8x128xbf16>
    %120 = vector.shape_cast %119 : vector<2x8x8x128xbf16> to vector<128x128xbf16>
    %c1_146 = arith.constant 1 : index
    %c0_147 = arith.constant 0 : index
    %c0_148 = arith.constant 0 : index
    %121 = vector.load %arg4[%c1_146, %c0_147, %c0_148] : memref<9x128x128xbf16, #tpu.memory_space<vmem>>, vector<1x128x128xbf16>
    %122 = vector.shape_cast %121 : vector<1x128x128xbf16> to vector<128x128xbf16>
    %cst_149 = arith.constant dense<0.000000e+00> : vector<128x128xf32>
    %123 = tpu.matmul %120, %122, %cst_149 {dimension_numbers = #tpu.dot_dimension_numbers<[1], [0], [0], [1], [0, 0, 1, 1], [], []>} : vector<128x128xbf16>, vector<128x128xbf16>, vector<128x128xf32> -> vector<128x128xf32>
    %c0_150 = arith.constant 0 : index
    %c0_151 = arith.constant 0 : index
    %124 = vector.load %arg9[%c0_150, %c0_151] : memref<128x128xf32, #tpu.memory_space<vmem>>, vector<128x128xf32>
    %125 = arith.addf %124, %123 : vector<128x128xf32>
    %c0_152 = arith.constant 0 : index
    %c0_153 = arith.constant 0 : index
    %126 = vector.load %arg9[%c0_152, %c0_153] : memref<128x128xf32, #tpu.memory_space<vmem>>, vector<128x128xf32>
    tpu.vector_store %arg9[%c0_152, %c0_153], %125 {strides = array<i32>} : memref<128x128xf32, #tpu.memory_space<vmem>>, vector<128x128xf32>,
    %c0_154 = arith.constant 0 : index
    %c0_155 = arith.constant 0 : index
    %c2_156 = arith.constant 2 : index
    %c0_157 = arith.constant 0 : index
    %127 = vector.load %arg8[%c0_154, %c0_155, %c2_156, %c0_157] : memref<2x10x10x128xbf16, #tpu.memory_space<vmem>>, vector<2x8x8x128xbf16>
    %128 = vector.shape_cast %127 : vector<2x8x8x128xbf16> to vector<128x128xbf16>
    %c2_158 = arith.constant 2 : index
    %c0_159 = arith.constant 0 : index
    %c0_160 = arith.constant 0 : index
    %129 = vector.load %arg4[%c2_158, %c0_159, %c0_160] : memref<9x128x128xbf16, #tpu.memory_space<vmem>>, vector<1x128x128xbf16>
    %130 = vector.shape_cast %129 : vector<1x128x128xbf16> to vector<128x128xbf16>
    %cst_161 = arith.constant dense<0.000000e+00> : vector<128x128xf32>
    %131 = tpu.matmul %128, %130, %cst_161 {dimension_numbers = #tpu.dot_dimension_numbers<[1], [0], [0], [1], [0, 0, 1, 1], [], []>} : vector<128x128xbf16>, vector<128x128xbf16>, vector<128x128xf32> -> vector<128x128xf32>
    %c0_162 = arith.constant 0 : index
    %c0_163 = arith.constant 0 : index
    %132 = vector.load %arg9[%c0_162, %c0_163] : memref<128x128xf32, #tpu.memory_space<vmem>>, vector<128x128xf32>
    %133 = arith.addf %132, %131 : vector<128x128xf32>
    %c0_164 = arith.constant 0 : index
    %c0_165 = arith.constant 0 : index
    %134 = vector.load %arg9[%c0_164, %c0_165] : memref<128x128xf32, #tpu.memory_space<vmem>>, vector<128x128xf32>
    tpu.vector_store %arg9[%c0_164, %c0_165], %133 {strides = array<i32>} : memref<128x128xf32, #tpu.memory_space<vmem>>, vector<128x128xf32>,
    %c0_166 = arith.constant 0 : index
    %c1_167 = arith.constant 1 : index
    %c0_168 = arith.constant 0 : index
    %c0_169 = arith.constant 0 : index
    %135 = vector.load %arg8[%c0_166, %c1_167, %c0_168, %c0_169] : memref<2x10x10x128xbf16, #tpu.memory_space<vmem>>, vector<2x8x8x128xbf16>
    %136 = vector.shape_cast %135 : vector<2x8x8x128xbf16> to vector<128x128xbf16>
    %c3_170 = arith.constant 3 : index
    %c0_171 = arith.constant 0 : index
    %c0_172 = arith.constant 0 : index
    %137 = vector.load %arg4[%c3_170, %c0_171, %c0_172] : memref<9x128x128xbf16, #tpu.memory_space<vmem>>, vector<1x128x128xbf16>
    %138 = vector.shape_cast %137 : vector<1x128x128xbf16> to vector<128x128xbf16>
    %cst_173 = arith.constant dense<0.000000e+00> : vector<128x128xf32>
    %139 = tpu.matmul %136, %138, %cst_173 {dimension_numbers = #tpu.dot_dimension_numbers<[1], [0], [0], [1], [0, 0, 1, 1], [], []>} : vector<128x128xbf16>, vector<128x128xbf16>, vector<128x128xf32> -> vector<128x128xf32>
    %c0_174 = arith.constant 0 : index
    %c0_175 = arith.constant 0 : index
    %140 = vector.load %arg9[%c0_174, %c0_175] : memref<128x128xf32, #tpu.memory_space<vmem>>, vector<128x128xf32>
    %141 = arith.addf %140, %139 : vector<128x128xf32>
    %c0_176 = arith.constant 0 : index
    %c0_177 = arith.constant 0 : index
    %142 = vector.load %arg9[%c0_176, %c0_177] : memref<128x128xf32, #tpu.memory_space<vmem>>, vector<128x128xf32>
    tpu.vector_store %arg9[%c0_176, %c0_177], %141 {strides = array<i32>} : memref<128x128xf32, #tpu.memory_space<vmem>>, vector<128x128xf32>,
    %c0_178 = arith.constant 0 : index
    %c1_179 = arith.constant 1 : index
    %c1_180 = arith.constant 1 : index
    %c0_181 = arith.constant 0 : index
    %143 = vector.load %arg8[%c0_178, %c1_179, %c1_180, %c0_181] : memref<2x10x10x128xbf16, #tpu.memory_space<vmem>>, vector<2x8x8x128xbf16>
    %144 = vector.shape_cast %143 : vector<2x8x8x128xbf16> to vector<128x128xbf16>
    %c4_182 = arith.constant 4 : index
    %c0_183 = arith.constant 0 : index
    %c0_184 = arith.constant 0 : index
    %145 = vector.load %arg4[%c4_182, %c0_183, %c0_184] : memref<9x128x128xbf16, #tpu.memory_space<vmem>>, vector<1x128x128xbf16>
    %146 = vector.shape_cast %145 : vector<1x128x128xbf16> to vector<128x128xbf16>
    %cst_185 = arith.constant dense<0.000000e+00> : vector<128x128xf32>
    %147 = tpu.matmul %144, %146, %cst_185 {dimension_numbers = #tpu.dot_dimension_numbers<[1], [0], [0], [1], [0, 0, 1, 1], [], []>} : vector<128x128xbf16>, vector<128x128xbf16>, vector<128x128xf32> -> vector<128x128xf32>
    %c0_186 = arith.constant 0 : index
    %c0_187 = arith.constant 0 : index
    %148 = vector.load %arg9[%c0_186, %c0_187] : memref<128x128xf32, #tpu.memory_space<vmem>>, vector<128x128xf32>
    %149 = arith.addf %148, %147 : vector<128x128xf32>
    %c0_188 = arith.constant 0 : index
    %c0_189 = arith.constant 0 : index
    %150 = vector.load %arg9[%c0_188, %c0_189] : memref<128x128xf32, #tpu.memory_space<vmem>>, vector<128x128xf32>
    tpu.vector_store %arg9[%c0_188, %c0_189], %149 {strides = array<i32>} : memref<128x128xf32, #tpu.memory_space<vmem>>, vector<128x128xf32>,
    %c0_190 = arith.constant 0 : index
    %c1_191 = arith.constant 1 : index
    %c2_192 = arith.constant 2 : index
    %c0_193 = arith.constant 0 : index
    %151 = vector.load %arg8[%c0_190, %c1_191, %c2_192, %c0_193] : memref<2x10x10x128xbf16, #tpu.memory_space<vmem>>, vector<2x8x8x128xbf16>
    %152 = vector.shape_cast %151 : vector<2x8x8x128xbf16> to vector<128x128xbf16>
    %c5_194 = arith.constant 5 : index
    %c0_195 = arith.constant 0 : index
    %c0_196 = arith.constant 0 : index
    %153 = vector.load %arg4[%c5_194, %c0_195, %c0_196] : memref<9x128x128xbf16, #tpu.memory_space<vmem>>, vector<1x128x128xbf16>
    %154 = vector.shape_cast %153 : vector<1x128x128xbf16> to vector<128x128xbf16>
    %cst_197 = arith.constant dense<0.000000e+00> : vector<128x128xf32>
    %155 = tpu.matmul %152, %154, %cst_197 {dimension_numbers = #tpu.dot_dimension_numbers<[1], [0], [0], [1], [0, 0, 1, 1], [], []>} : vector<128x128xbf16>, vector<128x128xbf16>, vector<128x128xf32> -> vector<128x128xf32>
    %c0_198 = arith.constant 0 : index
    %c0_199 = arith.constant 0 : index
    %156 = vector.load %arg9[%c0_198, %c0_199] : memref<128x128xf32, #tpu.memory_space<vmem>>, vector<128x128xf32>
    %157 = arith.addf %156, %155 : vector<128x128xf32>
    %c0_200 = arith.constant 0 : index
    %c0_201 = arith.constant 0 : index
    %158 = vector.load %arg9[%c0_200, %c0_201] : memref<128x128xf32, #tpu.memory_space<vmem>>, vector<128x128xf32>
    tpu.vector_store %arg9[%c0_200, %c0_201], %157 {strides = array<i32>} : memref<128x128xf32, #tpu.memory_space<vmem>>, vector<128x128xf32>,
    %c0_202 = arith.constant 0 : index
    %c2_203 = arith.constant 2 : index
    %c0_204 = arith.constant 0 : index
    %c0_205 = arith.constant 0 : index
    %159 = vector.load %arg8[%c0_202, %c2_203, %c0_204, %c0_205] : memref<2x10x10x128xbf16, #tpu.memory_space<vmem>>, vector<2x8x8x128xbf16>
    %160 = vector.shape_cast %159 : vector<2x8x8x128xbf16> to vector<128x128xbf16>
    %c6_206 = arith.constant 6 : index
    %c0_207 = arith.constant 0 : index
    %c0_208 = arith.constant 0 : index
    %161 = vector.load %arg4[%c6_206, %c0_207, %c0_208] : memref<9x128x128xbf16, #tpu.memory_space<vmem>>, vector<1x128x128xbf16>
    %162 = vector.shape_cast %161 : vector<1x128x128xbf16> to vector<128x128xbf16>
    %cst_209 = arith.constant dense<0.000000e+00> : vector<128x128xf32>
    %163 = tpu.matmul %160, %162, %cst_209 {dimension_numbers = #tpu.dot_dimension_numbers<[1], [0], [0], [1], [0, 0, 1, 1], [], []>} : vector<128x128xbf16>, vector<128x128xbf16>, vector<128x128xf32> -> vector<128x128xf32>
    %c0_210 = arith.constant 0 : index
    %c0_211 = arith.constant 0 : index
    %164 = vector.load %arg9[%c0_210, %c0_211] : memref<128x128xf32, #tpu.memory_space<vmem>>, vector<128x128xf32>
    %165 = arith.addf %164, %163 : vector<128x128xf32>
    %c0_212 = arith.constant 0 : index
    %c0_213 = arith.constant 0 : index
    %166 = vector.load %arg9[%c0_212, %c0_213] : memref<128x128xf32, #tpu.memory_space<vmem>>, vector<128x128xf32>
    tpu.vector_store %arg9[%c0_212, %c0_213], %165 {strides = array<i32>} : memref<128x128xf32, #tpu.memory_space<vmem>>, vector<128x128xf32>,
    %c0_214 = arith.constant 0 : index
    %c2_215 = arith.constant 2 : index
    %c1_216 = arith.constant 1 : index
    %c0_217 = arith.constant 0 : index
    %167 = vector.load %arg8[%c0_214, %c2_215, %c1_216, %c0_217] : memref<2x10x10x128xbf16, #tpu.memory_space<vmem>>, vector<2x8x8x128xbf16>
    %168 = vector.shape_cast %167 : vector<2x8x8x128xbf16> to vector<128x128xbf16>
    %c7_218 = arith.constant 7 : index
    %c0_219 = arith.constant 0 : index
    %c0_220 = arith.constant 0 : index
    %169 = vector.load %arg4[%c7_218, %c0_219, %c0_220] : memref<9x128x128xbf16, #tpu.memory_space<vmem>>, vector<1x128x128xbf16>
    %170 = vector.shape_cast %169 : vector<1x128x128xbf16> to vector<128x128xbf16>
    %cst_221 = arith.constant dense<0.000000e+00> : vector<128x128xf32>
    %171 = tpu.matmul %168, %170, %cst_221 {dimension_numbers = #tpu.dot_dimension_numbers<[1], [0], [0], [1], [0, 0, 1, 1], [], []>} : vector<128x128xbf16>, vector<128x128xbf16>, vector<128x128xf32> -> vector<128x128xf32>
    %c0_222 = arith.constant 0 : index
    %c0_223 = arith.constant 0 : index
    %172 = vector.load %arg9[%c0_222, %c0_223] : memref<128x128xf32, #tpu.memory_space<vmem>>, vector<128x128xf32>
    %173 = arith.addf %172, %171 : vector<128x128xf32>
    %c0_224 = arith.constant 0 : index
    %c0_225 = arith.constant 0 : index
    %174 = vector.load %arg9[%c0_224, %c0_225] : memref<128x128xf32, #tpu.memory_space<vmem>>, vector<128x128xf32>
    tpu.vector_store %arg9[%c0_224, %c0_225], %173 {strides = array<i32>} : memref<128x128xf32, #tpu.memory_space<vmem>>, vector<128x128xf32>,
    %c0_226 = arith.constant 0 : index
    %c2_227 = arith.constant 2 : index
    %c2_228 = arith.constant 2 : index
    %c0_229 = arith.constant 0 : index
    %175 = vector.load %arg8[%c0_226, %c2_227, %c2_228, %c0_229] : memref<2x10x10x128xbf16, #tpu.memory_space<vmem>>, vector<2x8x8x128xbf16>
    %176 = vector.shape_cast %175 : vector<2x8x8x128xbf16> to vector<128x128xbf16>
    %c8_230 = arith.constant 8 : index
    %c0_231 = arith.constant 0 : index
    %c0_232 = arith.constant 0 : index
    %177 = vector.load %arg4[%c8_230, %c0_231, %c0_232] : memref<9x128x128xbf16, #tpu.memory_space<vmem>>, vector<1x128x128xbf16>
    %178 = vector.shape_cast %177 : vector<1x128x128xbf16> to vector<128x128xbf16>
    %cst_233 = arith.constant dense<0.000000e+00> : vector<128x128xf32>
    %179 = tpu.matmul %176, %178, %cst_233 {dimension_numbers = #tpu.dot_dimension_numbers<[1], [0], [0], [1], [0, 0, 1, 1], [], []>} : vector<128x128xbf16>, vector<128x128xbf16>, vector<128x128xf32> -> vector<128x128xf32>
    %c0_234 = arith.constant 0 : index
    %c0_235 = arith.constant 0 : index
    %180 = vector.load %arg9[%c0_234, %c0_235] : memref<128x128xf32, #tpu.memory_space<vmem>>, vector<128x128xf32>
    %181 = arith.addf %180, %179 : vector<128x128xf32>
    %c0_236 = arith.constant 0 : index
    %c0_237 = arith.constant 0 : index
    %182 = vector.load %arg9[%c0_236, %c0_237] : memref<128x128xf32, #tpu.memory_space<vmem>>, vector<128x128xf32>
    tpu.vector_store %arg9[%c0_236, %c0_237], %181 {strides = array<i32>} : memref<128x128xf32, #tpu.memory_space<vmem>>, vector<128x128xf32>,
    %c0_238 = arith.constant 0 : index
    %c0_239 = arith.constant 0 : index
    %183 = vector.load %arg9[%c0_238, %c0_239] : memref<128x128xf32, #tpu.memory_space<vmem>>, vector<128x128xf32>
    %cst_240 = arith.constant dense<0.000000e+00> : vector<128xf32>
    %184 = vector.multi_reduction <add>, %183, %cst_240 [0] : vector<128x128xf32> to vector<128xf32>
    %185 = vector.shape_cast %184 : vector<128xf32> to vector<1x128xf32>
    %cst_241 = arith.constant 1.280000e+02 : f32
    %186 = vector.broadcast %cst_241 : f32 to vector<1x128xf32>
    %187 = arith.divf %185, %186 : vector<1x128xf32>
    %188 = arith.mulf %183, %183 : vector<128x128xf32>
    %cst_242 = arith.constant dense<0.000000e+00> : vector<128xf32>
    %189 = vector.multi_reduction <add>, %188, %cst_242 [0] : vector<128x128xf32> to vector<128xf32>
    %190 = vector.shape_cast %189 : vector<128xf32> to vector<1x128xf32>
    %cst_243 = arith.constant 1.280000e+02 : f32
    %191 = vector.broadcast %cst_243 : f32 to vector<1x128xf32>
    %192 = arith.divf %190, %191 : vector<1x128xf32>
    %193 = arith.mulf %187, %187 : vector<1x128xf32>
    %194 = arith.subf %192, %193 : vector<1x128xf32>
    %cst_244 = arith.constant 0.000000e+00 : f32
    %195 = vector.broadcast %cst_244 : f32 to vector<1x128xf32>
    %196 = arith.maximumf %194, %195 : vector<1x128xf32>
    %c0_245 = arith.constant 0 : index
    %c0_246 = arith.constant 0 : index
    %197 = vector.load %arg5[%c0_245, %c0_246] : memref<1x128xf32, #tpu.memory_space<vmem>>, vector<1x128xf32>
    %cst_247 = arith.constant 9.99999974E-6 : f32
    %198 = vector.broadcast %cst_247 : f32 to vector<1x128xf32>
    %199 = arith.addf %196, %198 : vector<1x128xf32>
    %200 = math.rsqrt %199 : vector<1x128xf32>
    %201 = arith.mulf %197, %200 : vector<1x128xf32>
    %c0_248 = arith.constant 0 : index
    %c0_249 = arith.constant 0 : index
    %202 = vector.load %arg6[%c0_248, %c0_249] : memref<1x128xf32, #tpu.memory_space<vmem>>, vector<1x128xf32>
    %203 = arith.mulf %187, %201 : vector<1x128xf32>
    %204 = arith.subf %202, %203 : vector<1x128xf32>
    %205 = vector.broadcast %201 : vector<1x128xf32> to vector<128x128xf32>
    %206 = arith.mulf %183, %205 : vector<128x128xf32>
    %207 = vector.broadcast %204 : vector<1x128xf32> to vector<128x128xf32>
    %208 = arith.addf %206, %207 : vector<128x128xf32>
    %cst_250 = arith.constant 0.000000e+00 : f32
    %209 = vector.broadcast %cst_250 : f32 to vector<128x128xf32>
    %210 = arith.maximumf %208, %209 : vector<128x128xf32>
    %c0_251 = arith.constant 0 : index
    %c0_252 = arith.constant 0 : index
    %211 = vector.load %arg7[%c0_251, %c0_252] : memref<128x128xf32, #tpu.memory_space<vmem>>, vector<128x128xf32>
    tpu.vector_store %arg7[%c0_251, %c0_252], %210 {strides = array<i32>} : memref<128x128xf32, #tpu.memory_space<vmem>>, vector<128x128xf32>,
    return
  }
}

</mosaic_0001>

<bundles_post_ra>
// kernel: tpu_custom_call.1
= control target key start
LH: loop header
LB: loop body
LE: loop exit
PB: predicated region body
PF: predicated region fallthrough
CT: control target
= control target key end

     0   :  { %12 = vsyncpa [#allocation5], 0  ;;  %s9832_s0 = inlined_call_operand.hbm [shape: f32[2,8,2,8,8], index: 0, kind: input, shape index: {}]   ;;  %s9833_s1 = inlined_call_operand.hbm [shape: bf16[9,128,128], index: 1, kind: input, shape index: {}]   ;;  %s9834_s2 = inlined_call_operand.vmem [shape: f32[1,128], index: 2, kind: input, shape index: {}]   ;;  %s9835_s3 = inlined_call_operand.vmem [shape: f32[1,128], index: 3, kind: input, shape index: {}]   ;;  %s9836_s4 = inlined_call_operand.hbm [shape: bf16[9,128,128], index: 4, kind: input, shape index: {}]   ;;  %s9837_s5 = inlined_call_operand.vmem [shape: f32[1,128], index: 5, kind: input, shape index: {}]   ;;  %s9838_s6 = inlined_call_operand.vmem [shape: f32[1,128], index: 6, kind: input, shape index: {}]   ;;  %s9839_s7 = inlined_call_operand.hbm [shape: f32[128,128], index: 7, kind: output, shape index: {}]  }
   0x1   :  { %13 = vsyncpa [#allocation8], 0  ;;  %s32_s26 = sshll.u32 %s9833_s1, 4  ;;  %s33_s26 = int_to_ptr.hbm [resolvable:$true] %s32_s26 }
   0x2   :  { %14 = vsyncpa [#allocation6], 0  ;;  %s8290_s27 = smov [#allocation7]   ;;  %s19_s8 = sshll.u32 %s9832_s0, 4  ;;  %s20_s8 = int_to_ptr.hbm [resolvable:$true] %s19_s8 }
   0x3   :  { %s34_s28 = sshll.u32 %s8290_s27, 4  ;;  %s8291_s9 = smov 64   ;;  %s35_s28 = int_to_ptr.vmem [resolvable:$true] %s34_s28 }
   0x4   :  { %s8292_s10 = smov 4   ;;  %s8293_s11 = smov [#allocation4]  }
   0x5   :  { %40 = dma.hbm_to_vmem [thread:$0]  %s33_s26, 9216, %s35_s28, [#allocation8], %s8291_s9, %s8291_s9, %s8292_s10  }
   0x6   :  { %s21_s12 = sshll.u32 %s8293_s11, 4  ;;  %s8294_s13 = smov 128   ;;  %s22_s12 = int_to_ptr.vmem [resolvable:$true] %s21_s12 }
   0x7   :  { %s8295_s14 = smov 8   ;;  %s49_s16 = sshll.u32 %s9836_s4, 4  ;;  %s50_s16 = int_to_ptr.hbm [resolvable:$true] %s49_s16 }
   0x8   :  { %27 = dma.hbm_to_vmem [thread:$0]  %s20_s8, 4096, %s22_s12, [#allocation5], %s8294_s13, %s8294_s13, %s8295_s14  }
   0x9   :  { %s8296_s17 = smov [#allocation9]  }
   0xa   :  { %s51_s0 = sshll.u32 %s8296_s17, 4  ;;  %s52_s0 = int_to_ptr.vmem [resolvable:$true] %s51_s0 }
   0xb   :  { %57 = dma.hbm_to_vmem [thread:$0]  %s50_s16, 9216, %s52_s0, [#allocation8], %s8291_s9, %s8291_s9, %s8292_s10  }
   0xc   :  { %8284 = dma.done.wait [#allocation5], 4096  }
   0xd   :  { %8285 = vsyncadd [#allocation5], 4294963200 }
   0xe   :  { %8286 = dma.done.wait [#allocation8], 18432  }
   0xf   :  { %8287 = vsyncadd [#allocation8], 4294948864  ;;  %v8297_v0 = vmov 0   ;;  %v83_v1 = vld [vmem:[#allocation4 + $0x80] sm:$0xff]  ;;  %v100_v2 = vld [vmem:[#allocation4 + $0x88] sm:$0xff]  ;;  %s8298_s4 = smov 124  }
  0x10   :  { %226 = vst [vmem:[#allocation2 + $0x58] sm:$0xf] %v8297_v0  ;;  %v75_v3 = vld [vmem:[#allocation4] sm:$0xff]  ;;  %v8358_v4 = vmax.f32 %v83_v1, %v100_v2  ;;  %v92_v5 = vld [vmem:[#allocation4 + $0x8] sm:$0xff]  ;;  %v84_v6 = vld [vmem:[#allocation4 + $0x90] sm:$0xff]  ;;  %vm421_vm0 = vcmask 27648  }
  0x11   :  { %227 = vst [vmem:[#allocation2 + $0x5c] sm:$0x1] %v8297_v0  ;;  %v85_v7 = vld [vmem:[#allocation4 + $0xa0] sm:$0xff]  ;;  %v8361_v8 = vmax.f32 %v75_v3, %v92_v5  ;;  %v101_v9 = vld [vmem:[#allocation4 + $0x98] sm:$0xff]  ;;  %v102_v10 = vld [vmem:[#allocation4 + $0xa8] sm:$0xff]  ;;  %vm427_vm2 = vcmask 24576  }
  0x12   :  { %204 = vst [vmem:[#allocation2] sm:$0xf] %v8297_v0  ;;  %v86_v11 = vld [vmem:[#allocation4 + $0xb0] sm:$0xff]  ;;  %156 = vrot.lane.b32.xlu0 %v8358_v4, %s8298_s4  ;;  %v8366_v12 = vmax.f32 %v84_v6, %v101_v9  ;;  %v8368_v13 = vmax.f32 %v85_v7, %v102_v10  ;;  %v87_v14 = vld [vmem:[#allocation4 + $0xc0] sm:$0xff]  ;;  %v103_v15 = vld [vmem:[#allocation4 + $0xb8] sm:$0xff]  ;;  %vm1233_vm9 = vcmask 1042432  }
  0x13   :  { %205 = vst [vmem:[#allocation2 + $0x4] sm:$0x1] %v8297_v0  ;;  %v104_v16 = vld [vmem:[#allocation4 + $0xc8] sm:$0xff]  ;;  %140 = vrot.lane.b32.xlu1 %v8361_v8, %s8298_s4  ;;  %v8373_v17 = vmax.f32 %v86_v11, %v103_v15  ;;  %v78_v19 = vld [vmem:[#allocation4 + $0x30] sm:$0xff]  ;;  %v77_v21 = vld [vmem:[#allocation4 + $0x20] sm:$0xff]  ;;  %vm1234_vm10 = vcmask 1046532  }
  0x14   :  { %206 = vst [vmem:[#allocation2 + $0x8] sm:$0xf] %v8297_v0  ;;  %v8375_v18 = vmax.f32 %v87_v14, %v104_v16  ;;  %v76_v20 = vld [vmem:[#allocation4 + $0x10] sm:$0xff]  ;;  %v79_v22 = vld [vmem:[#allocation4 + $0x40] sm:$0xff]  ;;  %v95_v23 = vld [vmem:[#allocation4 + $0x38] sm:$0xff]  ;;  %v8152_v26 = vpack.i.bf16 %v8368_v13, %v8366_v12  ;;  %s7055_s26 = sshll.u32 %s9839_s7, 4  ;;  %s7056_s26 = int_to_ptr.hbm [resolvable:$true] %s7055_s26 }
  0x15   :  { %207 = vst [vmem:[#allocation2 + $0xc] sm:$0x1] %v8297_v0  ;;  %v93_v24 = vld [vmem:[#allocation4 + $0x18] sm:$0xff]  ;;  %v94_v25 = vld [vmem:[#allocation4 + $0x28] sm:$0xff]  ;;  %v80_v30 = vld [vmem:[#allocation4 + $0x50] sm:$0xff]  ;;  %v8393_v40 = vmax.f32 %v78_v19, %v95_v23 }
  0x16   :  { %208 = vst [vmem:[#allocation2 + $0x10] sm:$0xf] %v8297_v0  ;;  %v96_v27 = vld [vmem:[#allocation4 + $0x48] sm:$0xff]  ;;  %v8382_v28 = vmax.f32 %v76_v20, %v93_v24  ;;  %v8384_v29 = vmax.f32 %v77_v21, %v94_v25  ;;  %v81_v31 = vld [vmem:[#allocation4 + $0x60] sm:$0xff]  ;;  %v8157_v32 = vpack.i.bf16 %v8375_v18, %v8373_v17  ;;  %v97_v33 = vld [vmem:[#allocation4 + $0x58] sm:$0xff] }
  0x17   :  { %209 = vst [vmem:[#allocation2 + $0x14] sm:$0x1] %v8297_v0  ;;  %v98_v34 = vld [vmem:[#allocation4 + $0x68] sm:$0xff]  ;;  %v88_v35 = vld [vmem:[#allocation4 + $0xd0] sm:$0xff]  ;;  %v89_v37 = vld [vmem:[#allocation4 + $0xe0] sm:$0xff]  ;;  %v8397_v42 = vmax.f32 %v79_v22, %v96_v27  ;;  %v8406_v45 = vmax.f32 %v80_v30, %v97_v33 }
  0x18   :  { %210 = vst [vmem:[#allocation2 + $0x18] sm:$0xf] %v8297_v0  ;;  %v8162_v36 = vpack.i.bf16 %v8384_v29, %v8382_v28  ;;  %v105_v38 = vld [vmem:[#allocation4 + $0xd8] sm:$0xff]  ;;  %v106_v39 = vld [vmem:[#allocation4 + $0xe8] sm:$0xff]  ;;  %v8408_v46 = vmax.f32 %v81_v31, %v98_v34  ;;  %v7947_v47 = vld [vmem:[#allocation7 + $0x30] sm:$0xff] }
  0x19   :  { %211 = vst [vmem:[#allocation2 + $0x1c] sm:$0x1] %v8297_v0  ;;  %v7948_v41 = vld [vmem:[#allocation7 + $0x38] sm:$0xff]  ;;  %v8400_v43 = vmax.f32 %v88_v35, %v105_v38  ;;  %v8402_v44 = vmax.f32 %v89_v37, %v106_v39  ;;  %v8172_v48 = vpack.i.bf16 %v8397_v42, %v8393_v40  ;;  %v7946_v51 = vld [vmem:[#allocation7 + $0x28] sm:$0xff]  ;;  %v90_v52 = vld [vmem:[#allocation4 + $0xf0] sm:$0xff] }
  0x1a   :  { %212 = vst [vmem:[#allocation2 + $0x20] sm:$0xf] %v8297_v0  ;;  %8153 = vrot.lane.b32.xlu0 %v8152_v26, %s8298_s4  ;;  %8163 = vrot.lane.b32.xlu2 %v8162_v36, %s8298_s4  ;;  %v8177_v50 = vpack.i.bf16 %v8408_v46, %v8406_v45  ;;  %v107_v53 = vld [vmem:[#allocation4 + $0xf8] sm:$0xff]  ;;  %v82_v54 = vld [vmem:[#allocation4 + $0x70] sm:$0xff]  ;;  %v7945_v59 = vld [vmem:[#allocation7 + $0x20] sm:$0xff] }
  0x1b   :  { %213 = vst [vmem:[#allocation2 + $0x24] sm:$0x1] %v8297_v0  ;;  %8158 = vrot.lane.b32.xlu1 %v8157_v32, %s8298_s4  ;;  %651 = vmatpush.bf16.msra.mxu0 %v7948_v41  ;;  %v8167_v49 = vpack.i.bf16 %v8402_v44, %v8400_v43  ;;  %v99_v55 = vld [vmem:[#allocation4 + $0x78] sm:$0xff]  ;;  %v8430_v56 = vmax.f32 %v90_v52, %v107_v53  ;;  %v7955_v60 = vld [vmem:[#allocation7 + $0x70] sm:$0xff]  ;;  %v7954_v62 = vld [vmem:[#allocation7 + $0x68] sm:$0xff] }
  0x1c   :  { %214 = vst [vmem:[#allocation2 + $0x28] sm:$0xf] %v8297_v0  ;;  %8125 = vmatpush.bf16.msra.mxu2 %v7948_v41  ;;  %v8432_v57 = vmax.f32 %v82_v54, %v99_v55  ;;  %v7956_v58 = vld [vmem:[#allocation7 + $0x78] sm:$0xff]  ;;  %v7943_v63 = vld [vmem:[#allocation7 + $0x10] sm:$0xff]  ;;  %v7953_v1 = vld [vmem:[#allocation7 + $0x60] sm:$0xff] }
  0x1d   :  { %215 = vst [vmem:[#allocation2 + $0x2c] sm:$0x1] %v8297_v0  ;;  %1072 = vmatpush.bf16.msra.mxu1 %v7956_v58  ;;  %8133 = vmatpush.bf16.msra.mxu3 %v7956_v58  ;;  %v7944_v61 = vld [vmem:[#allocation7 + $0x18] sm:$0xff]  ;;  %v7942_v2 = vld [vmem:[#allocation7 + $0x8] sm:$0xff]  ;;  %v7941_v10 = vld [vmem:[#allocation7] sm:$0xff] }
  0x1e   :  { %216 = vst [vmem:[#allocation2 + $0x30] sm:$0xf] %v8297_v0  ;;  %v7952_v7 = vld [vmem:[#allocation7 + $0x58] sm:$0xff]  ;;  %v7951_v16 = vld [vmem:[#allocation7 + $0x50] sm:$0xff]  ;;  %v716_v19 = vld [vmem:[#allocation2] sm:$0xf] }
  0x1f   :  { %217 = vst [vmem:[#allocation2 + $0x34] sm:$0x1] %v8297_v0  ;;  %652 = vmatpush.bf16.msra.mxu0 %v7947_v47  ;;  %v752_v21 = vshrl.u32 %v716_v19, 16  ;;  %v755_v22 = vshll.u32 %v716_v19, 16  ;;  %vm422_vm1 = vsmask.f32 7938  ;;  %vm8640_vm11 = vmor %vm1233_vm9, %vm1234_vm10 }
  0x20   :  { %218 = vst [vmem:[#allocation2 + $0x38] sm:$0xf] %v8297_v0  ;;  %8126 = vmatpush.bf16.msra.mxu2 %v7947_v47  ;;  %vm428_vm3 = vsmask.f32 256  ;;  %vm8454_vm4 = vmand %vm421_vm0, %vm422_vm1  ;;  %v433_v31 = vld [vmem:[#allocation2 + $0x10] sm:$0xf] }
  0x21   :  { %219 = vst [vmem:[#allocation2 + $0x3c] sm:$0x1] %v8297_v0  ;;  %1073 = vmatpush.bf16.msra.mxu1 %v7955_v60  ;;  %8134 = vmatpush.bf16.msra.mxu3 %v7955_v60  ;;  %v717_v33 = vld [vmem:[#allocation2 + $0x4] sm:$0x1]  ;;  %v754_v34 = vrot.slane %v752_v21, 4  ;;  %v757_v35 = vrot.slane %v755_v22, 5  ;;  %vm8462_vm5 = vmand %vm427_vm2, %vm428_vm3 }
  0x22   :  { %220 = vst [vmem:[#allocation2 + $0x40] sm:$0xf] %v8297_v0  ;;  %8173 = vrot.lane.b32.xlu0 %v8172_v48, %s8298_s4  ;;  %8168 = vrot.lane.b32.xlu2 %v8167_v49, %s8298_s4  ;;  %v439_v36 = vld [vmem:[#allocation2 + $0x18] sm:$0xf]  ;;  %v436_v47 = vld [vmem:[#allocation2 + $0x14] sm:$0x1] }
  0x23   :  { %221 = vst [vmem:[#allocation2 + $0x44] sm:$0x1] %v8297_v0  ;;  %8178 = vrot.lane.b32.xlu1 %v8177_v50, %s8298_s4  ;;  %653 = vmatpush.bf16.msra.mxu0 %v7946_v51  ;;  %v761_v52 = vshll.u32 %v717_v33, 16  ;;  %v7949_v60 = vld [vmem:[#allocation7 + $0x40] sm:$0xff]  ;;  %vm748_vm6 = vsmask.f32 3328 }
  0x24   :  { %222 = vst [vmem:[#allocation2 + $0x48] sm:$0xf] %v8297_v0  ;;  %8127 = vmatpush.bf16.msra.mxu2 %v7946_v51  ;;  %vm749_vm7 = vsmask.f32 7440  ;;  %vm3823_vm0 = vcmask 1043456   ;;  %vm3828_vm2 = vcmask 1040384  }
  0x25   :  { %223 = vst [vmem:[#allocation2 + $0x4c] sm:$0x1] %v8297_v0  ;;  %1074 = vmatpush.bf16.msra.mxu1 %v7954_v62  ;;  %8135 = vmatpush.bf16.msra.mxu3 %v7954_v62  ;;  %vm8497_vm8 = vmor %vm748_vm6, %vm749_vm7 }
  0x26   :  { %224 = vst [vmem:[#allocation2 + $0x50] sm:$0xf] %v8297_v0 }
  0x27   :  { %225 = vst [vmem:[#allocation2 + $0x54] sm:$0x1] %v8297_v0  ;;  %654 = vmatpush.bf16.msra.mxu0 %v7945_v59 }
  0x28   :  { %228 = vst [vmem:[#allocation2 + $0x60] sm:$0xf] %v8297_v0  ;;  %8128 = vmatpush.bf16.msra.mxu2 %v7945_v59 }
  0x29   :  { %229 = vst [vmem:[#allocation2 + $0x64] sm:$0x1] %v8297_v0  ;;  %1075 = vmatpush.bf16.msra.mxu1 %v7953_v1  ;;  %8136 = vmatpush.bf16.msra.mxu3 %v7953_v1 }
  0x2a   :  { %230 = vst [vmem:[#allocation2 + $0x68] sm:$0xf] %v8297_v0  ;;  %170 = vrot.lane.b32.xlu0 %v8430_v56, %s8298_s4  ;;  %154 = vrot.lane.b32.xlu2 %v8432_v57, %s8298_s4 }
  0x2b   :  { %231 = vst [vmem:[#allocation2 + $0x6c] sm:$0x1] %v8297_v0  ;;  %655 = vmatpush.bf16.msra.mxu0 %v7944_v61 }
  0x2c   :  { %232 = vst [vmem:[#allocation2 + $0x70] sm:$0xf] %v8297_v0  ;;  %8129 = vmatpush.bf16.msra.mxu2 %v7944_v61  ;;  %v758_v61 = vor.u32 %v757_v35, %v754_v34 }
  0x2d   :  { %233 = vst [vmem:[#allocation2 + $0x74] sm:$0x1] %v8297_v0  ;;  %1076 = vmatpush.bf16.msra.mxu1 %v7952_v7  ;;  %8137 = vmatpush.bf16.msra.mxu3 %v7952_v7 }
  0x2e   :  { %234 = vst [vmem:[#allocation2 + $0x78] sm:$0xf] %v8297_v0  ;;  %v8479_v7 = vrot.slane %v758_v61, 4 }
  0x2f   :  { %235 = vst [vmem:[#allocation2 + $0x7c] sm:$0x1] %v8297_v0  ;;  %656 = vmatpush.bf16.msra.mxu0 %v7943_v63 }
  0x30   :  { %236 = vst [vmem:[#allocation2 + $0x80] sm:$0xf] %v8297_v0  ;;  %8130 = vmatpush.bf16.msra.mxu2 %v7943_v63  ;;  %v442_v63 = vld [vmem:[#allocation2 + $0x1c] sm:$0x1] }
  0x31   :  { %237 = vst [vmem:[#allocation2 + $0x84] sm:$0x1] %v8297_v0  ;;  %1077 = vmatpush.bf16.msra.mxu1 %v7951_v16  ;;  %8138 = vmatpush.bf16.msra.mxu3 %v7951_v16  ;;  %v475_v16 = vld [vmem:[#allocation2 + $0x58] sm:$0xf] }
  0x32   :  { %238 = vst [vmem:[#allocation2 + $0x88] sm:$0xf] %v8297_v0 }
  0x33   :  { %239 = vst [vmem:[#allocation2 + $0x8c] sm:$0x1] %v8297_v0  ;;  %657 = vmatpush.bf16.msra.mxu0 %v7942_v2 }
  0x34   :  { %240 = vst [vmem:[#allocation2 + $0x90] sm:$0xf] %v8297_v0  ;;  %8131 = vmatpush.bf16.msra.mxu2 %v7942_v2 }
  0x35   :  { %241 = vst [vmem:[#allocation2 + $0x94] sm:$0x1] %v8297_v0 }
  0x36   :  { %242 = vst [vmem:[#allocation2 + $0x98] sm:$0xf] %v8297_v0 }
  0x37   :  { %243 = vst [vmem:[#allocation2 + $0x9c] sm:$0x1] %v8297_v0  ;;  %658 = vmatpush.bf16.msra.mxu0 %v7941_v10 }
  0x38   :  { %8132 = vmatpush.bf16.msra.mxu2 %v7941_v10 }
  0x74   :  { %v8164_v0 = vpop.permute.xlu2 %8163 }
  0x75   :  { %v8165_v3 = vunpack.i.l.bf16 %v8164_v0  ;;  %v8166_v5 = vunpack.i.h.bf16 %v8164_v0 }
  0x77   :  { %v189_v6 = vmax.f32 %v8382_v28, %v8165_v3  ;;  %v190_v9 = vmax.f32 %v8384_v29, %v8166_v5  ;;  %v7950_v28 = vld [vmem:[#allocation7 + $0x48] sm:$0xff]  ;;  %v732_v29 = vld [vmem:[#allocation2 + $0x50] sm:$0xf]  ;;  %v8477_v3 = vld [vmem:[#allocation2 + $0x54] sm:$0x1] }
  0x78   :  { %1078 = vmatpush.bf16.msra.mxu1 %v7950_v28  ;;  %8139 = vmatpush.bf16.msra.mxu3 %v7950_v28  ;;  %v864_v53 = vshrl.u32 %v732_v29, 16  ;;  %v873_v22 = vshll.u32 %v8477_v3, 16 }
  0x79   :  { %v245_v11 = vpack.c.bf16 %v189_v6, %v189_v6  ;;  %v246_v14 = vpack.c.bf16 %v190_v9, %v190_v9 }
  0x7a   :  { %v8483_v9 = vrot.slane %v864_v53, 4 }
  0x7b   :  { %v269_v15 = vshrl.u32 %v245_v11, 16  ;;  %v277_v20 = vshrl.u32 %v246_v14, 16  ;;  %v272_v24 = vshll.u32 %v245_v11, 16  ;;  %v280_v26 = vshll.u32 %v246_v14, 16 }
  0x7c   :  { %v8169_v39 = vpop.permute.xlu2 %8168  ;;  %1079 = vmatpush.bf16.msra.mxu1 %v7949_v60  ;;  %8140 = vmatpush.bf16.msra.mxu3 %v7949_v60 }
  0x7d   :  { %v271_v23 = vrot.slane %v269_v15, 7  ;;  %v279_v25 = vrot.slane %v277_v20, 7  ;;  %v8170_v49 = vunpack.i.l.bf16 %v8169_v39  ;;  %v8171_v6 = vunpack.i.h.bf16 %v8169_v39 }
  0x7f   :  { %v274_v27 = vor.u32 %v272_v24, %v271_v23  ;;  %v282_v32 = vor.u32 %v280_v26, %v279_v25  ;;  %v275_v37 = vrot.slane %v271_v23, 4  ;;  %v283_v58 = vrot.slane %v279_v25, 4  ;;  %v478_v23 = vld [vmem:[#allocation2 + $0x5c] sm:$0x1] }
  0x80   :  { %v201_v59 = vmax.f32 %v8400_v43, %v8170_v49  ;;  %v202_v14 = vmax.f32 %v8402_v44, %v8171_v6 }
  0x81   :  { %v434_v38 = vsel %vm8454_vm4, %v274_v27, %v433_v31  ;;  %v440_v48 = vsel %vm8454_vm4, %v282_v32, %v439_v36  ;;  %v437_v51 = vsel %vm8462_vm5, %v275_v37, %v436_v47  ;;  %v443_v0 = vsel %vm8462_vm5, %v283_v58, %v442_v63  ;;  %v424_v31 = vld [vmem:[#allocation2 + $0x8] sm:$0xf]  ;;  %v430_v32 = vld [vmem:[#allocation2 + $0xc] sm:$0x1]  ;;  %v505_v58 = vld [vmem:[#allocation2 + $0x80] sm:$0xf] }
  0x82   :  { %435 = vst [vmem:[#allocation2 + $0x10] sm:$0xf] %v434_v38  ;;  %v8475_v2 = vpack.c.bf16 %v201_v59, %v201_v59  ;;  %v8490_v26 = vpack.c.bf16 %v202_v14, %v202_v14  ;;  %v9848_v47 = vmov 0  ;;  %v490_v14 = vld [vmem:[#allocation2 + $0x6c] sm:$0x1] }
  0x83   :  { %441 = vst [vmem:[#allocation2 + $0x18] sm:$0xf] %v440_v48  ;;  %v9849_v47 = vsel %vm8497_vm8, 4294967295, %v9848_v47 }
  0x84   :  { %v157_v50 = vpop.permute.xlu0 %156  ;;  %438 = vst [vmem:[#allocation2 + $0x14] sm:$0x1] %v437_v51  ;;  %v365_v15 = vshrl.u32 %v8475_v2, 16  ;;  %v368_v28 = vshll.u32 %v8475_v2, 16  ;;  %v373_v61 = vshrl.u32 %v8490_v26, 16  ;;  %v7963_v2 = vld [vmem:[#allocation7 + $0xb0] sm:$0xff] }
  0x85   :  { %v196_v54 = vmax.f32 %v8358_v4, %v157_v50  ;;  %v141_v55 = vpop.permute.xlu1 %140  ;;  %v867_v4 = vshll.u32 %v732_v29, 16  ;;  %444 = vst [vmem:[#allocation2 + $0x1c] sm:$0x1] %v443_v0  ;;  %v508_v0 = vld [vmem:[#allocation2 + $0x84] sm:$0x1] }
  0x86   :  { %v188_v62 = vmax.f32 %v8361_v8, %v141_v55  ;;  %v8481_v8 = vrot.slane %v761_v52, 5  ;;  %v8492_v27 = vrot.slane %v365_v15, 7  ;;  %9850 = vst [vmem:[#allocation14_spill] sm:$0xff] %v9849_v47 }
  0x87   :  { %v252_v1 = vpack.c.bf16 %v196_v54, %v196_v54  ;;  %v8487_v21 = vrot.slane %v867_v4, 5 }
  0x88   :  { %v244_v5 = vpack.c.bf16 %v188_v62, %v188_v62  ;;  %v7980_v62 = vld [vmem:[#allocation7 + $0xf8] sm:$0xff] }
  0x89   :  { %v325_v43 = vshrl.u32 %v252_v1, 16  ;;  %v328_v20 = vshll.u32 %v252_v1, 16  ;;  %1623 = vmatpush.bf16.msrb.mxu3 %v7980_v62 }
  0x8a   :  { %v261_v10 = vshrl.u32 %v244_v5, 16  ;;  %v264_v11 = vshll.u32 %v244_v5, 16 }
  0x8b   :  { %v327_v19 = vrot.slane %v325_v43, 7 }
  0x8c   :  { %v263_v24 = vrot.slane %v261_v10, 7  ;;  %v8154_v25 = vpop.permute.xlu0 %8153  ;;  %v481_v10 = vld [vmem:[#allocation2 + $0x60] sm:$0xf] }
  0x8d   :  { %v330_v29 = vor.u32 %v328_v20, %v327_v19  ;;  %v331_v44 = vrot.slane %v327_v19, 4  ;;  %v8156_v33 = vunpack.i.h.bf16 %v8154_v25  ;;  %v8155_v34 = vunpack.i.l.bf16 %v8154_v25  ;;  %v8159_v35 = vpop.permute.xlu1 %8158 }
  0x8e   :  { %v266_v36 = vor.u32 %v264_v11, %v263_v24  ;;  %v267_v37 = vrot.slane %v263_v24, 4  ;;  %v8161_v38 = vunpack.i.h.bf16 %v8159_v35  ;;  %v8160_v39 = vunpack.i.l.bf16 %v8159_v35  ;;  %v487_v11 = vld [vmem:[#allocation2 + $0x68] sm:$0xf]  ;;  %v484_v24 = vld [vmem:[#allocation2 + $0x64] sm:$0x1] }
  0x8f   :  { %v476_v48 = vsel %vm8454_vm4, %v330_v29, %v475_v16  ;;  %v479_v49 = vsel %vm8462_vm5, %v331_v44, %v478_v23  ;;  %v198_v50 = vmax.f32 %v8368_v13, %v8156_v33  ;;  %v197_v51 = vmax.f32 %v8366_v12, %v8155_v34  ;;  %v7964_v13 = vld [vmem:[#allocation7 + $0xb8] sm:$0xff]  ;;  %v7979_v44 = vld [vmem:[#allocation7 + $0xf0] sm:$0xff]  ;;  %v7071_v34 = vld [vmem:[#allocation2] sm:$0xf] }
  0x90   :  { %477 = vst [vmem:[#allocation2 + $0x58] sm:$0xf] %v476_v48  ;;  %v425_v52 = vsel %vm8454_vm4, %v266_v36, %v424_v31  ;;  %v431_v53 = vsel %vm8462_vm5, %v267_v37, %v430_v32  ;;  %v200_v54 = vmax.f32 %v8375_v18, %v8161_v38  ;;  %v199_v55 = vmax.f32 %v8373_v17, %v8160_v39  ;;  %v7988_v31 = vld [vmem:[#allocation7 + $0x138] sm:$0xff]  ;;  %v7087_v35 = vld [vmem:[#allocation2 + $0x50] sm:$0xf] }
  0x91   :  { %480 = vst [vmem:[#allocation2 + $0x5c] sm:$0x1] %v479_v49  ;;  %v254_v59 = vpack.c.bf16 %v198_v50, %v198_v50  ;;  %v253_v60 = vpack.c.bf16 %v197_v51, %v197_v51  ;;  %v764_v12 = vsel %vm8497_vm8, %v8479_v7, %v8481_v8  ;;  %v370_v18 = vor.u32 %v368_v28, %v8492_v27  ;;  %v502_v50 = vld [vmem:[#allocation2 + $0x7c] sm:$0x1]  ;;  %v493_v51 = vld [vmem:[#allocation2 + $0x70] sm:$0xf] }
  0x92   :  { %426 = vst [vmem:[#allocation2 + $0x8] sm:$0xf] %v425_v52  ;;  %v256_v63 = vpack.c.bf16 %v200_v54, %v200_v54  ;;  %v255_v1 = vpack.c.bf16 %v199_v55, %v199_v55  ;;  %v371_v17 = vrot.slane %v8492_v27, 4  ;;  %1397 = vmatpush.bf16.msrb.mxu2 %v7964_v13  ;;  %v376_v28 = vshll.u32 %v8490_v26, 16  ;;  %v499_v26 = vld [vmem:[#allocation2 + $0x78] sm:$0xf]  ;;  %1624 = vmatpush.bf16.msrb.mxu3 %v7979_v44 }
  0x93   :  { %432 = vst [vmem:[#allocation2 + $0xc] sm:$0x1] %v431_v53  ;;  %v341_v4 = vshrl.u32 %v254_v59, 16  ;;  %v344_v5 = vshll.u32 %v254_v59, 16  ;;  %v333_v6 = vshrl.u32 %v253_v60, 16  ;;  %v336_v43 = vshll.u32 %v253_v60, 16  ;;  %2073 = vmatpush.bf16.msrb.mxu0 %v7988_v31 }
  0x94   :  { %v357_v15 = vshrl.u32 %v256_v63, 16  ;;  %v360_v16 = vshll.u32 %v256_v63, 16  ;;  %v349_v19 = vshrl.u32 %v255_v1, 16  ;;  %v352_v20 = vshll.u32 %v255_v1, 16  ;;  %v8520_v23 = vpop.permute.xlu0 %8173  ;;  %v8568_v7 = vld [vmem:[#allocation2 + $0x14] sm:$0xf0] }
  0x95   :  { %v343_v25 = vrot.slane %v341_v4, 7  ;;  %v335_v27 = vrot.slane %v333_v6, 7  ;;  %v506_v29 = vsel %vm8454_vm4, %v370_v18, %v505_v58  ;;  %v8525_v36 = vrot.slane %v373_v61, 7 }
  0x96   :  { %v359_v32 = vrot.slane %v357_v15, 7  ;;  %v351_v33 = vrot.slane %v349_v19, 7  ;;  %507 = vst [vmem:[#allocation2 + $0x80] sm:$0xf] %v506_v29  ;;  %v509_v37 = vsel %vm8462_vm5, %v371_v17, %v508_v0  ;;  %1398 = vmatpush.bf16.msrb.mxu2 %v7963_v2  ;;  %v8176_v58 = vunpack.i.h.bf16 %v8520_v23  ;;  %v496_v0 = vld [vmem:[#allocation2 + $0x74] sm:$0x1] }
  0x97   :  { %v346_v38 = vor.u32 %v344_v5, %v343_v25  ;;  %v347_v39 = vrot.slane %v343_v25, 4  ;;  %v338_v48 = vor.u32 %v336_v43, %v335_v27  ;;  %v339_v49 = vrot.slane %v335_v27, 4  ;;  %v7937_v55 = vld [vmem:[#allocation2 + $0x54] sm:$0xf0]  ;;  %510 = vst [vmem:[#allocation2 + $0x84] sm:$0x1] %v509_v37 }
  0x98   :  { %v362_v52 = vor.u32 %v360_v16, %v359_v32  ;;  %v363_v53 = vrot.slane %v359_v32, 4  ;;  %v354_v54 = vor.u32 %v352_v20, %v351_v33  ;;  %v355_v13 = vrot.slane %v351_v33, 4  ;;  %v511_v43 = vld [vmem:[#allocation2 + $0x88] sm:$0xf]  ;;  %v734_v31 = vld [vmem:[#allocation2 + $0x58] sm:$0xf] }
  0x99   :  { %v488_v59 = vsel %vm8454_vm4, %v346_v38, %v487_v11  ;;  %v491_v60 = vsel %vm8462_vm5, %v347_v39, %v490_v14  ;;  %v482_v61 = vsel %vm8454_vm4, %v338_v48, %v481_v10  ;;  %v7933_v62 = vld [vmem:[#allocation2 + $0x4] sm:$0xf0]  ;;  %v485_v1 = vsel %vm8462_vm5, %v339_v49, %v484_v24  ;;  %v514_v14 = vld [vmem:[#allocation2 + $0x8c] sm:$0x1] }
  0x9a   :  { %v718_v63 = vld [vmem:[#allocation2 + $0x8] sm:$0xf]  ;;  %489 = vst [vmem:[#allocation2 + $0x68] sm:$0xf] %v488_v59  ;;  %v500_v18 = vsel %vm8454_vm4, %v362_v52, %v499_v26  ;;  %v503_v17 = vsel %vm8462_vm5, %v363_v53, %v502_v50  ;;  %v719_v2 = vld [vmem:[#allocation2 + $0xc] sm:$0x1]  ;;  %v870_v4 = vor.u32 %v8487_v21, %v8483_v9  ;;  %v7072_v5 = vor.u32 %v7933_v62, %v7071_v34 }
  0x9b   :  { %492 = vst [vmem:[#allocation2 + $0x6c] sm:$0x1] %v491_v60  ;;  %v7088_v6 = vor.u32 %v7937_v55, %v7087_v35  ;;  %v378_v10 = vor.u32 %v376_v28, %v8525_v36  ;;  %v379_v11 = vrot.slane %v8525_v36, 4  ;;  %v192_v15 = vmax.f32 %v8397_v42, %v8176_v58  ;;  %v451_v38 = vld [vmem:[#allocation2 + $0x28] sm:$0xf] }
  0x9c   :  { %483 = vst [vmem:[#allocation2 + $0x60] sm:$0xf] %v482_v61  ;;  %v8175_v16 = vunpack.i.l.bf16 %v8520_v23  ;;  %v766_v19 = vshrl.u32 %v718_v63, 16  ;;  %v769_v20 = vshll.u32 %v718_v63, 16  ;;  %v171_v24 = vpop.permute.xlu0 %170  ;;  %v494_v9 = vsel %vm8454_vm4, %v354_v54, %v493_v51  ;;  %659 = vmatmul.bf16.vlgmr.msra.gmra.mxu0 %v7072_v5  ;;  %v8559_v23 = vld [vmem:[#allocation2 + $0x10] sm:$0xf] }
  0x9d   :  { %486 = vst [vmem:[#allocation2 + $0x64] sm:$0x1] %v485_v1  ;;  %v497_v21 = vsel %vm8462_vm5, %v355_v13, %v496_v0  ;;  %679 = vmatmul.bf16.vlgmr.msra.gmra.mxu2 %v7088_v6  ;;  %v775_v25 = vshll.u32 %v719_v2, 16  ;;  %v8557_v42 = vunpack.c.l.b16 %v764_v12  ;;  %v248_v27 = vpack.c.bf16 %v192_v15, %v192_v15  ;;  %v8179_v12 = vpop.permute.xlu1 %8178  ;;  %v735_v52 = vld [vmem:[#allocation2 + $0x5c] sm:$0x1]  ;;  %v7962_v62 = vld [vmem:[#allocation7 + $0xa8] sm:$0xff] }
  0x9e   :  { %501 = vst [vmem:[#allocation2 + $0x78] sm:$0xf] %v500_v18  ;;  %v191_v28 = vmax.f32 %v8393_v40, %v8175_v16  ;;  %v768_v29 = vrot.slane %v766_v19, 4  ;;  %v771_v44 = vrot.slane %v769_v20, 5  ;;  %v512_v32 = vsel %vm8454_vm4, %v378_v10, %v511_v43  ;;  %v454_v54 = vld [vmem:[#allocation2 + $0x2c] sm:$0x1]  ;;  %1399 = vmatpush.bf16.msrb.mxu2 %v7962_v62 }
  0x9f   :  { %504 = vst [vmem:[#allocation2 + $0x7c] sm:$0x1] %v503_v17  ;;  %v515_v33 = vsel %vm8462_vm5, %v379_v11, %v514_v14  ;;  %v8566_v34 = vrot.slane %v870_v4, 4  ;;  %v203_v8 = vmax.f32 %v8430_v56, %v171_v24  ;;  %v293_v35 = vshrl.u32 %v248_v27, 16  ;;  %v445_v63 = vld [vmem:[#allocation2 + $0x20] sm:$0xf] }
  0xa0   :  { %495 = vst [vmem:[#allocation2 + $0x70] sm:$0xf] %v494_v9  ;;  %v296_v40 = vshll.u32 %v248_v27, 16  ;;  %v247_v36 = vpack.c.bf16 %v191_v28, %v191_v28  ;;  %v772_v37 = vor.u32 %v771_v44, %v768_v29  ;;  %v777_v39 = vrot.slane %v775_v25, 5  ;;  %v448_v1 = vld [vmem:[#allocation2 + $0x24] sm:$0x1] }
  0xa1   :  { %498 = vst [vmem:[#allocation2 + $0x74] sm:$0x1] %v497_v21  ;;  %v875_v48 = vrot.slane %v873_v22, 5  ;;  %v878_v49 = vshrl.u32 %v734_v31, 16  ;;  %v881_v26 = vshll.u32 %v734_v31, 16  ;;  %v295_v50 = vrot.slane %v293_v35, 7 }
  0xa2   :  { %513 = vst [vmem:[#allocation2 + $0x88] sm:$0xf] %v512_v32  ;;  %v285_v51 = vshrl.u32 %v247_v36, 16  ;;  %v7076_v56 = vor.u32 %v8568_v7, %v8559_v23  ;;  %v8181_v53 = vunpack.i.h.bf16 %v8179_v12  ;;  %v288_v55 = vshll.u32 %v247_v36, 16  ;;  %v7978_v10 = vld [vmem:[#allocation7 + $0xe8] sm:$0xff]  ;;  %v7961_v31 = vld [vmem:[#allocation7 + $0xa0] sm:$0xff] }
  0xa3   :  { %516 = vst [vmem:[#allocation2 + $0x8c] sm:$0x1] %v515_v33  ;;  %v773_v58 = vrot.slane %v772_v37, 4  ;;  %v259_v59 = vpack.c.bf16 %v203_v8, %v203_v8  ;;  %v8180_v60 = vunpack.i.l.bf16 %v8179_v12  ;;  %v298_v61 = vor.u32 %v296_v40, %v295_v50  ;;  %v7091_v19 = vld [vmem:[#allocation2 + $0x60] sm:$0xf]  ;;  %1625 = vmatpush.bf16.msrb.mxu3 %v7978_v10  ;;  %1400 = vmatpush.bf16.msrb.mxu2 %v7961_v31  ;;  %v7986_v23 = vld [vmem:[#allocation7 + $0x128] sm:$0xff] }
  0xa4   :  { %v299_v13 = vrot.slane %v295_v50, 4  ;;  %v287_v3 = vrot.slane %v285_v51, 7  ;;  %v880_v22 = vrot.slane %v878_v49, 4  ;;  %v883_v18 = vrot.slane %v881_v26, 5  ;;  %v7938_v9 = vld [vmem:[#allocation2 + $0x64] sm:$0xf0] }
  0xa5   :  { %v778_v0 = vsel %vm8497_vm8, %v773_v58, %v777_v39  ;;  %v887_v17 = vshll.u32 %v735_v52, 16  ;;  %v194_v2 = vmax.f32 %v8408_v46, %v8181_v53  ;;  %v452_v4 = vsel %vm8454_vm4, %v298_v61, %v451_v38  ;;  %v7987_v46 = vld [vmem:[#allocation7 + $0x130] sm:$0xff]  ;;  %v463_v49 = vld [vmem:[#allocation2 + $0x38] sm:$0xf]  ;;  %v466_v7 = vld [vmem:[#allocation2 + $0x3c] sm:$0x1] }
  0xa6   :  { %v455_v5 = vsel %vm8462_vm5, %v299_v13, %v454_v54  ;;  %v290_v6 = vor.u32 %v288_v55, %v287_v3  ;;  %v291_v43 = vrot.slane %v287_v3, 4  ;;  %453 = vst [vmem:[#allocation2 + $0x28] sm:$0xf] %v452_v4  ;;  %v993_v11 = vunpack.c.l.b16 %v778_v0  ;;  %2074 = vmatpush.bf16.msrb.mxu0 %v7987_v46  ;;  %v517_v35 = vld [vmem:[#allocation2 + $0x90] sm:$0xf] }
  0xa7   :  { %v876_v14 = vsel %vm8497_vm8, %v8566_v34, %v875_v48  ;;  %v884_v15 = vor.u32 %v883_v18, %v880_v22  ;;  %v889_v16 = vrot.slane %v887_v17, 5  ;;  %456 = vst [vmem:[#allocation2 + $0x2c] sm:$0x1] %v455_v5  ;;  %v381_v21 = vshrl.u32 %v259_v59, 16  ;;  %v7977_v34 = vld [vmem:[#allocation7 + $0xe0] sm:$0xff]  ;;  %v155_v48 = vpop.permute.xlu2 %154  ;;  %v7960_v5 = vld [vmem:[#allocation7 + $0x98] sm:$0xff] }
  0xa8   :  { %v446_v20 = vsel %vm8454_vm4, %v290_v6, %v445_v63  ;;  %v449_v24 = vsel %vm8462_vm5, %v291_v43, %v448_v1  ;;  %v384_v25 = vshll.u32 %v259_v59, 16  ;;  %v1008_v27 = vpack.c.b16 %v993_v11, %v8557_v42  ;;  %v520_v40 = vld [vmem:[#allocation2 + $0x94] sm:$0x1]  ;;  %1626 = vmatpush.bf16.msrb.mxu3 %v7977_v34  ;;  %v457_v58 = vld [vmem:[#allocation2 + $0x30] sm:$0xf]  ;;  %1401 = vmatpush.bf16.msrb.mxu2 %v7960_v5 }
  0xa9   :  { %447 = vst [vmem:[#allocation2 + $0x20] sm:$0xf] %v446_v20  ;;  %v885_v28 = vrot.slane %v884_v15, 4  ;;  %v250_v29 = vpack.c.bf16 %v194_v2, %v194_v2  ;;  %v193_v44 = vmax.f32 %v8406_v45, %v8180_v60  ;;  %v1000_v32 = vunpack.c.l.b16 %v876_v14  ;;  %v720_v45 = vld [vmem:[#allocation2 + $0x10] sm:$0xf] }
  0xaa   :  { %450 = vst [vmem:[#allocation2 + $0x24] sm:$0x1] %v449_v24  ;;  %v383_v33 = vrot.slane %v381_v21, 7  ;;  %1080 = vmatmul.bf16.vlgmr.msra.gmra.mxu1 %v1008_v27  ;;  %v7092_v12 = vor.u32 %v7938_v9, %v7091_v19  ;;  %v780_v52 = vshrl.u32 %v720_v45, 16  ;;  %v460_v59 = vld [vmem:[#allocation2 + $0x34] sm:$0x1]  ;;  %v195_v3 = vmax.f32 %v8432_v57, %v155_v48  ;;  %2075 = vmatpush.bf16.msrb.mxu0 %v7986_v23 }
  0xab   :  { %v890_v8 = vsel %vm8497_vm8, %v885_v28, %v889_v16  ;;  %v249_v36 = vpack.c.bf16 %v193_v44, %v193_v44  ;;  %v309_v39 = vshrl.u32 %v250_v29, 16  ;;  %v312_v26 = vshll.u32 %v250_v29, 16  ;;  %v721_v61 = vld [vmem:[#allocation2 + $0x14] sm:$0x1]  ;;  %v722_v13 = vld [vmem:[#allocation2 + $0x18] sm:$0xf] }
  0xac   :  { %v1001_v42 = vunpack.c.l.b16 %v890_v8  ;;  %v386_v37 = vor.u32 %v384_v25, %v383_v33  ;;  %v387_v38 = vrot.slane %v383_v33, 4  ;;  %664 = vmatmul.bf16.gmra.mxu0 %v7076_v56  ;;  %v782_v63 = vrot.slane %v780_v52, 4  ;;  %v723_v17 = vld [vmem:[#allocation2 + $0x1c] sm:$0x1]  ;;  %v736_v11 = vld [vmem:[#allocation2 + $0x60] sm:$0xf] }
  0xad   :  { %684 = vmatmul.bf16.gmra.mxu2 %v7092_v12  ;;  %v301_v50 = vshrl.u32 %v249_v36, 16  ;;  %v304_v51 = vshll.u32 %v249_v36, 16  ;;  %v311_v60 = vrot.slane %v309_v39, 7  ;;  %v783_v1 = vshll.u32 %v720_v45, 16  ;;  %v737_v14 = vld [vmem:[#allocation2 + $0x64] sm:$0x1] }
  0xae   :  { %v1012_v53 = vpack.c.b16 %v1001_v42, %v1000_v32  ;;  %v518_v54 = vsel %vm8454_vm4, %v386_v37, %v517_v35  ;;  %v521_v55 = vsel %vm8462_vm5, %v387_v38, %v520_v40  ;;  %v789_v2 = vshll.u32 %v721_v61, 16  ;;  %v738_v20 = vld [vmem:[#allocation2 + $0x68] sm:$0xf]  ;;  %v739_v25 = vld [vmem:[#allocation2 + $0x6c] sm:$0x1]  ;;  %v7976_v8 = vld [vmem:[#allocation7 + $0xd8] sm:$0xff] }
  0xaf   :  { %519 = vst [vmem:[#allocation2 + $0x90] sm:$0xf] %v518_v54  ;;  %v303_v56 = vrot.slane %v301_v50, 7  ;;  %v314_v22 = vor.u32 %v312_v26, %v311_v60  ;;  %v315_v62 = vrot.slane %v311_v60, 4  ;;  %v794_v4 = vshrl.u32 %v722_v13, 16  ;;  %1627 = vmatpush.bf16.msrb.mxu3 %v7976_v8  ;;  %v7996_v61 = vld [vmem:[#allocation7 + $0x178] sm:$0xff] }
  0xb0   :  { %1100 = vmatmul.bf16.vlgmr.msra.gmra.mxu3 %v1012_v53  ;;  %522 = vst [vmem:[#allocation2 + $0x94] sm:$0x1] %v521_v55  ;;  %v785_v57 = vrot.slane %v783_v1, 5  ;;  %v797_v10 = vshll.u32 %v722_v13, 16  ;;  %v791_v19 = vrot.slane %v789_v2, 5  ;;  %v803_v21 = vshll.u32 %v723_v17, 16  ;;  %2395 = vmatpush.bf16.msrb.mxu1 %v7996_v61 }
  0xb1   :  { %v306_v0 = vor.u32 %v304_v51, %v303_v56  ;;  %v307_v18 = vrot.slane %v303_v56, 4  ;;  %v464_v6 = vsel %vm8454_vm4, %v314_v22, %v463_v49  ;;  %v467_v43 = vsel %vm8462_vm5, %v315_v62, %v466_v7  ;;  %v7079_v36 = vld [vmem:[#allocation2 + $0x20] sm:$0xf]  ;;  %v7935_v48 = vld [vmem:[#allocation2 + $0x24] sm:$0xf0]  ;;  %v7959_v1 = vld [vmem:[#allocation7 + $0x90] sm:$0xff] }
  0xb2   :  { %465 = vst [vmem:[#allocation2 + $0x38] sm:$0xf] %v464_v6  ;;  %v796_v46 = vrot.slane %v794_v4, 4  ;;  %v786_v24 = vor.u32 %v785_v57, %v782_v63  ;;  %v799_v9 = vrot.slane %v797_v10, 5  ;;  %v892_v27 = vshrl.u32 %v736_v11, 16  ;;  %v7985_v49 = vld [vmem:[#allocation7 + $0x120] sm:$0xff]  ;;  %1402 = vmatpush.bf16.msrb.mxu2 %v7959_v1 }
  0xb3   :  { %v458_v15 = vsel %vm8454_vm4, %v306_v0, %v457_v58  ;;  %v461_v16 = vsel %vm8462_vm5, %v307_v18, %v460_v59  ;;  %468 = vst [vmem:[#allocation2 + $0x3c] sm:$0x1] %v467_v43  ;;  %v895_v28 = vshll.u32 %v736_v11, 16  ;;  %v901_v29 = vshll.u32 %v737_v14, 16  ;;  %v7095_v53 = vld [vmem:[#allocation2 + $0x70] sm:$0xf]  ;;  %2076 = vmatpush.bf16.msrb.mxu0 %v7985_v49 }
  0xb4   :  { %459 = vst [vmem:[#allocation2 + $0x30] sm:$0xf] %v458_v15  ;;  %v906_v44 = vshrl.u32 %v738_v20, 16  ;;  %v787_v31 = vrot.slane %v786_v24, 4  ;;  %v800_v32 = vor.u32 %v799_v9, %v796_v46  ;;  %v805_v33 = vrot.slane %v803_v21, 5  ;;  %v7995_v63 = vld [vmem:[#allocation7 + $0x170] sm:$0xff] }
  0xb5   :  { %462 = vst [vmem:[#allocation2 + $0x34] sm:$0x1] %v461_v16  ;;  %v909_v34 = vshll.u32 %v738_v20, 16  ;;  %v894_v12 = vrot.slane %v892_v27, 4  ;;  %v897_v35 = vrot.slane %v895_v28, 5  ;;  %v251_v42 = vpack.c.bf16 %v195_v3, %v195_v3  ;;  %2396 = vmatpush.bf16.msrb.mxu1 %v7995_v63  ;;  %v7983_v61 = vld [vmem:[#allocation7 + $0x110] sm:$0xff] }
  0xb6   :  { %v908_v40 = vrot.slane %v906_v44, 4  ;;  %v792_v37 = vsel %vm8497_vm8, %v787_v31, %v791_v19  ;;  %v801_v38 = vrot.slane %v800_v32, 4  ;;  %v915_v45 = vshll.u32 %v739_v25, 16  ;;  %v7939_v54 = vld [vmem:[#allocation2 + $0x74] sm:$0xf0] }
  0xb7   :  { %v911_v39 = vrot.slane %v909_v34, 5  ;;  %v994_v26 = vunpack.c.l.b16 %v792_v37  ;;  %v898_v50 = vor.u32 %v897_v35, %v894_v12  ;;  %v903_v51 = vrot.slane %v901_v29, 5  ;;  %v469_v22 = vld [vmem:[#allocation2 + $0x40] sm:$0xf]  ;;  %v472_v17 = vld [vmem:[#allocation2 + $0x44] sm:$0x1] }
  0xb8   :  { %v7080_v52 = vor.u32 %v7935_v48, %v7079_v36  ;;  %v806_v55 = vsel %vm8497_vm8, %v801_v38, %v805_v33  ;;  %v917_v59 = vrot.slane %v915_v45, 5  ;;  %v7096_v60 = vor.u32 %v7939_v54, %v7095_v53  ;;  %v724_v62 = vld [vmem:[#allocation2 + $0x20] sm:$0xf]  ;;  %v725_v4 = vld [vmem:[#allocation2 + $0x24] sm:$0x1]  ;;  %v7984_v34 = vld [vmem:[#allocation7 + $0x118] sm:$0xff] }
  0xb9   :  { %v912_v58 = vor.u32 %v911_v39, %v908_v40  ;;  %v995_v13 = vunpack.c.l.b16 %v806_v55  ;;  %v899_v23 = vrot.slane %v898_v50, 4  ;;  %v317_v7 = vshrl.u32 %v251_v42, 16  ;;  %v726_v57 = vld [vmem:[#allocation2 + $0x28] sm:$0xf]  ;;  %v727_v10 = vld [vmem:[#allocation2 + $0x2c] sm:$0x1]  ;;  %2077 = vmatpush.bf16.msrb.mxu0 %v7984_v34 }
  0xba   :  { %v320_v56 = vshll.u32 %v251_v42, 16  ;;  %v808_v5 = vshrl.u32 %v724_v62, 16  ;;  %v811_v11 = vshll.u32 %v724_v62, 16  ;;  %v817_v14 = vshll.u32 %v725_v4, 16  ;;  %v740_v20 = vld [vmem:[#allocation2 + $0x70] sm:$0xf] }
  0xbb   :  { %v913_v3 = vrot.slane %v912_v58, 4  ;;  %v1009_v0 = vpack.c.b16 %v995_v13, %v994_v26  ;;  %v904_v18 = vsel %vm8497_vm8, %v899_v23, %v903_v51  ;;  %v319_v2 = vrot.slane %v317_v7, 7  ;;  %v741_v24 = vld [vmem:[#allocation2 + $0x74] sm:$0x1]  ;;  %v742_v28 = vld [vmem:[#allocation2 + $0x78] sm:$0xf] }
  0xbc   :  { %669 = vmatmul.bf16.gmra.mxu0 %v7080_v52  ;;  %v1002_v43 = vunpack.c.l.b16 %v904_v18  ;;  %v810_v46 = vrot.slane %v808_v5, 4  ;;  %v813_v9 = vrot.slane %v811_v11, 5  ;;  %v819_v21 = vrot.slane %v817_v14, 5  ;;  %v743_v33 = vld [vmem:[#allocation2 + $0x7c] sm:$0x1]  ;;  %v7975_v42 = vld [vmem:[#allocation7 + $0xd0] sm:$0xff] }
  0xbd   :  { %689 = vmatmul.bf16.gmra.mxu2 %v7096_v60  ;;  %v918_v6 = vsel %vm8497_vm8, %v913_v3, %v917_v59  ;;  %1085 = vmatmul.bf16.gmra.mxu1 %v1009_v0  ;;  %v322_v16 = vor.u32 %v320_v56, %v319_v2  ;;  %v323_v19 = vrot.slane %v319_v2, 4  ;;  %v822_v25 = vshrl.u32 %v726_v57, 16  ;;  %v8621_v36 = vld [vmem:[#allocation2 + $0x30] sm:$0xf]  ;;  %v7936_v26 = vld [vmem:[#allocation2 + $0x34] sm:$0xf0] }
  0xbe   :  { %v1003_v15 = vunpack.c.l.b16 %v918_v6  ;;  %v825_v27 = vshll.u32 %v726_v57, 16  ;;  %v831_v32 = vshll.u32 %v727_v10, 16  ;;  %v814_v8 = vor.u32 %v813_v9, %v810_v46  ;;  %1628 = vmatpush.bf16.msrb.mxu3 %v7975_v42  ;;  %v7994_v50 = vld [vmem:[#allocation7 + $0x168] sm:$0xff]  ;;  %v7099_v54 = vld [vmem:[#allocation2 + $0x80] sm:$0xf]  ;;  %2078 = vmatpush.bf16.msrb.mxu0 %v7983_v61 }
  0xbf   :  { %v470_v44 = vsel %vm8454_vm4, %v322_v16, %v469_v22  ;;  %v473_v31 = vsel %vm8462_vm5, %v323_v19, %v472_v17  ;;  %v824_v12 = vrot.slane %v822_v25, 4  ;;  %v920_v40 = vshrl.u32 %v740_v20, 16  ;;  %v7940_v60 = vld [vmem:[#allocation2 + $0x84] sm:$0xf0]  ;;  %2397 = vmatpush.bf16.msrb.mxu1 %v7994_v50  ;;  %v7993_v13 = vld [vmem:[#allocation7 + $0x160] sm:$0xff]  ;;  %vm9208_vm4 = vmand %vm3823_vm0, %vm422_vm1 }
  0xc0   :  { %v1013_v29 = vpack.c.b16 %v1003_v15, %v1002_v43  ;;  %471 = vst [vmem:[#allocation2 + $0x40] sm:$0xf] %v470_v44  ;;  %v827_v35 = vrot.slane %v825_v27, 5  ;;  %v833_v37 = vrot.slane %v831_v32, 5  ;;  %v923_v38 = vshll.u32 %v740_v20, 16  ;;  %v7958_v22 = vld [vmem:[#allocation7 + $0x88] sm:$0xff]  ;;  %vm9214_vm5 = vmand %vm3828_vm2, %vm428_vm3 }
  0xc1   :  { %474 = vst [vmem:[#allocation2 + $0x44] sm:$0x1] %v473_v31  ;;  %v929_v30 = vshll.u32 %v741_v24, 16  ;;  %v934_v39 = vshrl.u32 %v742_v28, 16  ;;  %v815_v41 = vrot.slane %v814_v8, 4  ;;  %v922_v48 = vrot.slane %v920_v40, 4  ;;  %1403 = vmatpush.bf16.msrb.mxu2 %v7958_v22 }
  0xc2   :  { %1105 = vmatmul.bf16.gmra.mxu3 %v1013_v29  ;;  %v828_v45 = vor.u32 %v827_v35, %v824_v12  ;;  %v937_v49 = vshll.u32 %v742_v28, 16  ;;  %v925_v51 = vrot.slane %v923_v38, 5  ;;  %v943_v53 = vshll.u32 %v743_v33, 16  ;;  %v728_v62 = vld [vmem:[#allocation2 + $0x30] sm:$0xf]  ;;  %v7982_v17 = vld [vmem:[#allocation7 + $0x108] sm:$0xff] }
  0xc3   :  { %v936_v52 = vrot.slane %v934_v39, 4  ;;  %v820_v55 = vsel %vm8497_vm8, %v815_v41, %v819_v21  ;;  %v931_v56 = vrot.slane %v929_v30, 5  ;;  %v7084_v3 = vor.u32 %v7936_v26, %v8621_v36  ;;  %v729_v2 = vld [vmem:[#allocation2 + $0x34] sm:$0x1]  ;;  %v730_v4 = vld [vmem:[#allocation2 + $0x38] sm:$0xf]  ;;  %2398 = vmatpush.bf16.msrb.mxu1 %v7993_v13  ;;  %2079 = vmatpush.bf16.msrb.mxu0 %v7982_v17 }
  0xc4   :  { %v829_v58 = vrot.slane %v828_v45, 4  ;;  %v939_v59 = vrot.slane %v937_v49, 5  ;;  %v996_v23 = vunpack.c.l.b16 %v820_v55  ;;  %v926_v7 = vor.u32 %v925_v51, %v922_v48  ;;  %v7974_v10 = vld [vmem:[#allocation7 + $0xc8] sm:$0xff]  ;;  %v731_v14 = vld [vmem:[#allocation2 + $0x3c] sm:$0x1]  ;;  %v7957_v35 = vld [vmem:[#allocation7 + $0x80] sm:$0xff] }
  0xc5   :  { %v945_v0 = vrot.slane %v943_v53, 5  ;;  %v7100_v18 = vor.u32 %v7940_v60, %v7099_v54  ;;  %v836_v43 = vshrl.u32 %v728_v62, 16  ;;  %v839_v57 = vshll.u32 %v728_v62, 16  ;;  %v744_v21 = vld [vmem:[#allocation2 + $0x80] sm:$0xf]  ;;  %1629 = vmatpush.bf16.msrb.mxu3 %v7974_v10  ;;  %v7992_v12 = vld [vmem:[#allocation7 + $0x158] sm:$0xff]  ;;  %1404 = vmatpush.bf16.msrb.mxu2 %v7957_v35 }
  0xc6   :  { %v834_v63 = vsel %vm8497_vm8, %v829_v58, %v833_v37  ;;  %v940_v1 = vor.u32 %v939_v59, %v936_v52  ;;  %v927_v6 = vrot.slane %v926_v7, 4  ;;  %v845_v15 = vshll.u32 %v729_v2, 16  ;;  %v745_v44 = vld [vmem:[#allocation2 + $0x84] sm:$0x1]  ;;  %v746_v31 = vld [vmem:[#allocation2 + $0x88] sm:$0xf] }
  0xc7   :  { %v997_v5 = vunpack.c.l.b16 %v834_v63  ;;  %v850_v16 = vshrl.u32 %v730_v4, 16  ;;  %v853_v19 = vshll.u32 %v730_v4, 16  ;;  %v838_v24 = vrot.slane %v836_v43, 4  ;;  %v7981_v40 = vld [vmem:[#allocation7 + $0x100] sm:$0xff]  ;;  %v747_v36 = vld [vmem:[#allocation2 + $0x8c] sm:$0x1]  ;;  %2399 = vmatpush.bf16.msrb.mxu1 %v7992_v12 }
  0xc8   :  { %v941_v11 = vrot.slane %v940_v1, 4  ;;  %v932_v20 = vsel %vm8497_vm8, %v927_v6, %v931_v56  ;;  %v841_v9 = vrot.slane %v839_v57, 5  ;;  %v847_v28 = vrot.slane %v845_v15, 5  ;;  %v1169_v48 = vld [vmem:[#allocation2] sm:$0xe]  ;;  %2080 = vmatpush.bf16.msrb.mxu0 %v7981_v40  ;;  %v7991_v60 = vld [vmem:[#allocation7 + $0x150] sm:$0xff] }
  0xc9   :  { %v1010_v46 = vpack.c.b16 %v997_v5, %v996_v23  ;;  %v1004_v27 = vunpack.c.l.b16 %v932_v20  ;;  %v852_v29 = vrot.slane %v850_v16, 4  ;;  %v855_v34 = vrot.slane %v853_v19, 5  ;;  %v1170_v51 = vld [vmem:[#allocation2 + $0x4] sm:$0x1]  ;;  %v1171_v52 = vld [vmem:[#allocation2 + $0x8] sm:$0xe] }
  0xca   :  { %v946_v25 = vsel %vm8497_vm8, %v941_v11, %v945_v0  ;;  %v842_v33 = vor.u32 %v841_v9, %v838_v24  ;;  %v859_v8 = vshll.u32 %v731_v14, 16  ;;  %v948_v42 = vshrl.u32 %v744_v21, 16  ;;  %v1172_v59 = vld [vmem:[#allocation2 + $0xc] sm:$0x1]  ;;  %v1720_v23 = vld [vmem:[#allocation2 + $0x8] sm:$0xf] }
  0xcb   :  { %v1005_v32 = vunpack.c.l.b16 %v946_v25  ;;  %v951_v37 = vshll.u32 %v744_v21, 16  ;;  %v962_v38 = vshrl.u32 %v746_v31, 16  ;;  %v856_v39 = vor.u32 %v855_v34, %v852_v29  ;;  %v1721_v22 = vld [vmem:[#allocation2 + $0xc] sm:$0x1]  ;;  %v7973_v62 = vld [vmem:[#allocation7 + $0xc0] sm:$0xff]  ;;  %2400 = vmatpush.bf16.msrb.mxu1 %v7991_v60  ;;  %v8012_v2 = vld [vmem:[#allocation7 + $0x1b8] sm:$0xff] }
  0xcc   :  { %674 = vmatmul.bf16.gmra.mxu0 %v7084_v3  ;;  %v843_v30 = vrot.slane %v842_v33, 4  ;;  %v861_v41 = vrot.slane %v859_v8, 5  ;;  %v957_v45 = vshll.u32 %v745_v44, 16  ;;  %v950_v26 = vrot.slane %v948_v42, 4  ;;  %v7990_v17 = vld [vmem:[#allocation7 + $0x148] sm:$0xff]  ;;  %1630 = vmatpush.bf16.msrb.mxu3 %v7973_v62  ;;  %v8020_v11 = vld [vmem:[#allocation7 + $0x1f8] sm:$0xff] }
  0xcd   :  { %694 = vmatmul.bf16.gmra.mxu2 %v7100_v18  ;;  %1090 = vmatmul.bf16.gmra.mxu1 %v1010_v46  ;;  %v1014_v49 = vpack.c.b16 %v1005_v32, %v1004_v27  ;;  %v953_v50 = vrot.slane %v951_v37, 5  ;;  %v857_v54 = vrot.slane %v856_v39, 4  ;;  %v964_v55 = vrot.slane %v962_v38, 4  ;;  %v1722_v43 = vld [vmem:[#allocation2 + $0x10] sm:$0xf]  ;;  %v8028_v20 = vld [vmem:[#allocation7 + $0x238] sm:$0xff] }
  0xce   :  { %v848_v53 = vsel %vm8497_vm8, %v843_v30, %v847_v28  ;;  %v965_v58 = vshll.u32 %v746_v31, 16  ;;  %v971_v13 = vshll.u32 %v747_v36, 16  ;;  %v959_v7 = vrot.slane %v957_v45, 5  ;;  %v1723_v19 = vld [vmem:[#allocation2 + $0x14] sm:$0x1]  ;;  %2622 = vmatpush.bf16.msra.mxu2 %v8012_v2  ;;  %v7989_v31 = vld [vmem:[#allocation7 + $0x140] sm:$0xff]  ;;  %3394 = vmatpush.bf16.msra.mxu0 %v8028_v20 }
  0xcf   :  { %v954_v61 = vor.u32 %v953_v50, %v950_v26  ;;  %v7165_v3 = vrot.slane %v1169_v48, 9  ;;  %v862_v63 = vsel %vm8497_vm8, %v857_v54, %v861_v41  ;;  %v8636_v1 = vunpack.c.l.b16 %v848_v53  ;;  %v8011_v27 = vld [vmem:[#allocation7 + $0x1b0] sm:$0xff]  ;;  %2401 = vmatpush.bf16.msrb.mxu1 %v7990_v17  ;;  %v2170_v8 = vld [vmem:[#allocation2 + $0x8] sm:$0xe]  ;;  %v2171_v42 = vld [vmem:[#allocation2 + $0xc] sm:$0x1] }
  0xd0   :  { %v967_v56 = vrot.slane %v965_v58, 5  ;;  %v1238_v0 = vrot.slane %v1170_v51, 5  ;;  %v7166_v18 = vrot.slane %v1171_v52, 9  ;;  %v9851_v5 = vmov 0  ;;  %3072 = vmatpush.bf16.msra.mxu3 %v8020_v11  ;;  %v2172_v37 = vld [vmem:[#allocation2 + $0x10] sm:$0xe] }
  0xd1   :  { %v9852_v5 = vsel %vm8640_vm11, 4294967295, %v9851_v5  ;;  %v1242_v6 = vrot.slane %v1172_v59, 5  ;;  %v1753_v57 = vshrl.u32 %v1720_v23, 16  ;;  %v1756_v10 = vshll.u32 %v1720_v23, 16  ;;  %v2173_v45 = vld [vmem:[#allocation2 + $0x14] sm:$0x1] }
  0xd2   :  { %1110 = vmatmul.bf16.gmra.mxu3 %v1014_v49  ;;  %v968_v4 = vor.u32 %v967_v56, %v964_v55  ;;  %9853 = vst [vmem:[#allocation15_spill] sm:$0xff] %v9852_v5  ;;  %v955_v14 = vrot.slane %v954_v61, 4  ;;  %v973_v15 = vrot.slane %v971_v13, 5  ;;  %v1239_v16 = vsel %vm8640_vm11, %v7165_v3, %v1238_v0  ;;  %2623 = vmatpush.bf16.msra.mxu2 %v8011_v27  ;;  %v1173_v48 = vld [vmem:[#allocation2 + $0x10] sm:$0xe] }
  0xd3   :  { %v1762_v46 = vshll.u32 %v1721_v22, 16  ;;  %v999_v24 = vunpack.c.l.b16 %v862_v63  ;;  %v1243_v21 = vsel %vm8640_vm11, %v7166_v18, %v1242_v6  ;;  %v1317_v25 = vunpack.c.l.b16 %v1239_v16  ;;  %2402 = vmatpush.bf16.msrb.mxu1 %v7989_v31  ;;  %v1174_v26 = vld [vmem:[#allocation2 + $0x14] sm:$0x1]  ;;  %v1175_v50 = vld [vmem:[#allocation2 + $0x18] sm:$0xe] }
  0xd4   :  { %v969_v9 = vrot.slane %v968_v4, 4  ;;  %v1318_v28 = vunpack.c.l.b16 %v1243_v21  ;;  %v1755_v29 = vrot.slane %v1753_v57, 4  ;;  %v1758_v44 = vrot.slane %v1756_v10, 5  ;;  %v1176_v55 = vld [vmem:[#allocation2 + $0x1c] sm:$0x1] }
  0xd5   :  { %v1767_v32 = vshrl.u32 %v1722_v43, 16  ;;  %v1770_v33 = vshll.u32 %v1722_v43, 16  ;;  %v1776_v34 = vshll.u32 %v1723_v19, 16  ;;  %v960_v12 = vsel %vm8497_vm8, %v955_v14, %v959_v7  ;;  %v1724_v58 = vld [vmem:[#allocation2 + $0x18] sm:$0xf]  ;;  %v8019_v19 = vld [vmem:[#allocation7 + $0x1f0] sm:$0xff] }
  0xd6   :  { %v974_v35 = vsel %vm8497_vm8, %v969_v9, %v973_v15  ;;  %v1759_v40 = vor.u32 %v1758_v44, %v1755_v29  ;;  %v1764_v36 = vrot.slane %v1762_v46, 5  ;;  %v1011_v38 = vpack.c.b16 %v999_v24, %v8636_v1  ;;  %v1726_v1 = vld [vmem:[#allocation2 + $0x20] sm:$0xf]  ;;  %v1725_v2 = vld [vmem:[#allocation2 + $0x1c] sm:$0x1]  ;;  %3073 = vmatpush.bf16.msra.mxu3 %v8019_v19 }
  0xd7   :  { %v1333_v30 = vpack.c.b16 %v1318_v28, %v1317_v25  ;;  %v1769_v39 = vrot.slane %v1767_v32, 4  ;;  %v1772_v41 = vrot.slane %v1770_v33, 5  ;;  %v1006_v51 = vunpack.c.l.b16 %v960_v12  ;;  %v1727_v57 = vld [vmem:[#allocation2 + $0x24] sm:$0x1]  ;;  %v8027_v32 = vld [vmem:[#allocation7 + $0x230] sm:$0xff]  ;;  %v8010_v33 = vld [vmem:[#allocation7 + $0x1a8] sm:$0xff] }
  0xd8   :  { %v1760_v49 = vrot.slane %v1759_v40, 4  ;;  %v1007_v52 = vunpack.c.l.b16 %v974_v35  ;;  %v1778_v54 = vrot.slane %v1776_v34, 5  ;;  %v7309_v60 = vrot.slane %v2170_v8, 9  ;;  %v7215_v40 = vld [vmem:[#allocation2 + $0x8] sm:$0xf]  ;;  %3395 = vmatpush.bf16.msra.mxu0 %v8027_v32  ;;  %2624 = vmatpush.bf16.msra.mxu2 %v8010_v33 }
  0xd9   :  { %v1773_v53 = vor.u32 %v1772_v41, %v1769_v39  ;;  %v2236_v61 = vrot.slane %v2171_v42, 5  ;;  %v7310_v13 = vrot.slane %v2172_v37, 9  ;;  %v2240_v7 = vrot.slane %v2173_v45, 5  ;;  %v2175_v39 = vld [vmem:[#allocation2 + $0x1c] sm:$0x1] }
  0xda   :  { %v1765_v59 = vsel %vm8497_vm8, %v1760_v49, %v1764_v36  ;;  %v7167_v56 = vrot.slane %v1173_v48, 9  ;;  %v1246_v3 = vrot.slane %v1174_v26, 5  ;;  %v7168_v62 = vrot.slane %v1175_v50, 9  ;;  %v7965_v36 = vld [vmem:[#allocation2 + $0xc] sm:$0xf0] }
  0xdb   :  { %v1774_v23 = vrot.slane %v1773_v53, 4  ;;  %v1993_v22 = vunpack.c.l.b16 %v1765_v59  ;;  %v1250_v63 = vrot.slane %v1176_v55, 5  ;;  %v1781_v0 = vshrl.u32 %v1724_v58, 16  ;;  %v1730_v41 = vld [vmem:[#allocation2 + $0x30] sm:$0xf] }
  0xdc   :  { %v1015_v18 = vpack.c.b16 %v1007_v52, %v1006_v51  ;;  %v1784_v4 = vshll.u32 %v1724_v58, 16  ;;  %v2237_v43 = vsel %vm8640_vm11, %v7309_v60, %v2236_v61  ;;  %v2241_v11 = vsel %vm8640_vm11, %v7310_v13, %v2240_v7  ;;  %v2176_v48 = vld [vmem:[#allocation2 + $0x20] sm:$0xe]  ;;  %v2177_v49 = vld [vmem:[#allocation2 + $0x24] sm:$0x1] }
  0xdd   :  { %1405 = vmatmul.bf16.vlgmr.msrb.gmra.mxu2 %v1333_v30  ;;  %1095 = vmatmul.bf16.gmra.mxu1 %v1011_v38  ;;  %v1779_v17 = vsel %vm8497_vm8, %v1774_v23, %v1778_v54  ;;  %v1783_v10 = vrot.slane %v1781_v0, 4  ;;  %v1795_v15 = vshrl.u32 %v1726_v1, 16  ;;  %v1798_v16 = vshll.u32 %v1726_v1, 16  ;;  %v1728_v38 = vld [vmem:[#allocation2 + $0x28] sm:$0xf] }
  0xde   :  { %v1994_v6 = vunpack.c.l.b16 %v1779_v17  ;;  %v1786_v14 = vrot.slane %v1784_v4, 5  ;;  %v1247_v20 = vsel %vm8640_vm11, %v7167_v56, %v1246_v3  ;;  %v1251_v24 = vsel %vm8640_vm11, %v7168_v62, %v1250_v63  ;;  %v2174_v30 = vld [vmem:[#allocation2 + $0x18] sm:$0xe]  ;;  %v1177_v26 = vld [vmem:[#allocation2 + $0x20] sm:$0xe] }
  0xdf   :  { %v1790_v9 = vshll.u32 %v1725_v2, 16  ;;  %v1797_v25 = vrot.slane %v1795_v15, 4  ;;  %v1800_v27 = vrot.slane %v1798_v16, 5  ;;  %v1804_v28 = vshll.u32 %v1727_v57, 16  ;;  %v1178_v52 = vld [vmem:[#allocation2 + $0x24] sm:$0x1] }
  0xe0   :  { %v2009_v46 = vpack.c.b16 %v1994_v6, %v1993_v22  ;;  %v1787_v21 = vor.u32 %v1786_v14, %v1783_v10  ;;  %v1319_v29 = vunpack.c.l.b16 %v1247_v20  ;;  %v1320_v44 = vunpack.c.l.b16 %v1251_v24  ;;  %v1179_v53 = vld [vmem:[#allocation2 + $0x28] sm:$0xe]  ;;  %v1180_v58 = vld [vmem:[#allocation2 + $0x2c] sm:$0x1]  ;;  %v1731_v57 = vld [vmem:[#allocation2 + $0x34] sm:$0x1] }
  0xe1   :  { %v1801_v31 = vor.u32 %v1800_v27, %v1797_v25  ;;  %v2315_v34 = vunpack.c.l.b16 %v2237_v43  ;;  %v2316_v8 = vunpack.c.l.b16 %v2241_v11  ;;  %v1792_v35 = vrot.slane %v1790_v9, 5  ;;  %v1729_v43 = vld [vmem:[#allocation2 + $0x2c] sm:$0x1]  ;;  %v8009_v25 = vld [vmem:[#allocation7 + $0x1a0] sm:$0xff] }
  0xe2   :  { %1115 = vmatmul.bf16.gmra.mxu3 %v1015_v18  ;;  %2081 = vmatmul.bf16.vlgmr.msrb.gmra.mxu0 %v2009_v46  ;;  %v1788_v12 = vrot.slane %v1787_v21, 4  ;;  %v1806_v37 = vrot.slane %v1804_v28, 5  ;;  %v1334_v45 = vpack.c.b16 %v1320_v44, %v1319_v29  ;;  %v1809_v54 = vshrl.u32 %v1728_v38, 16  ;;  %v8018_v11 = vld [vmem:[#allocation7 + $0x1e8] sm:$0xff] }
  0xe3   :  { %v1802_v42 = vrot.slane %v1801_v31, 4  ;;  %v2331_v50 = vpack.c.b16 %v2316_v8, %v2315_v34  ;;  %v1812_v59 = vshll.u32 %v1728_v38, 16  ;;  %v1823_v60 = vshrl.u32 %v1730_v41, 16  ;;  %3074 = vmatpush.bf16.msra.mxu3 %v8018_v11  ;;  %v8026_v21 = vld [vmem:[#allocation7 + $0x228] sm:$0xff]  ;;  %2625 = vmatpush.bf16.msra.mxu2 %v8009_v25  ;;  %v7219_v31 = vld [vmem:[#allocation2 + $0x18] sm:$0xf] }
  0xe4   :  { %v1793_v51 = vsel %vm8497_vm8, %v1788_v12, %v1792_v35  ;;  %v1826_v61 = vshll.u32 %v1730_v41, 16  ;;  %v7216_v13 = vor.u32 %v7965_v36, %v7215_v40  ;;  %v7311_v23 = vrot.slane %v2174_v30, 9  ;;  %3396 = vmatpush.bf16.msra.mxu0 %v8026_v21  ;;  %v1732_v12 = vld [vmem:[#allocation2 + $0x38] sm:$0xf]  ;;  %v7966_v35 = vld [vmem:[#allocation2 + $0x1c] sm:$0xf0] }
  0xe5   :  { %v1807_v55 = vsel %vm8497_vm8, %v1802_v42, %v1806_v37  ;;  %v2244_v7 = vrot.slane %v2175_v39, 5  ;;  %v7312_v56 = vrot.slane %v2176_v48, 9  ;;  %v2248_v3 = vrot.slane %v2177_v49, 5  ;;  %v2178_v40 = vld [vmem:[#allocation2 + $0x28] sm:$0xe] }
  0xe6   :  { %v7169_v22 = vrot.slane %v1177_v26, 9  ;;  %v1254_v62 = vrot.slane %v1178_v52, 5  ;;  %v1995_v63 = vunpack.c.l.b16 %v1793_v51  ;;  %v1996_v1 = vunpack.c.l.b16 %v1807_v55  ;;  %v1734_v36 = vld [vmem:[#allocation2 + $0x40] sm:$0xf]  ;;  %v2179_v37 = vld [vmem:[#allocation2 + $0x2c] sm:$0x1] }
  0xe7   :  { %v7170_v0 = vrot.slane %v1179_v53, 9  ;;  %v1258_v18 = vrot.slane %v1180_v58, 5  ;;  %v1811_v17 = vrot.slane %v1809_v54, 4  ;;  %v1814_v2 = vrot.slane %v1812_v59, 5  ;;  %v2180_v38 = vld [vmem:[#allocation2 + $0x30] sm:$0xe] }
  0xe8   :  { %v1825_v4 = vrot.slane %v1823_v60, 4  ;;  %v1828_v6 = vrot.slane %v1826_v61, 5  ;;  %v2245_v10 = vsel %vm8640_vm11, %v7311_v23, %v2244_v7  ;;  %v2010_v14 = vpack.c.b16 %v1996_v1, %v1995_v63  ;;  %v2181_v30 = vld [vmem:[#allocation2 + $0x34] sm:$0x1]  ;;  %v1181_v41 = vld [vmem:[#allocation2 + $0x30] sm:$0xe] }
  0xe9   :  { %v2249_v15 = vsel %vm8640_vm11, %v7312_v56, %v2248_v3  ;;  %v1255_v16 = vsel %vm8640_vm11, %v7169_v22, %v1254_v62  ;;  %v1259_v19 = vsel %vm8640_vm11, %v7170_v0, %v1258_v18  ;;  %v1815_v46 = vor.u32 %v1814_v2, %v1811_v17  ;;  %v1183_v51 = vld [vmem:[#allocation2 + $0x38] sm:$0xe]  ;;  %v1184_v52 = vld [vmem:[#allocation2 + $0x3c] sm:$0x1]  ;;  %v1735_v17 = vld [vmem:[#allocation2 + $0x44] sm:$0x1] }
  0xea   :  { %v1818_v20 = vshll.u32 %v1729_v43, 16  ;;  %v1829_v24 = vor.u32 %v1828_v6, %v1825_v4  ;;  %v1832_v9 = vshll.u32 %v1731_v57, 16  ;;  %v1321_v27 = vunpack.c.l.b16 %v1255_v16  ;;  %v1733_v18 = vld [vmem:[#allocation2 + $0x3c] sm:$0x1]  ;;  %v8017_v4 = vld [vmem:[#allocation7 + $0x1e0] sm:$0xff] }
  0xeb   :  { %v1322_v28 = vunpack.c.l.b16 %v1259_v19  ;;  %v2317_v29 = vunpack.c.l.b16 %v2245_v10  ;;  %v2318_v44 = vunpack.c.l.b16 %v2249_v15  ;;  %v1816_v32 = vrot.slane %v1815_v46, 4  ;;  %3075 = vmatpush.bf16.msra.mxu3 %v8017_v4  ;;  %v8025_v19 = vld [vmem:[#allocation7 + $0x220] sm:$0xff] }
  0xec   :  { %v1820_v33 = vrot.slane %v1818_v20, 5  ;;  %v1830_v34 = vrot.slane %v1829_v24, 4  ;;  %v1834_v8 = vrot.slane %v1832_v9, 5  ;;  %v1837_v48 = vshrl.u32 %v1732_v12, 16  ;;  %3397 = vmatpush.bf16.msra.mxu0 %v8025_v19 }
  0xed   :  { %1410 = vmatmul.bf16.gmra.mxu2 %v1334_v45  ;;  %2403 = vmatmul.bf16.vlgmr.msrb.gmra.mxu1 %v2331_v50  ;;  %v1335_v42 = vpack.c.b16 %v1322_v28, %v1321_v27  ;;  %v2332_v39 = vpack.c.b16 %v2318_v44, %v2317_v29  ;;  %v1182_v45 = vld [vmem:[#allocation2 + $0x34] sm:$0x1]  ;;  %v1840_v49 = vshll.u32 %v1732_v12, 16  ;;  %v1851_v53 = vshrl.u32 %v1734_v36, 16  ;;  %v8008_v29 = vld [vmem:[#allocation7 + $0x198] sm:$0xff] }
  0xee   :  { %v1821_v26 = vsel %vm8497_vm8, %v1816_v32, %v1820_v33  ;;  %v1835_v50 = vsel %vm8497_vm8, %v1830_v34, %v1834_v8  ;;  %v1854_v54 = vshll.u32 %v1734_v36, 16  ;;  %v7220_v55 = vor.u32 %v7966_v35, %v7219_v31  ;;  %v1738_v44 = vld [vmem:[#allocation2 + $0x60] sm:$0xf]  ;;  %v7223_v31 = vld [vmem:[#allocation2 + $0x28] sm:$0xf]  ;;  %2626 = vmatpush.bf16.msra.mxu2 %v8008_v29 }
  0xef   :  { %v7313_v58 = vrot.slane %v2178_v40, 9  ;;  %v2252_v59 = vrot.slane %v2179_v37, 5  ;;  %v7314_v60 = vrot.slane %v2180_v38, 9  ;;  %v2256_v61 = vrot.slane %v2181_v30, 5  ;;  %v1185_v33 = vld [vmem:[#allocation2 + $0x50] sm:$0xe] }
  0xf0   :  { %v1262_v23 = vrot.slane %v1182_v45, 5  ;;  %v1997_v7 = vunpack.c.l.b16 %v1821_v26  ;;  %v1998_v56 = vunpack.c.l.b16 %v1835_v50  ;;  %v7172_v3 = vrot.slane %v1183_v51, 9  ;;  %v1736_v34 = vld [vmem:[#allocation2 + $0x58] sm:$0xf]  ;;  %v1186_v12 = vld [vmem:[#allocation2 + $0x54] sm:$0x1] }
  0xf1   :  { %v1266_v22 = vrot.slane %v1184_v52, 5  ;;  %v1839_v62 = vrot.slane %v1837_v48, 4  ;;  %v1842_v63 = vrot.slane %v1840_v49, 5  ;;  %v1853_v1 = vrot.slane %v1851_v53, 4  ;;  %v1187_v35 = vld [vmem:[#allocation2 + $0x58] sm:$0xe] }
  0xf2   :  { %1631 = vmatmul.bf16.vlgmr.msrb.gmra.mxu3 %v7216_v13  ;;  %2086 = vmatmul.bf16.gmra.mxu0 %v2010_v14  ;;  %v7171_v13 = vrot.slane %v1181_v41, 9  ;;  %v1856_v0 = vrot.slane %v1854_v54, 5  ;;  %v2253_v2 = vsel %vm8640_vm11, %v7313_v58, %v2252_v59  ;;  %v2011_v6 = vpack.c.b16 %v1998_v56, %v1997_v7  ;;  %v1188_v40 = vld [vmem:[#allocation2 + $0x5c] sm:$0x1]  ;;  %v7967_v36 = vld [vmem:[#allocation2 + $0x2c] sm:$0xf0] }
  0xf3   :  { %v2257_v43 = vsel %vm8640_vm11, %v7314_v60, %v2256_v61  ;;  %v1267_v10 = vsel %vm8640_vm11, %v7172_v3, %v1266_v22  ;;  %v1843_v11 = vor.u32 %v1842_v63, %v1839_v62  ;;  %v1846_v14 = vshll.u32 %v1733_v18, 16  ;;  %v2182_v38 = vld [vmem:[#allocation2 + $0x38] sm:$0xe]  ;;  %v2183_v41 = vld [vmem:[#allocation2 + $0x3c] sm:$0x1] }
  0xf4   :  { %v1263_v57 = vsel %vm8640_vm11, %v7171_v13, %v1262_v23  ;;  %v1857_v15 = vor.u32 %v1856_v0, %v1853_v1  ;;  %v1860_v16 = vshll.u32 %v1735_v17, 16  ;;  %v1324_v20 = vunpack.c.l.b16 %v1267_v10  ;;  %v2184_v45 = vld [vmem:[#allocation2 + $0x40] sm:$0xe]  ;;  %v2185_v26 = vld [vmem:[#allocation2 + $0x44] sm:$0x1]  ;;  %v8016_v1 = vld [vmem:[#allocation7 + $0x1d8] sm:$0xff] }
  0xf5   :  { %v1323_v46 = vunpack.c.l.b16 %v1263_v57  ;;  %v2319_v24 = vunpack.c.l.b16 %v2253_v2  ;;  %v2320_v9 = vunpack.c.l.b16 %v2257_v43  ;;  %v1844_v21 = vrot.slane %v1843_v11, 4  ;;  %v1739_v56 = vld [vmem:[#allocation2 + $0x64] sm:$0x1]  ;;  %v1737_v17 = vld [vmem:[#allocation2 + $0x5c] sm:$0x1]  ;;  %3076 = vmatpush.bf16.msra.mxu3 %v8016_v1 }
  0xf6   :  { %v1848_v25 = vrot.slane %v1846_v14, 5  ;;  %v1858_v27 = vrot.slane %v1857_v15, 4  ;;  %v1862_v28 = vrot.slane %v1860_v16, 5  ;;  %v1879_v30 = vshrl.u32 %v1738_v44, 16  ;;  %v8024_v11 = vld [vmem:[#allocation7 + $0x218] sm:$0xff] }
  0xf7   :  { %v1336_v32 = vpack.c.b16 %v1324_v20, %v1323_v46  ;;  %v2333_v8 = vpack.c.b16 %v2320_v9, %v2319_v24  ;;  %v1865_v48 = vshrl.u32 %v1736_v34, 16  ;;  %v1868_v49 = vshll.u32 %v1736_v34, 16  ;;  %v1740_v15 = vld [vmem:[#allocation2 + $0x68] sm:$0xf]  ;;  %v1742_v16 = vld [vmem:[#allocation2 + $0x70] sm:$0xf]  ;;  %3398 = vmatpush.bf16.msra.mxu0 %v8024_v11 }
  0xf8   :  { %v1863_v37 = vsel %vm8497_vm8, %v1858_v27, %v1862_v28  ;;  %v7173_v50 = vrot.slane %v1185_v33, 9  ;;  %v1270_v51 = vrot.slane %v1186_v12, 5  ;;  %v7174_v52 = vrot.slane %v1187_v35, 9  ;;  %v1189_v9 = vld [vmem:[#allocation2 + $0x60] sm:$0xe] }
  0xf9   :  { %v1274_v53 = vrot.slane %v1188_v40, 5  ;;  %v7224_v54 = vor.u32 %v7967_v36, %v7223_v31  ;;  %v2000_v58 = vunpack.c.l.b16 %v1863_v37  ;;  %v7315_v59 = vrot.slane %v2182_v38, 9  ;;  %v1190_v28 = vld [vmem:[#allocation2 + $0x64] sm:$0x1]  ;;  %v1191_v29 = vld [vmem:[#allocation2 + $0x68] sm:$0xe] }
  0xfa   :  { %v2260_v60 = vrot.slane %v2183_v41, 5  ;;  %v1881_v61 = vrot.slane %v1879_v30, 4  ;;  %v7316_v23 = vrot.slane %v2184_v45, 9  ;;  %v2264_v7 = vrot.slane %v2185_v26, 5  ;;  %v7227_v12 = vld [vmem:[#allocation2 + $0x38] sm:$0xf] }
  0xfb   :  { %v1867_v3 = vrot.slane %v1865_v48, 4  ;;  %v1870_v22 = vrot.slane %v1868_v49, 5  ;;  %v1271_v62 = vsel %vm8640_vm11, %v7173_v50, %v1270_v51  ;;  %v1275_v63 = vsel %vm8640_vm11, %v7174_v52, %v1274_v53  ;;  %v7968_v35 = vld [vmem:[#allocation2 + $0x3c] sm:$0xf0]  ;;  %v8007_v37 = vld [vmem:[#allocation7 + $0x190] sm:$0xff] }
  0xfc   :  { %v2261_v18 = vsel %vm8640_vm11, %v7315_v59, %v2260_v60  ;;  %v1888_v4 = vshll.u32 %v1739_v56, 16  ;;  %v1325_v43 = vunpack.c.l.b16 %v1271_v62  ;;  %v1326_v57 = vunpack.c.l.b16 %v1275_v63  ;;  %v2188_v30 = vld [vmem:[#allocation2 + $0x60] sm:$0xe]  ;;  %v2189_v48 = vld [vmem:[#allocation2 + $0x64] sm:$0x1]  ;;  %2627 = vmatpush.bf16.msra.mxu2 %v8007_v37 }
  0xfd   :  { %1415 = vmatmul.bf16.gmra.mxu2 %v1335_v42  ;;  %2408 = vmatmul.bf16.gmra.mxu1 %v2332_v39  ;;  %v1849_v42 = vsel %vm8497_vm8, %v1844_v21, %v1848_v25  ;;  %v1882_v39 = vshll.u32 %v1738_v44, 16  ;;  %v1871_v10 = vor.u32 %v1870_v22, %v1867_v3  ;;  %v1874_v14 = vshll.u32 %v1737_v17, 16  ;;  %v1192_v44 = vld [vmem:[#allocation2 + $0x6c] sm:$0x1]  ;;  %v2186_v59 = vld [vmem:[#allocation2 + $0x58] sm:$0xe] }
  0xfe   :  { %v2321_v19 = vunpack.c.l.b16 %v2261_v18  ;;  %v1890_v24 = vrot.slane %v1888_v4, 5  ;;  %v1337_v25 = vpack.c.b16 %v1326_v57, %v1325_v43  ;;  %v1893_v31 = vshrl.u32 %v1740_v15, 16  ;;  %v2187_v60 = vld [vmem:[#allocation2 + $0x5c] sm:$0x1] }
  0xff   :  { %v1884_v13 = vrot.slane %v1882_v39, 5  ;;  %v1872_v27 = vrot.slane %v1871_v10, 4  ;;  %v1907_v33 = vshrl.u32 %v1742_v16, 16  ;;  %v1910_v34 = vshll.u32 %v1742_v16, 16 }
 0x100   :  { %v1278_v39 = vrot.slane %v1190_v28, 5  ;;  %v7176_v41 = vrot.slane %v1191_v29, 9  ;;  %v1282_v45 = vrot.slane %v1192_v44, 5  ;;  %v1895_v49 = vrot.slane %v1893_v31, 4  ;;  %v2191_v29 = vld [vmem:[#allocation2 + $0x6c] sm:$0x1] }
 0x101   :  { %v1885_v2 = vor.u32 %v1884_v13, %v1881_v61  ;;  %v1909_v50 = vrot.slane %v1907_v33, 4  ;;  %v1912_v51 = vrot.slane %v1910_v34, 5  ;;  %v7318_v61 = vrot.slane %v2188_v30, 9  ;;  %v2192_v44 = vld [vmem:[#allocation2 + $0x70] sm:$0xe] }
 0x102   :  { %1636 = vmatmul.bf16.gmra.mxu3 %v7220_v55  ;;  %2091 = vmatmul.bf16.gmra.mxu0 %v2011_v6  ;;  %v1999_v55 = vunpack.c.l.b16 %v1849_v42  ;;  %v2265_v6 = vsel %vm8640_vm11, %v7316_v23, %v2264_v7  ;;  %v7175_v42 = vrot.slane %v1189_v9, 9  ;;  %v2272_v7 = vrot.slane %v2189_v48, 5  ;;  %v2190_v9 = vld [vmem:[#allocation2 + $0x68] sm:$0xe]  ;;  %v2193_v31 = vld [vmem:[#allocation2 + $0x74] sm:$0x1] }
 0x103   :  { %v2322_v46 = vunpack.c.l.b16 %v2265_v6  ;;  %v1886_v20 = vrot.slane %v1885_v2, 4  ;;  %v1283_v3 = vsel %vm8640_vm11, %v7176_v41, %v1282_v45  ;;  %v1913_v63 = vor.u32 %v1912_v51, %v1909_v50  ;;  %v7969_v45 = vld [vmem:[#allocation2 + $0x5c] sm:$0xf0]  ;;  %v7231_v51 = vld [vmem:[#allocation2 + $0x58] sm:$0xf] }
 0x104   :  { %v2012_v0 = vpack.c.b16 %v2000_v58, %v1999_v55  ;;  %v1743_v55 = vld [vmem:[#allocation2 + $0x74] sm:$0x1]  ;;  %v7228_v58 = vor.u32 %v7968_v35, %v7227_v12  ;;  %v1279_v56 = vsel %vm8640_vm11, %v7175_v42, %v1278_v39  ;;  %v7317_v17 = vrot.slane %v2186_v59, 9  ;;  %v1195_v35 = vld [vmem:[#allocation2 + $0x78] sm:$0xe]  ;;  %v8006_v59 = vld [vmem:[#allocation7 + $0x188] sm:$0xff] }
 0x105   :  { %v2334_v40 = vpack.c.b16 %v2322_v46, %v2321_v19  ;;  %v1891_v36 = vsel %vm8497_vm8, %v1886_v20, %v1890_v24  ;;  %v1916_v1 = vshll.u32 %v1743_v55, 16  ;;  %v2268_v2 = vrot.slane %v2187_v60, 5  ;;  %v1194_v12 = vld [vmem:[#allocation2 + $0x74] sm:$0x1]  ;;  %2628 = vmatpush.bf16.msra.mxu2 %v8006_v59 }
 0x106   :  { %v2002_v52 = vunpack.c.l.b16 %v1891_v36  ;;  %v2273_v4 = vsel %vm8640_vm11, %v7318_v61, %v2272_v7  ;;  %v1327_v6 = vunpack.c.l.b16 %v1279_v56  ;;  %v1328_v43 = vunpack.c.l.b16 %v1283_v3  ;;  %v1745_v61 = vld [vmem:[#allocation2 + $0x7c] sm:$0x1] }
 0x107   :  { %v1914_v11 = vrot.slane %v1913_v63, 4  ;;  %v2269_v46 = vsel %vm8640_vm11, %v7317_v17, %v2268_v2  ;;  %v2324_v24 = vunpack.c.l.b16 %v2273_v4  ;;  %v7319_v39 = vrot.slane %v2190_v9, 9 }
 0x108   :  { %v1338_v33 = vpack.c.b16 %v1328_v43, %v1327_v6  ;;  %v2276_v41 = vrot.slane %v2191_v29, 5  ;;  %v7320_v48 = vrot.slane %v2192_v44, 9  ;;  %v1286_v50 = vrot.slane %v1194_v12, 5  ;;  %v1750_v12 = vld [vmem:[#allocation2 + $0x90] sm:$0xf] }
 0x109   :  { %v7178_v55 = vrot.slane %v1195_v35, 9  ;;  %v1930_v43 = vshll.u32 %v1745_v61, 16 }
 0x10b   :  { %v1932_v44 = vrot.slane %v1930_v43, 5 }
 0x10d   :  { %1420 = vmatmul.bf16.gmra.mxu2 %v1336_v32  ;;  %2413 = vmatmul.bf16.gmra.mxu1 %v2333_v8  ;;  %v1896_v32 = vshll.u32 %v1740_v15, 16  ;;  %v1876_v8 = vrot.slane %v1874_v14, 5  ;;  %v1918_v14 = vrot.slane %v1916_v1, 5  ;;  %v8023_v15 = vld [vmem:[#allocation7 + $0x210] sm:$0xff] }
 0x10e   :  { %3399 = vmatpush.bf16.msra.mxu0 %v8023_v15 }
 0x10f   :  { %v1877_v38 = vsel %vm8497_vm8, %v1872_v27, %v1876_v8  ;;  %v1898_v26 = vrot.slane %v1896_v32, 5  ;;  %v1746_v27 = vld [vmem:[#allocation2 + $0x80] sm:$0xf]  ;;  %v2323_v32 = vunpack.c.l.b16 %v2269_v46  ;;  %v1919_v8 = vsel %vm8497_vm8, %v1914_v11, %v1918_v14 }
 0x110   :  { %v2001_v13 = vunpack.c.l.b16 %v1877_v38  ;;  %v1935_v37 = vshrl.u32 %v1746_v27, 16  ;;  %v1938_v38 = vshll.u32 %v1746_v27, 16 }
 0x111   :  { %v1899_v22 = vor.u32 %v1898_v26, %v1895_v49  ;;  %v2335_v30 = vpack.c.b16 %v2324_v24, %v2323_v32  ;;  %v2280_v49 = vrot.slane %v2193_v31, 5 }
 0x112   :  { %1641 = vmatmul.bf16.gmra.mxu3 %v7224_v54  ;;  %2096 = vmatmul.bf16.gmra.mxu0 %v2012_v0  ;;  %v1741_v54 = vld [vmem:[#allocation2 + $0x6c] sm:$0x1]  ;;  %v8015_v0 = vld [vmem:[#allocation7 + $0x1d0] sm:$0xff]  ;;  %v2013_v18 = vpack.c.b16 %v2002_v52, %v2001_v13  ;;  %v1937_v56 = vrot.slane %v1935_v37, 4  ;;  %v1940_v3 = vrot.slane %v1938_v38, 5 }
 0x113   :  { %v1902_v62 = vshll.u32 %v1741_v54, 16  ;;  %3077 = vmatpush.bf16.msra.mxu3 %v8015_v0  ;;  %v1900_v57 = vrot.slane %v1899_v22, 4  ;;  %v2004_v54 = vunpack.c.l.b16 %v1919_v8  ;;  %v7232_v22 = vor.u32 %v7969_v45, %v7231_v51  ;;  %v2194_v8 = vld [vmem:[#allocation2 + $0x78] sm:$0xe]  ;;  %v2196_v37 = vld [vmem:[#allocation2 + $0x80] sm:$0xe] }
 0x114   :  { %v2277_v0 = vsel %vm8640_vm11, %v7319_v39, %v2276_v41  ;;  %v1941_v14 = vor.u32 %v1940_v3, %v1937_v56  ;;  %v2197_v38 = vld [vmem:[#allocation2 + $0x84] sm:$0x1]  ;;  %v7321_v59 = vrot.slane %v2194_v8, 9 }
 0x115   :  { %v1904_v10 = vrot.slane %v1902_v62, 5  ;;  %v1747_v62 = vld [vmem:[#allocation2 + $0x84] sm:$0x1] }
 0x116   :  { %v1944_v15 = vshll.u32 %v1747_v62, 16  ;;  %v1942_v31 = vrot.slane %v1941_v14, 4 }
 0x117   :  { %v1905_v34 = vsel %vm8497_vm8, %v1900_v57, %v1904_v10  ;;  %v8014_v57 = vld [vmem:[#allocation7 + $0x1c8] sm:$0xff] }
 0x118   :  { %v2003_v52 = vunpack.c.l.b16 %v1905_v34  ;;  %3078 = vmatpush.bf16.msra.mxu3 %v8014_v57  ;;  %v1946_v32 = vrot.slane %v1944_v15, 5  ;;  %v7970_v34 = vld [vmem:[#allocation2 + $0x6c] sm:$0xf0]  ;;  %v1749_v57 = vld [vmem:[#allocation2 + $0x8c] sm:$0x1]  ;;  %v8013_v15 = vld [vmem:[#allocation7 + $0x1c0] sm:$0xff] }
 0x119   :  { %v8701_v21 = vpop.f32.mrf.mxu0 }
 0x11a   :  { %v2014_v2 = vpack.c.b16 %v2004_v54, %v2003_v52  ;;  %v1200_v52 = vld [vmem:[#allocation2 + $0x8c] sm:$0x1] }
 0x11c   :  { %3079 = vmatpush.bf16.msra.mxu3 %v8013_v15  ;;  %v3172_v15 = vld [vmem:[#allocation2 + $0x1c] sm:$0x1] }
 0x11d   :  { %1425 = vmatmul.bf16.gmra.mxu2 %v1337_v25  ;;  %2418 = vmatmul.bf16.gmra.mxu1 %v2334_v40  ;;  %v1744_v25 = vld [vmem:[#allocation2 + $0x78] sm:$0xf]  ;;  %v1196_v40 = vld [vmem:[#allocation2 + $0x7c] sm:$0x1] }
 0x11e   :  { %v1921_v36 = vshrl.u32 %v1744_v25, 16  ;;  %v1924_v42 = vshll.u32 %v1744_v25, 16  ;;  %v8022_v25 = vld [vmem:[#allocation7 + $0x208] sm:$0xff] }
 0x11f   :  { %3400 = vmatpush.bf16.msra.mxu0 %v8022_v25 }
 0x120   :  { %v8707_v53 = vpop.f32.mrf.mxu2  ;;  %v1923_v13 = vrot.slane %v1921_v36, 4  ;;  %v1926_v7 = vrot.slane %v1924_v42, 5 }
 0x121   :  { %v8709_v23 = vpop.f32.mrf.mxu0 }
 0x122   :  { %1646 = vmatmul.bf16.gmra.mxu3 %v7228_v58  ;;  %2101 = vmatmul.bf16.gmra.mxu0 %v2013_v18  ;;  %v1290_v58 = vrot.slane %v1196_v40, 5  ;;  %v2281_v18 = vsel %vm8640_vm11, %v7320_v48, %v2280_v49  ;;  %v1927_v11 = vor.u32 %v1926_v7, %v1923_v13  ;;  %v1947_v48 = vsel %vm8497_vm8, %v1942_v31, %v1946_v32  ;;  %v1198_v49 = vld [vmem:[#allocation2 + $0x84] sm:$0x1] }
 0x123   :  { %v2326_v46 = vunpack.c.l.b16 %v2281_v18  ;;  %v7322_v13 = vrot.slane %v2196_v37, 9  ;;  %v2288_v7 = vrot.slane %v2197_v38, 5  ;;  %v1294_v3 = vrot.slane %v1198_v49, 5 }
 0x124   :  { %v1291_v6 = vsel %vm8640_vm11, %v7178_v55, %v1290_v58  ;;  %v1928_v29 = vrot.slane %v1927_v11, 4  ;;  %v1963_v55 = vshrl.u32 %v1750_v12, 16  ;;  %v1966_v58 = vshll.u32 %v1750_v12, 16  ;;  %v1751_v11 = vld [vmem:[#allocation2 + $0x94] sm:$0x1] }
 0x125   :  { %v1330_v9 = vunpack.c.l.b16 %v1291_v6  ;;  %v1958_v32 = vshll.u32 %v1749_v57, 16 }
 0x126   :  { %v1933_v45 = vsel %vm8497_vm8, %v1928_v29, %v1932_v44  ;;  %v1965_v6 = vrot.slane %v1963_v55, 4  ;;  %v1968_v43 = vrot.slane %v1966_v58, 5  ;;  %v7971_v55 = vld [vmem:[#allocation2 + $0x7c] sm:$0xf0]  ;;  %v2198_v58 = vld [vmem:[#allocation2 + $0x88] sm:$0xe] }
 0x127   :  { %v1081_v16 = vpop.f32.mrf.mxu1  ;;  %v2005_v62 = vunpack.c.l.b16 %v1933_v45  ;;  %v1960_v38 = vrot.slane %v1958_v32, 5 }
 0x128   :  { %v8717_v19 = vpop.f32.mrf.mxu2  ;;  %v8722_v20 = vadd.f32 %v1081_v16, %v8701_v21  ;;  %v1193_v21 = vld [vmem:[#allocation2 + $0x70] sm:$0xe]  ;;  %v2325_v16 = vunpack.c.l.b16 %v2277_v0  ;;  %v2006_v0 = vunpack.c.l.b16 %v1947_v48 }
 0x129   :  { %v8724_v28 = vpop.f32.mrf.mxu0  ;;  %v7177_v26 = vrot.slane %v1193_v21, 9  ;;  %v2195_v21 = vld [vmem:[#allocation2 + $0x7c] sm:$0x1] }
 0x12a   :  { %v2336_v40 = vpack.c.b16 %v2326_v46, %v2325_v16  ;;  %v2284_v61 = vrot.slane %v2195_v21, 5  ;;  %v8021_v16 = vld [vmem:[#allocation7 + $0x200] sm:$0xff] }
 0x12b   :  { %v1287_v4 = vsel %vm8640_vm11, %v7177_v26, %v1286_v50  ;;  %v1199_v26 = vld [vmem:[#allocation2 + $0x88] sm:$0xe]  ;;  %3401 = vmatpush.bf16.msra.mxu0 %v8021_v16 }
 0x12c   :  { %v1329_v24 = vunpack.c.l.b16 %v1287_v4  ;;  %v2285_v14 = vsel %vm8640_vm11, %v7321_v59, %v2284_v61  ;;  %v2199_v61 = vld [vmem:[#allocation2 + $0x8c] sm:$0x1] }
 0x12d   :  { %1430 = vmatmul.bf16.gmra.mxu2 %v1338_v33  ;;  %2423 = vmatmul.bf16.gmra.mxu1 %v2335_v30  ;;  %v7235_v33 = vld [vmem:[#allocation2 + $0x68] sm:$0xf]  ;;  %v1197_v30 = vld [vmem:[#allocation2 + $0x80] sm:$0xe] }
 0x12e   :  { %v1339_v42 = vpack.c.b16 %v1330_v9, %v1329_v24  ;;  %v7179_v56 = vrot.slane %v1197_v30, 9  ;;  %v2015_v24 = vpack.c.b16 %v2006_v0, %v2005_v62  ;;  %v2289_v9 = vsel %vm8640_vm11, %v7322_v13, %v2288_v7  ;;  %v2201_v13 = vld [vmem:[#allocation2 + $0x94] sm:$0x1] }
 0x12f   :  { %v8732_v63 = vpop.f32.mrf.mxu1  ;;  %v7323_v62 = vrot.slane %v2198_v58, 9  ;;  %v2292_v0 = vrot.slane %v2199_v61, 5 }
 0x130   :  { %v8730_v60 = vpop.f32.mrf.mxu2  ;;  %v1295_v25 = vsel %vm8640_vm11, %v7179_v56, %v1294_v3 }
 0x131   :  { %v8734_v1 = vpop.f32.mrf.mxu0  ;;  %v1331_v21 = vunpack.c.l.b16 %v1295_v25  ;;  %v2293_v57 = vsel %vm8640_vm11, %v7323_v62, %v2292_v0 }
 0x132   :  { %1651 = vmatmul.bf16.gmra.mxu3 %v7232_v22  ;;  %2106 = vmatmul.bf16.gmra.mxu0 %v2014_v2  ;;  %v8005_v22 = vld [vmem:[#allocation7 + $0x180] sm:$0xff] }
 0x133   :  { %v1101_v17 = vpop.f32.mrf.mxu3  ;;  %2629 = vmatpush.bf16.msra.mxu2 %v8005_v22 }
 0x134   :  { %v8745_v10 = vadd.f32 %v1101_v17, %v8707_v53  ;;  %v1748_v53 = vld [vmem:[#allocation2 + $0x88] sm:$0xf]  ;;  %v1298_v17 = vrot.slane %v1200_v52, 5 }
 0x135   :  { %v1949_v50 = vshrl.u32 %v1748_v53, 16  ;;  %v1952_v54 = vshll.u32 %v1748_v53, 16 }
 0x137   :  { %v1951_v2 = vrot.slane %v1949_v50, 4  ;;  %v1954_v4 = vrot.slane %v1952_v54, 5  ;;  %v7239_v54 = vld [vmem:[#allocation2 + $0x78] sm:$0xf] }
 0x138   :  { %v8747_v27 = vpop.f32.mrf.mxu2  ;;  %v7240_v22 = vor.u32 %v7971_v55, %v7239_v54  ;;  %v7972_v54 = vld [vmem:[#allocation2 + $0x8c] sm:$0xf0] }
 0x139   :  { %v8749_v36 = vpop.f32.mrf.mxu0  ;;  %v1955_v31 = vor.u32 %v1954_v4, %v1951_v2 }
 0x13a   :  { %v1086_v41 = vpop.f32.mrf.mxu1 }
 0x13b   :  { %v1103_v35 = vpop.f32.mrf.mxu3  ;;  %v8759_v51 = vadd.f32 %v1086_v41, %v8724_v28  ;;  %v7180_v28 = vrot.slane %v1199_v26, 9  ;;  %v1956_v37 = vrot.slane %v1955_v31, 4  ;;  %v7997_v31 = vld [vmem:[#allocation2 + $0x14] sm:$0xf0] }
 0x13c   :  { %v8752_v39 = vadd.f32 %v1103_v35, %v8717_v19  ;;  %v7236_v19 = vor.u32 %v7970_v34, %v7235_v33  ;;  %v1969_v33 = vor.u32 %v1968_v43, %v1965_v6  ;;  %v1972_v34 = vshll.u32 %v1751_v11, 16  ;;  %v3170_v6 = vld [vmem:[#allocation2 + $0x14] sm:$0x1] }
 0x13d   :  { %1435 = vmatmul.bf16.gmra.mxu2 %v1339_v42  ;;  %2428 = vmatmul.bf16.gmra.mxu1 %v2336_v40  ;;  %v1299_v29 = vsel %vm8640_vm11, %v7180_v28, %v1298_v17  ;;  %v2327_v40 = vunpack.c.l.b16 %v2285_v14  ;;  %v2328_v42 = vunpack.c.l.b16 %v2289_v9  ;;  %v2296_v17 = vrot.slane %v2201_v13, 5  ;;  %v3171_v14 = vld [vmem:[#allocation2 + $0x18] sm:$0xe] }
 0x13e   :  { %v1332_v12 = vunpack.c.l.b16 %v1299_v29  ;;  %v1970_v30 = vrot.slane %v1969_v33, 4  ;;  %v1974_v41 = vrot.slane %v1972_v34, 5  ;;  %v2721_v9 = vld [vmem:[#allocation2 + $0x18] sm:$0xf]  ;;  %v7359_v29 = vld [vmem:[#allocation2 + $0x10] sm:$0xf] }
 0x13f   :  { %v2337_v26 = vpack.c.b16 %v2328_v42, %v2327_v40  ;;  %v3235_v33 = vrot.slane %v3170_v6, 5  ;;  %v3239_v40 = vrot.slane %v3172_v15, 5  ;;  %v3176_v15 = vld [vmem:[#allocation2 + $0x2c] sm:$0x1] }
 0x140   :  { %v8761_v18 = vpop.f32.mrf.mxu2  ;;  %v1340_v45 = vpack.c.b16 %v1332_v12, %v1331_v21  ;;  %v1975_v50 = vsel %vm8497_vm8, %v1970_v30, %v1974_v41  ;;  %v7454_v12 = vrot.slane %v3171_v14, 9  ;;  %v2769_v30 = vshll.u32 %v2721_v9, 16  ;;  %v3175_v14 = vld [vmem:[#allocation2 + $0x28] sm:$0xe] }
 0x141   :  { %v8773_v44 = vpop.f32.mrf.mxu0  ;;  %v2008_v56 = vunpack.c.l.b16 %v1975_v50 }
 0x142   :  { %1656 = vmatmul.bf16.gmra.mxu3 %v7236_v19  ;;  %v8765_v46 = vpop.f32.mrf.mxu1  ;;  %2111 = vmatmul.bf16.gmra.mxu0 %v2015_v24  ;;  %v2719_v24 = vld [vmem:[#allocation2 + $0x10] sm:$0xf]  ;;  %v3240_v50 = vsel %vm8640_vm11, %v7454_v12, %v3239_v40  ;;  %v2725_v12 = vld [vmem:[#allocation2 + $0x28] sm:$0xf] }
 0x143   :  { %v2752_v42 = vshrl.u32 %v2719_v24, 16 }
 0x145   :  { %v1106_v53 = vpop.f32.mrf.mxu3  ;;  %v2754_v55 = vrot.slane %v2752_v42, 4  ;;  %v7998_v42 = vld [vmem:[#allocation2 + $0x24] sm:$0xf0] }
 0x146   :  { %v8776_v8 = vadd.f32 %v1106_v53, %v8730_v60  ;;  %v1961_v60 = vsel %vm8497_vm8, %v1956_v37, %v1960_v38  ;;  %v2329_v53 = vunpack.c.l.b16 %v2293_v57  ;;  %v2755_v37 = vshll.u32 %v2719_v24, 16 }
 0x147   :  { %v2007_v7 = vunpack.c.l.b16 %v1961_v60  ;;  %v2766_v38 = vshrl.u32 %v2721_v9, 16 }
 0x148   :  { %v8778_v35 = vpop.f32.mrf.mxu2  ;;  %v2757_v58 = vrot.slane %v2755_v37, 5 }
 0x149   :  { %v675_v59 = vpop.f32.mrf.mxu0  ;;  %v2016_v4 = vpack.c.b16 %v2008_v56, %v2007_v7  ;;  %v2768_v61 = vrot.slane %v2766_v38, 4  ;;  %v2722_v7 = vld [vmem:[#allocation2 + $0x1c] sm:$0x1] }
 0x14a   :  { %v1091_v48 = vpop.f32.mrf.mxu1  ;;  %v2775_v6 = vshll.u32 %v2722_v7, 16 }
 0x14b   :  { %v8781_v49 = vadd.f32 %v1091_v48, %v8749_v36  ;;  %v2200_v36 = vld [vmem:[#allocation2 + $0x90] sm:$0xe]  ;;  %v7243_v48 = vld [vmem:[#allocation2 + $0x88] sm:$0xf] }
 0x14c   :  { %v7324_v28 = vrot.slane %v2200_v36, 9  ;;  %v2771_v36 = vrot.slane %v2769_v30, 5  ;;  %v7244_v0 = vor.u32 %v7972_v54, %v7243_v48  ;;  %v7456_v30 = vrot.slane %v3175_v14, 9 }
 0x14d   :  { %1440 = vmatmul.bf16.gmra.mxu2 %v1340_v45  ;;  %v1108_v52 = vpop.f32.mrf.mxu3  ;;  %2433 = vmatmul.bf16.gmra.mxu1 %v2337_v26 }
 0x14e   :  { %v8788_v19 = vadd.f32 %v1108_v52, %v8747_v27  ;;  %v3169_v27 = vld [vmem:[#allocation2 + $0x10] sm:$0xe]  ;;  %v2297_v11 = vsel %vm8640_vm11, %v7324_v28, %v2296_v17  ;;  %v2758_v17 = vor.u32 %v2757_v58, %v2754_v55 }
 0x14f   :  { %v7453_v32 = vrot.slane %v3169_v27, 9  ;;  %v2330_v21 = vunpack.c.l.b16 %v2297_v11  ;;  %v2772_v27 = vor.u32 %v2771_v36, %v2768_v61  ;;  %v3174_v11 = vld [vmem:[#allocation2 + $0x24] sm:$0x1] }
 0x150   :  { %v8790_v3 = vpop.f32.mrf.mxu2  ;;  %v2759_v9 = vrot.slane %v2758_v17, 4  ;;  %v3243_v38 = vrot.slane %v3174_v11, 5  ;;  %v2726_v17 = vld [vmem:[#allocation2 + $0x2c] sm:$0x1] }
 0x151   :  { %v8803_v34 = vpop.f32.mrf.mxu0  ;;  %v2338_v26 = vpack.c.b16 %v2330_v21, %v2329_v53  ;;  %v3236_v60 = vsel %vm8640_vm11, %v7453_v32, %v3235_v33  ;;  %v2777_v32 = vrot.slane %v2775_v6, 5  ;;  %v1138_v33 = vadd.f32 %v8732_v63, %v8709_v23  ;;  %v7363_v21 = vld [vmem:[#allocation2 + $0x20] sm:$0xf] }
 0x152   :  { %1661 = vmatmul.bf16.gmra.mxu3 %v7240_v22  ;;  %v8792_v2 = vpop.f32.mrf.mxu1  ;;  %2116 = vmatmul.bf16.gmra.mxu0 %v2016_v4  ;;  %v3314_v56 = vunpack.c.l.b16 %v3236_v60  ;;  %v3315_v22 = vunpack.c.l.b16 %v3240_v50  ;;  %v2794_v63 = vshrl.u32 %v2725_v12, 16 }
 0x154   :  { %v3330_v57 = vpack.c.b16 %v3315_v22, %v3314_v56  ;;  %v2796_v56 = vrot.slane %v2794_v63, 4 }
 0x155   :  { %v1111_v43 = vpop.f32.mrf.mxu3 }
 0x156   :  { %v8799_v16 = vadd.f32 %v1111_v43, %v8761_v18  ;;  %v7360_v18 = vor.u32 %v7997_v31, %v7359_v29  ;;  %v2773_v31 = vrot.slane %v2772_v27, 4 }
 0x158   :  { %v8801_v25 = vpop.f32.mrf.mxu2  ;;  %v2778_v23 = vsel %vm8497_vm8, %v2773_v31, %v2777_v32  ;;  %v3177_v31 = vld [vmem:[#allocation2 + $0x30] sm:$0xe]  ;;  %v3179_v32 = vld [vmem:[#allocation2 + $0x38] sm:$0xe] }
 0x159   :  { %v2993_v55 = vunpack.c.l.b16 %v2778_v23  ;;  %v7999_v23 = vld [vmem:[#allocation2 + $0x34] sm:$0xf0] }
 0x15a   :  { %v1096_v41 = vpop.f32.mrf.mxu1 }
 0x15b   :  { %v8805_v45 = vadd.f32 %v1096_v41, %v675_v59  ;;  %v2720_v59 = vld [vmem:[#allocation2 + $0x14] sm:$0x1]  ;;  %v3247_v41 = vrot.slane %v3176_v15, 5 }
 0x15c   :  { %v2761_v4 = vshll.u32 %v2720_v59, 16 }
 0x15d   :  { %2630 = vmatmul.bf16.vlgmr.msra.gmra.mxu2 %v7360_v18  ;;  %v1113_v52 = vpop.f32.mrf.mxu3  ;;  %2438 = vmatmul.bf16.gmra.mxu1 %v2338_v26  ;;  %v3248_v61 = vsel %vm8640_vm11, %v7456_v30, %v3247_v41  ;;  %v7367_v41 = vld [vmem:[#allocation2 + $0x30] sm:$0xf] }
 0x15e   :  { %v8812_v13 = vadd.f32 %v1113_v52, %v8778_v35  ;;  %v3173_v35 = vld [vmem:[#allocation2 + $0x20] sm:$0xe]  ;;  %v2763_v29 = vrot.slane %v2761_v4, 5  ;;  %v7364_v52 = vor.u32 %v7998_v42, %v7363_v21  ;;  %v3317_v27 = vunpack.c.l.b16 %v3248_v61 }
 0x15f   :  { %v8817_v43 = vpop.f32.mrf.mxu0  ;;  %v7455_v37 = vrot.slane %v3173_v35, 9  ;;  %v7458_v61 = vrot.slane %v3179_v32, 9 }
 0x160   :  { %v1406_v62 = vpop.f32.mrf.mxu2  ;;  %v2764_v60 = vsel %vm8497_vm8, %v2759_v9, %v2763_v29 }
 0x161   :  { %v8815_v28 = vadd.f32 %v1406_v62, %v8722_v20  ;;  %v2723_v20 = vld [vmem:[#allocation2 + $0x20] sm:$0xf]  ;;  %v2992_v54 = vunpack.c.l.b16 %v2764_v60  ;;  %v3244_v58 = vsel %vm8640_vm11, %v7455_v37, %v3243_v38  ;;  %v3180_v37 = vld [vmem:[#allocation2 + $0x3c] sm:$0x1]  ;;  %v1140_v38 = vadd.f32 %v8765_v46, %v8734_v1 }
 0x162   :  { %1666 = vmatmul.bf16.gmra.mxu3 %v7244_v0  ;;  %3402 = vmatmul.bf16.vlgmr.msra.gmra.mxu0 %v3330_v57  ;;  %v2780_v48 = vshrl.u32 %v2723_v20, 16  ;;  %v2783_v26 = vshll.u32 %v2723_v20, 16  ;;  %v2724_v0 = vld [vmem:[#allocation2 + $0x24] sm:$0x1]  ;;  %v3316_v4 = vunpack.c.l.b16 %v3244_v58  ;;  %v2727_v20 = vld [vmem:[#allocation2 + $0x30] sm:$0xf] }
 0x163   :  { %v3008_v57 = vpack.c.b16 %v2993_v55, %v2992_v54  ;;  %v2789_v14 = vshll.u32 %v2724_v0, 16  ;;  %v2808_v63 = vshrl.u32 %v2727_v20, 16 }
 0x164   :  { %v2782_v59 = vrot.slane %v2780_v48, 4  ;;  %v2785_v7 = vrot.slane %v2783_v26, 5  ;;  %v3331_v29 = vpack.c.b16 %v3317_v27, %v3316_v4  ;;  %v7457_v48 = vrot.slane %v3177_v31, 9 }
 0x165   :  { %v1116_v24 = vpop.f32.mrf.mxu3 }
 0x166   :  { %v8822_v53 = vadd.f32 %v1116_v24, %v8790_v3  ;;  %v2797_v3 = vshll.u32 %v2725_v12, 16  ;;  %v2786_v11 = vor.u32 %v2785_v7, %v2782_v59  ;;  %v2803_v24 = vshll.u32 %v2726_v17, 16 }
 0x167   :  { %v8830_v50 = vpop.f32.mrf.mxu0  ;;  %v7368_v59 = vor.u32 %v7999_v23, %v7367_v41  ;;  %v3182_v41 = vld [vmem:[#allocation2 + $0x44] sm:$0x1]  ;;  %v2731_v23 = vld [vmem:[#allocation2 + $0x40] sm:$0xf] }
 0x168   :  { %v1408_v40 = vpop.f32.mrf.mxu2  ;;  %v2799_v22 = vrot.slane %v2797_v3, 5  ;;  %v2787_v12 = vrot.slane %v2786_v11, 4  ;;  %v2811_v3 = vshll.u32 %v2727_v20, 16 }
 0x169   :  { %v8824_v18 = vadd.f32 %v1408_v40, %v1138_v33  ;;  %v2729_v33 = vld [vmem:[#allocation2 + $0x38] sm:$0xf]  ;;  %v2791_v40 = vrot.slane %v2789_v14, 5 }
 0x16a   :  { %v2800_v15 = vor.u32 %v2799_v22, %v2796_v56  ;;  %v2825_v54 = vshll.u32 %v2729_v33, 16  ;;  %v2728_v56 = vld [vmem:[#allocation2 + $0x34] sm:$0x1]  ;;  %v2810_v22 = vrot.slane %v2808_v63, 4  ;;  %v2733_v63 = vld [vmem:[#allocation2 + $0x48] sm:$0xf] }
 0x16b   :  { %v2792_v1 = vsel %vm8497_vm8, %v2787_v12, %v2791_v40 }
 0x16c   :  { %v2801_v42 = vrot.slane %v2800_v15, 4  ;;  %v2827_v17 = vrot.slane %v2825_v54, 5  ;;  %v2994_v4 = vunpack.c.l.b16 %v2792_v1 }
 0x16d   :  { %2635 = vmatmul.bf16.gmra.mxu2 %v7364_v52  ;;  %v1118_v36 = vpop.f32.mrf.mxu3  ;;  %v2822_v52 = vshrl.u32 %v2729_v33, 16 }
 0x16e   :  { %v8837_v62 = vadd.f32 %v1118_v36, %v8801_v25  ;;  %v3178_v25 = vld [vmem:[#allocation2 + $0x34] sm:$0x1]  ;;  %v3255_v36 = vrot.slane %v3180_v37, 5 }
 0x16f   :  { %v8842_v9 = vpop.f32.mrf.mxu0  ;;  %v3251_v26 = vrot.slane %v3178_v25, 5  ;;  %v2824_v0 = vrot.slane %v2822_v52, 4 }
 0x170   :  { %v1411_v6 = vpop.f32.mrf.mxu2 }
 0x171   :  { %v8840_v35 = vadd.f32 %v1411_v6, %v8759_v51  ;;  %v2805_v51 = vrot.slane %v2803_v24, 5  ;;  %v3252_v7 = vsel %vm8640_vm11, %v7457_v48, %v3251_v26  ;;  %v3256_v6 = vsel %vm8640_vm11, %v7458_v61, %v3255_v36  ;;  %v3183_v26 = vld [vmem:[#allocation2 + $0x48] sm:$0xe]  ;;  %v7371_v61 = vld [vmem:[#allocation2 + $0x40] sm:$0xf] }
 0x172   :  { %3080 = vmatmul.bf16.vlgmr.msra.gmra.mxu3 %v3008_v57  ;;  %3407 = vmatmul.bf16.gmra.mxu0 %v3331_v29  ;;  %v2730_v57 = vld [vmem:[#allocation2 + $0x3c] sm:$0x1]  ;;  %v3318_v15 = vunpack.c.l.b16 %v3252_v7  ;;  %v2817_v24 = vshll.u32 %v2728_v56, 16  ;;  %v3319_v29 = vunpack.c.l.b16 %v3256_v6  ;;  %v2828_v32 = vor.u32 %v2827_v17, %v2824_v0  ;;  %v8000_v36 = vld [vmem:[#allocation2 + $0x44] sm:$0xf0] }
 0x173   :  { %v2806_v46 = vsel %vm8497_vm8, %v2801_v42, %v2805_v51  ;;  %v2831_v20 = vshll.u32 %v2730_v57, 16  ;;  %v2839_v56 = vshll.u32 %v2731_v23, 16  ;;  %v7372_v17 = vor.u32 %v8000_v36, %v7371_v61 }
 0x174   :  { %v2995_v27 = vunpack.c.l.b16 %v2806_v46  ;;  %v2819_v42 = vrot.slane %v2817_v24, 5  ;;  %v3332_v51 = vpack.c.b16 %v3319_v29, %v3318_v15  ;;  %v2829_v37 = vrot.slane %v2828_v32, 4 }
 0x175   :  { %v1632_v21 = vpop.f32.mrf.mxu3  ;;  %v3259_v46 = vrot.slane %v3182_v41, 5 }
 0x176   :  { %v1688_v30 = vadd.f32 %v1632_v21, %v8815_v28  ;;  %v3009_v21 = vpack.c.b16 %v2995_v27, %v2994_v4 }
 0x177   :  { %v8856_v28 = vpop.f32.mrf.mxu0 }
 0x178   :  { %v1413_v60 = vpop.f32.mrf.mxu2  ;;  %v8848_v55 = vadd.f32 %v8817_v43, %v1688_v30  ;;  %v2813_v43 = vrot.slane %v2811_v3, 5  ;;  %v3181_v30 = vld [vmem:[#allocation2 + $0x40] sm:$0xe] }
 0x179   :  { %v8850_v58 = vadd.f32 %v1413_v60, %v1140_v38  ;;  %v2833_v38 = vrot.slane %v2831_v20, 5  ;;  %v3184_v60 = vld [vmem:[#allocation2 + $0x4c] sm:$0x1]  ;;  %v7459_v1 = vrot.slane %v3181_v30, 9 }
 0x17a   :  { %v2814_v25 = vor.u32 %v2813_v43, %v2810_v22  ;;  %v2850_v22 = vshrl.u32 %v2733_v63, 16  ;;  %v2853_v43 = vshll.u32 %v2733_v63, 16 }
 0x17b   :  { %v2834_v54 = vsel %vm8497_vm8, %v2829_v37, %v2833_v38  ;;  %v3260_v6 = vsel %vm8640_vm11, %v7459_v1, %v3259_v46  ;;  %v7375_v1 = vld [vmem:[#allocation2 + $0x60] sm:$0xf]  ;;  %v2737_v46 = vld [vmem:[#allocation2 + $0x68] sm:$0xf] }
 0x17c   :  { %v2997_v27 = vunpack.c.l.b16 %v2834_v54  ;;  %v2852_v15 = vrot.slane %v2850_v22, 4  ;;  %v2855_v24 = vrot.slane %v2853_v43, 5  ;;  %v3320_v32 = vunpack.c.l.b16 %v3260_v6  ;;  %v2735_v54 = vld [vmem:[#allocation2 + $0x60] sm:$0xf] }
 0x17d   :  { %2640 = vmatmul.bf16.gmra.mxu2 %v7368_v59  ;;  %v1634_v11 = vpop.f32.mrf.mxu3  ;;  %v2867_v6 = vshll.u32 %v2735_v54, 16 }
 0x17e   :  { %v1689_v14 = vadd.f32 %v1634_v11, %v8824_v18  ;;  %v2815_v18 = vrot.slane %v2814_v25, 4  ;;  %v2734_v25 = vld [vmem:[#allocation2 + $0x4c] sm:$0x1]  ;;  %v2856_v30 = vor.u32 %v2855_v24, %v2852_v15 }
 0x17f   :  { %v8869_v40 = vpop.f32.mrf.mxu0  ;;  %v2859_v41 = vshll.u32 %v2734_v25, 16 }
 0x180   :  { %v1416_v31 = vpop.f32.mrf.mxu2  ;;  %v8864_v33 = vadd.f32 %v8830_v50, %v1689_v14  ;;  %v1142_v50 = vadd.f32 %v8792_v2, %v8773_v44  ;;  %v2820_v52 = vsel %vm8497_vm8, %v2815_v18, %v2819_v42  ;;  %v7460_v44 = vrot.slane %v3183_v26, 9 }
 0x181   :  { %v8867_v12 = vadd.f32 %v1416_v31, %v8781_v49  ;;  %v3263_v2 = vrot.slane %v3184_v60, 5  ;;  %v2996_v4 = vunpack.c.l.b16 %v2820_v52  ;;  %v2841_v14 = vrot.slane %v2839_v56, 5  ;;  %v2732_v31 = vld [vmem:[#allocation2 + $0x44] sm:$0x1]  ;;  %v3185_v60 = vld [vmem:[#allocation2 + $0x60] sm:$0xe] }
 0x182   :  { %3085 = vmatmul.bf16.gmra.mxu3 %v3009_v21  ;;  %3412 = vmatmul.bf16.gmra.mxu0 %v3332_v51  ;;  %v2845_v38 = vshll.u32 %v2732_v31, 16  ;;  %v2857_v52 = vrot.slane %v2856_v30, 4  ;;  %v2736_v31 = vld [vmem:[#allocation2 + $0x64] sm:$0x1] }
 0x183   :  { %v3010_v51 = vpack.c.b16 %v2997_v27, %v2996_v4  ;;  %v2864_v27 = vshrl.u32 %v2735_v54, 16 }
 0x185   :  { %v1637_v48 = vpop.f32.mrf.mxu3  ;;  %v2866_v25 = vrot.slane %v2864_v27, 4 }
 0x186   :  { %v1690_v49 = vadd.f32 %v1637_v48, %v8840_v35  ;;  %v2836_v35 = vshrl.u32 %v2731_v23, 16  ;;  %v3188_v23 = vld [vmem:[#allocation2 + $0x6c] sm:$0x1] }
 0x187   :  { %v8883_v0 = vpop.f32.mrf.mxu0  ;;  %v3271_v43 = vrot.slane %v3188_v23, 5 }
 0x188   :  { %v1418_v3 = vpop.f32.mrf.mxu2  ;;  %v8879_v59 = vadd.f32 %v8842_v9, %v1690_v49  ;;  %v3264_v9 = vsel %vm8640_vm11, %v7460_v44, %v3263_v2  ;;  %v2838_v11 = vrot.slane %v2836_v35, 4  ;;  %v3187_v49 = vld [vmem:[#allocation2 + $0x68] sm:$0xe]  ;;  %v7461_v35 = vrot.slane %v3185_v60, 9 }
 0x189   :  { %v8881_v7 = vadd.f32 %v1418_v3, %v1142_v50  ;;  %v3321_v20 = vunpack.c.l.b16 %v3264_v9  ;;  %v3186_v50 = vld [vmem:[#allocation2 + $0x64] sm:$0x1]  ;;  %v2847_v3 = vrot.slane %v2845_v38, 5  ;;  %v8001_v2 = vld [vmem:[#allocation2 + $0x64] sm:$0xf0]  ;;  %v7462_v22 = vrot.slane %v3187_v49, 9 }
 0x18a   :  { %v2842_v37 = vor.u32 %v2841_v14, %v2838_v11  ;;  %v3267_v56 = vrot.slane %v3186_v50, 5  ;;  %v2878_v9 = vshrl.u32 %v2737_v46, 16  ;;  %v7376_v14 = vor.u32 %v8001_v2, %v7375_v1  ;;  %v2738_v38 = vld [vmem:[#allocation2 + $0x6c] sm:$0x1]  ;;  %v2739_v2 = vld [vmem:[#allocation2 + $0x70] sm:$0xf] }
 0x18b   :  { %v3333_v26 = vpack.c.b16 %v3321_v20, %v3320_v32  ;;  %v2869_v32 = vrot.slane %v2867_v6, 5 }
 0x18c   :  { %v3268_v15 = vsel %vm8640_vm11, %v7461_v35, %v3267_v56  ;;  %v7379_v35 = vld [vmem:[#allocation2 + $0x70] sm:$0xf]  ;;  %v2741_v56 = vld [vmem:[#allocation2 + $0x78] sm:$0xf] }
 0x18d   :  { %2645 = vmatmul.bf16.gmra.mxu2 %v7372_v17  ;;  %v1639_v57 = vpop.f32.mrf.mxu3  ;;  %v3322_v30 = vunpack.c.l.b16 %v3268_v15  ;;  %v2870_v23 = vor.u32 %v2869_v32, %v2866_v25 }
 0x18e   :  { %v1691_v29 = vadd.f32 %v1639_v57, %v8850_v58  ;;  %v1098_v58 = vpop.f32.mrf.mxu1  ;;  %v2881_v57 = vshll.u32 %v2737_v46, 16 }
 0x18f   :  { %v8896_v48 = vpop.f32.mrf.mxu0  ;;  %v1144_v61 = vadd.f32 %v1098_v58, %v8803_v34 }
 0x190   :  { %v1421_v21 = vpop.f32.mrf.mxu2  ;;  %v8891_v42 = vadd.f32 %v8856_v28, %v1691_v29  ;;  %v2843_v28 = vrot.slane %v2842_v37, 4 }
 0x191   :  { %v8894_v18 = vadd.f32 %v1421_v21, %v8805_v45  ;;  %v2861_v45 = vrot.slane %v2859_v41, 5  ;;  %v2880_v21 = vrot.slane %v2878_v9, 4 }
 0x192   :  { %3090 = vmatmul.bf16.gmra.mxu3 %v3010_v51  ;;  %3417 = vmatmul.bf16.gmra.mxu0 %v3333_v26  ;;  %v2848_v34 = vsel %vm8497_vm8, %v2843_v28, %v2847_v3  ;;  %v2883_v51 = vrot.slane %v2881_v57, 5  ;;  %v2873_v26 = vshll.u32 %v2736_v31, 16  ;;  %v2887_v28 = vshll.u32 %v2738_v38, 16 }
 0x193   :  { %v2998_v24 = vunpack.c.l.b16 %v2848_v34 }
 0x194   :  { %v2875_v54 = vrot.slane %v2873_v26, 5  ;;  %v2889_v46 = vrot.slane %v2887_v28, 5  ;;  %v2742_v26 = vld [vmem:[#allocation2 + $0x7c] sm:$0x1] }
 0x195   :  { %v1642_v63 = vpop.f32.mrf.mxu3 }
 0x196   :  { %v1692_v36 = vadd.f32 %v1642_v63, %v8867_v12  ;;  %v2862_v12 = vsel %vm8497_vm8, %v2857_v52, %v2861_v45  ;;  %v2884_v63 = vor.u32 %v2883_v51, %v2880_v21  ;;  %v2871_v45 = vrot.slane %v2870_v23, 4  ;;  %v2740_v51 = vld [vmem:[#allocation2 + $0x74] sm:$0x1] }
 0x197   :  { %v8909_v11 = vpop.f32.mrf.mxu0  ;;  %v2999_v29 = vunpack.c.l.b16 %v2862_v12 }
 0x198   :  { %v1423_v44 = vpop.f32.mrf.mxu2  ;;  %v8901_v17 = vadd.f32 %v8869_v40, %v1692_v36  ;;  %v3272_v40 = vsel %vm8640_vm11, %v7462_v22, %v3271_v43  ;;  %v3191_v36 = vld [vmem:[#allocation2 + $0x78] sm:$0xe]  ;;  %v2876_v9 = vsel %vm8497_vm8, %v2871_v45, %v2875_v54  ;;  %v2901_v45 = vshll.u32 %v2740_v51, 16 }
 0x199   :  { %v8903_v4 = vadd.f32 %v1423_v44, %v1144_v61  ;;  %v3323_v41 = vunpack.c.l.b16 %v3272_v40  ;;  %v3011_v50 = vpack.c.b16 %v2999_v29, %v2998_v24  ;;  %v3190_v61 = vld [vmem:[#allocation2 + $0x74] sm:$0x1]  ;;  %v3192_v44 = vld [vmem:[#allocation2 + $0x7c] sm:$0x1]  ;;  %v8002_v43 = vld [vmem:[#allocation2 + $0x74] sm:$0xf0]  ;;  %v3000_v25 = vunpack.c.l.b16 %v2876_v9 }
 0x19a   :  { %v3275_v6 = vrot.slane %v3190_v61, 5  ;;  %v7464_v34 = vrot.slane %v3191_v36, 9  ;;  %v3279_v57 = vrot.slane %v3192_v44, 5  ;;  %v2906_v40 = vshrl.u32 %v2741_v56, 16  ;;  %v3195_v44 = vld [vmem:[#allocation2 + $0x88] sm:$0xe] }
 0x19b   :  { %v3334_v52 = vpack.c.b16 %v3323_v41, %v3322_v30  ;;  %v2909_v24 = vshll.u32 %v2741_v56, 16  ;;  %v7380_v31 = vor.u32 %v8002_v43, %v7379_v35  ;;  %v2915_v36 = vshll.u32 %v2742_v26, 16  ;;  %v2743_v35 = vld [vmem:[#allocation2 + $0x80] sm:$0xf] }
 0x19c   :  { %v2908_v30 = vrot.slane %v2906_v40, 4  ;;  %v7383_v9 = vld [vmem:[#allocation2 + $0x80] sm:$0xf]  ;;  %v8003_v40 = vld [vmem:[#allocation2 + $0x84] sm:$0xf0] }
 0x19d   :  { %2650 = vmatmul.bf16.gmra.mxu2 %v7376_v14  ;;  %v1644_v20 = vpop.f32.mrf.mxu3  ;;  %v2892_v14 = vshrl.u32 %v2739_v2, 16  ;;  %v2911_v41 = vrot.slane %v2909_v24, 5  ;;  %v2920_v24 = vshrl.u32 %v2743_v35, 16  ;;  %v7384_v51 = vor.u32 %v8003_v40, %v7383_v9  ;;  %v3198_v9 = vld [vmem:[#allocation2 + $0x94] sm:$0x1] }
 0x19e   :  { %v1693_v37 = vadd.f32 %v1644_v20, %v8881_v7  ;;  %v3189_v7 = vld [vmem:[#allocation2 + $0x70] sm:$0xe]  ;;  %v3280_v20 = vsel %vm8640_vm11, %v7464_v34, %v3279_v57  ;;  %v2749_v40 = vld [vmem:[#allocation2 + $0x98] sm:$0xf] }
 0x19f   :  { %v8922_v3 = vpop.f32.mrf.mxu0  ;;  %v7463_v27 = vrot.slane %v3189_v7, 9  ;;  %v3325_v23 = vunpack.c.l.b16 %v3280_v20  ;;  %v2912_v61 = vor.u32 %v2911_v41, %v2908_v30  ;;  %v2922_v30 = vrot.slane %v2920_v24, 4 }
 0x1a0   :  { %v1426_v58 = vpop.f32.mrf.mxu2  ;;  %v8917_v60 = vadd.f32 %v8883_v0, %v1693_v37  ;;  %v2885_v0 = vrot.slane %v2884_v63, 4  ;;  %v2894_v37 = vrot.slane %v2892_v14, 4  ;;  %v7466_v14 = vrot.slane %v3195_v44, 9 }
 0x1a1   :  { %v8920_v49 = vadd.f32 %v1426_v58, %v8745_v10 }
 0x1a2   :  { %3095 = vmatmul.bf16.gmra.mxu3 %v3011_v50  ;;  %3422 = vmatmul.bf16.gmra.mxu0 %v3334_v52  ;;  %v2890_v15 = vsel %vm8497_vm8, %v2885_v0, %v2889_v46  ;;  %v3193_v0 = vld [vmem:[#allocation2 + $0x80] sm:$0xe]  ;;  %v3194_v46 = vld [vmem:[#allocation2 + $0x84] sm:$0x1] }
 0x1a3   :  { %v3001_v32 = vunpack.c.l.b16 %v2890_v15  ;;  %v3283_v57 = vrot.slane %v3194_v46, 5 }
 0x1a5   :  { %v1647_v1 = vpop.f32.mrf.mxu3  ;;  %v3012_v52 = vpack.c.b16 %v3001_v32, %v3000_v25 }
 0x1a6   :  { %v1694_v10 = vadd.f32 %v1647_v1, %v8894_v18  ;;  %v2895_v18 = vshll.u32 %v2739_v2, 16  ;;  %v3196_v2 = vld [vmem:[#allocation2 + $0x8c] sm:$0x1] }
 0x1a7   :  { %v8934_v29 = vpop.f32.mrf.mxu0  ;;  %v3287_v15 = vrot.slane %v3196_v2, 5 }
 0x1a8   :  { %v8925_v22 = vpop.f32.mrf.mxu2  ;;  %v8928_v12 = vadd.f32 %v8896_v48, %v1694_v10  ;;  %v3276_v48 = vsel %vm8640_vm11, %v7463_v27, %v3275_v6  ;;  %v2897_v38 = vrot.slane %v2895_v18, 5  ;;  %v2903_v10 = vrot.slane %v2901_v45, 5 }
 0x1a9   :  { %v3324_v50 = vunpack.c.l.b16 %v3276_v48  ;;  %v2917_v27 = vrot.slane %v2915_v36, 5  ;;  %v7465_v6 = vrot.slane %v3193_v0, 9 }
 0x1aa   :  { %v2898_v54 = vor.u32 %v2897_v38, %v2894_v37  ;;  %v3288_v38 = vsel %vm8640_vm11, %v7466_v14, %v3287_v15  ;;  %v3200_v14 = vld [vmem:[#allocation2 + $0x9c] sm:$0x1] }
 0x1ab   :  { %v3284_v37 = vsel %vm8640_vm11, %v7465_v6, %v3283_v57  ;;  %v3197_v6 = vld [vmem:[#allocation2 + $0x90] sm:$0xe]  ;;  %v3199_v57 = vld [vmem:[#allocation2 + $0x98] sm:$0xe] }
 0x1ac   :  { %v2899_v43 = vrot.slane %v2898_v54, 4  ;;  %v3326_v45 = vunpack.c.l.b16 %v3284_v37  ;;  %v3327_v54 = vunpack.c.l.b16 %v3288_v38  ;;  %v3291_v37 = vrot.slane %v3198_v9, 5 }
 0x1ad   :  { %2655 = vmatmul.bf16.gmra.mxu2 %v7380_v31  ;;  %v1649_v21 = vpop.f32.mrf.mxu3  ;;  %v2923_v31 = vshll.u32 %v2743_v35, 16  ;;  %v7468_v38 = vrot.slane %v3199_v57, 9 }
 0x1ae   :  { %v1695_v58 = vadd.f32 %v1649_v21, %v8903_v4  ;;  %v3335_v4 = vpack.c.b16 %v3325_v23, %v3324_v50  ;;  %v2904_v20 = vsel %vm8497_vm8, %v2899_v43, %v2903_v10  ;;  %v2744_v23 = vld [vmem:[#allocation2 + $0x84] sm:$0x1]  ;;  %v3336_v35 = vpack.c.b16 %v3327_v54, %v3326_v45 }
 0x1af   :  { %v8947_v1 = vpop.f32.mrf.mxu0  ;;  %v2925_v41 = vrot.slane %v2923_v31, 5  ;;  %v3002_v26 = vunpack.c.l.b16 %v2904_v20  ;;  %v2929_v0 = vshll.u32 %v2744_v23, 16  ;;  %v8004_v20 = vld [vmem:[#allocation2 + $0x94] sm:$0xf0] }
 0x1b0   :  { %v1431_v63 = vpop.f32.mrf.mxu2  ;;  %v8942_v28 = vadd.f32 %v8909_v11, %v1695_v58  ;;  %v2745_v11 = vld [vmem:[#allocation2 + $0x88] sm:$0xf] }
 0x1b1   :  { %v8945_v7 = vadd.f32 %v1431_v63, %v8776_v8  ;;  %v2913_v8 = vrot.slane %v2912_v61, 4  ;;  %v2934_v25 = vshrl.u32 %v2745_v11, 16  ;;  %v2937_v32 = vshll.u32 %v2745_v11, 16  ;;  %v2746_v63 = vld [vmem:[#allocation2 + $0x8c] sm:$0x1]  ;;  %v8972_v11 = vpop.f32.mrf.mxu1 }
 0x1b2   :  { %3100 = vmatmul.bf16.gmra.mxu3 %v3012_v52  ;;  %3427 = vmatmul.bf16.gmra.mxu0 %v3335_v4  ;;  %v2926_v36 = vor.u32 %v2925_v41, %v2922_v30  ;;  %v2943_v46 = vshll.u32 %v2746_v63, 16  ;;  %v2931_v43 = vrot.slane %v2929_v0, 5  ;;  %v3295_v30 = vrot.slane %v3200_v14, 5 }
 0x1b3   :  { %v2936_v58 = vrot.slane %v2934_v25, 4 }
 0x1b5   :  { %v1652_v56 = vpop.f32.mrf.mxu3 }
 0x1b6   :  { %v1696_v34 = vadd.f32 %v1652_v56, %v8920_v49  ;;  %v2918_v49 = vsel %vm8497_vm8, %v2913_v8, %v2917_v27  ;;  %v2927_v56 = vrot.slane %v2926_v36, 4  ;;  %v2945_v27 = vrot.slane %v2943_v46, 5 }
 0x1b7   :  { %v8959_v21 = vpop.f32.mrf.mxu0  ;;  %v3003_v50 = vunpack.c.l.b16 %v2918_v49  ;;  %v7467_v49 = vrot.slane %v3197_v6, 9 }
 0x1b8   :  { %v8950_v18 = vpop.f32.mrf.mxu2  ;;  %v8953_v48 = vadd.f32 %v8922_v3, %v1696_v34  ;;  %v2939_v3 = vrot.slane %v2937_v32, 5  ;;  %v2932_v31 = vsel %vm8497_vm8, %v2927_v56, %v2931_v43  ;;  %v7387_v32 = vld [vmem:[#allocation2 + $0x90] sm:$0xf] }
 0x1b9   :  { %v3013_v44 = vpack.c.b16 %v3003_v50, %v3002_v26  ;;  %v7388_v50 = vor.u32 %v8004_v20, %v7387_v32  ;;  %v3004_v23 = vunpack.c.l.b16 %v2932_v31  ;;  %v3292_v45 = vsel %vm8640_vm11, %v7467_v49, %v3291_v37  ;;  %v8990_v54 = vpop.f32.mrf.mxu1 }
 0x1ba   :  { %v2940_v4 = vor.u32 %v2939_v3, %v2936_v58  ;;  %v2962_v58 = vshrl.u32 %v2749_v40, 16  ;;  %v2965_v3 = vshll.u32 %v2749_v40, 16  ;;  %v3328_v56 = vunpack.c.l.b16 %v3292_v45 }
 0x1bc   :  { %v2941_v8 = vrot.slane %v2940_v4, 4  ;;  %v2964_v4 = vrot.slane %v2962_v58, 4  ;;  %v2967_v46 = vrot.slane %v2965_v3, 5 }
 0x1bd   :  { %2660 = vmatmul.bf16.gmra.mxu2 %v7384_v51  ;;  %v8965_v52 = vpop.f32.mrf.mxu3 }
 0x1be   :  { %v2946_v25 = vsel %vm8497_vm8, %v2941_v8, %v2945_v27  ;;  %v2968_v57 = vor.u32 %v2967_v46, %v2964_v4 }
 0x1bf   :  { %v8970_v10 = vpop.f32.mrf.mxu0  ;;  %v3005_v63 = vunpack.c.l.b16 %v2946_v25 }
 0x1c0   :  { %v1436_v61 = vpop.f32.mrf.mxu2  ;;  %v2969_v32 = vrot.slane %v2968_v57, 4 }
 0x1c1   :  { %v8968_v2 = vadd.f32 %v1436_v61, %v8799_v16  ;;  %v2747_v16 = vld [vmem:[#allocation2 + $0x90] sm:$0xf]  ;;  %v3014_v27 = vpack.c.b16 %v3005_v63, %v3004_v23  ;;  %v2409_v37 = vpop.f32.mrf.mxu1 }
 0x1c2   :  { %3105 = vmatmul.bf16.gmra.mxu3 %v3013_v44  ;;  %3432 = vmatmul.bf16.gmra.mxu0 %v3336_v35  ;;  %v2951_v41 = vshll.u32 %v2747_v16, 16  ;;  %v2748_v44 = vld [vmem:[#allocation2 + $0x94] sm:$0x1]  ;;  %v2750_v35 = vld [vmem:[#allocation2 + $0x9c] sm:$0x1] }
 0x1c3   :  { %v2957_v9 = vshll.u32 %v2748_v44, 16  ;;  %v2971_v14 = vshll.u32 %v2750_v35, 16 }
 0x1c4   :  { %v2953_v0 = vrot.slane %v2951_v41, 5 }
 0x1c5   :  { %v1657_v34 = vpop.f32.mrf.mxu3  ;;  %v2959_v25 = vrot.slane %v2957_v9, 5  ;;  %v2973_v20 = vrot.slane %v2971_v14, 5 }
 0x1c6   :  { %v1698_v15 = vadd.f32 %v1657_v34, %v8945_v7  ;;  %v2948_v7 = vshrl.u32 %v2747_v16, 16 }
 0x1c7   :  { %v8984_v26 = vpop.f32.mrf.mxu0 }
 0x1c8   :  { %v8975_v24 = vpop.f32.mrf.mxu2  ;;  %v8982_v51 = vadd.f32 %v8947_v1, %v1698_v15  ;;  %v3296_v1 = vsel %vm8640_vm11, %v7468_v38, %v3295_v30  ;;  %v2950_v36 = vrot.slane %v2948_v7, 4  ;;  %v2974_v7 = vsel %vm8497_vm8, %v2969_v32, %v2973_v20 }
 0x1c9   :  { %v3329_v43 = vunpack.c.l.b16 %v3296_v1  ;;  %v3007_v3 = vunpack.c.l.b16 %v2974_v7 }
 0x1ca   :  { %v2954_v34 = vor.u32 %v2953_v0, %v2950_v36 }
 0x1cb   :  { %v3337_v16 = vpack.c.b16 %v3329_v43, %v3328_v56 }
 0x1cc   :  { %v2955_v31 = vrot.slane %v2954_v34, 4 }
 0x1cd   :  { %2665 = vmatmul.bf16.gmra.mxu2 %v7388_v50  ;;  %v8992_v61 = vpop.f32.mrf.mxu3 }
 0x1ce   :  { %v2960_v30 = vsel %vm8497_vm8, %v2955_v31, %v2959_v25 }
 0x1cf   :  { %v2117_v15 = vpop.f32.mrf.mxu0  ;;  %v3006_v58 = vunpack.c.l.b16 %v2960_v30 }
 0x1d0   :  { %v1441_v8 = vpop.f32.mrf.mxu2 }
 0x1d1   :  { %v1476_v6 = vadd.f32 %v1441_v8, %v8822_v53  ;;  %v3015_v63 = vpack.c.b16 %v3007_v3, %v3006_v58 }
 0x1d2   :  { %3110 = vmatmul.bf16.gmra.mxu3 %v3014_v27  ;;  %3437 = vmatmul.bf16.gmra.mxu0 %v3337_v16 }
 0x1d5   :  { %v1662_v40 = vpop.f32.mrf.mxu3 }
 0x1d6   :  { %v1700_v49 = vadd.f32 %v1662_v40, %v8968_v2  ;;  %v2460_v2 = vadd.f32 %v8972_v11, %v8848_v55  ;;  %v2462_v55 = vadd.f32 %v2409_v37, %v8879_v59 }
 0x1d7   :  { %v9005_v41 = vpop.f32.mrf.mxu0 }
 0x1d8   :  { %v8996_v38 = vpop.f32.mrf.mxu2  ;;  %v8999_v53 = vadd.f32 %v8970_v10, %v1700_v49  ;;  %9856 = vst [vmem:[#allocation18_spill] sm:$0xff] %v9005_v41  ;;  %v9011_v10 = vpop.f32.mrf.mxu1 }
 0x1d9   :  { %9854 = vst [vmem:[#allocation16_spill] sm:$0xff] %v8996_v38  ;;  %v8041_v38 = vld [vmem:[#allocation9 + $0x20] sm:$0xff] }
 0x1da   :  { %9855 = vst [vmem:[#allocation17_spill] sm:$0xff] %v8999_v53 }
 0x1dd   :  { %v9007_v50 = vpop.f32.mrf.mxu3 }
 0x1df   :  { %v3403_v1 = vpop.f32.mrf.mxu0 }
 0x1e0   :  { %v2631_v23 = vpop.f32.mrf.mxu2  ;;  %v2414_v35 = vpop.f32.mrf.mxu1 }
 0x1e1   :  { %v2687_v45 = vadd.f32 %v2631_v23, %v2460_v2  ;;  %v2464_v56 = vadd.f32 %v2414_v35, %v8901_v17 }
 0x1e2   :  { %3115 = vmatmul.bf16.gmra.mxu3 %v3015_v63 }
 0x1e5   :  { %v1667_v36 = vpop.f32.mrf.mxu3 }
 0x1e6   :  { %v1702_v0 = vadd.f32 %v1667_v36, %v1476_v6 }
 0x1e7   :  { %v9015_v44 = vpop.f32.mrf.mxu0 }
 0x1e8   :  { %v2633_v4 = vpop.f32.mrf.mxu2  ;;  %v9013_v46 = vadd.f32 %v2117_v15, %v1702_v0  ;;  %v2416_v25 = vpop.f32.mrf.mxu1 }
 0x1ea   :  { %9857 = vst [vmem:[#allocation19_spill] sm:$0xff] %v9013_v46 }
 0x1ed   :  { %v9018_v43 = vpop.f32.mrf.mxu3 }
 0x1ee   :  { %9858 = vst [vmem:[#allocation20_spill] sm:$0xff] %v9018_v43 }
 0x1ef   :  { %v3408_v27 = vpop.f32.mrf.mxu0 }
 0x1f0   :  { %v2636_v11 = vpop.f32.mrf.mxu2  ;;  %v2419_v30 = vpop.f32.mrf.mxu1 }
 0x1f1   :  { %v2689_v8 = vadd.f32 %v2636_v11, %v2462_v55 }
 0x1f5   :  { %v3081_v34 = vpop.f32.mrf.mxu3 }
 0x1f6   :  { %v3137_v9 = vadd.f32 %v3081_v34, %v2687_v45 }
 0x1f7   :  { %v9023_v6 = vpop.f32.mrf.mxu0 }
 0x1f8   :  { %v2638_v57 = vpop.f32.mrf.mxu2  ;;  %v9021_v14 = vadd.f32 %v3403_v1, %v3137_v9  ;;  %v2421_v23 = vpop.f32.mrf.mxu1  ;;  %v8044_v1 = vld [vmem:[#allocation9 + $0x38] sm:$0xff] }
 0x1f9   :  { %4051 = vmatpush.bf16.msra.mxu1 %v8044_v1 }
 0x1fd   :  { %v3083_v15 = vpop.f32.mrf.mxu3 }
 0x1ff   :  { %v3413_v31 = vpop.f32.mrf.mxu0 }
 0x200   :  { %v2641_v16 = vpop.f32.mrf.mxu2  ;;  %v2424_v35 = vpop.f32.mrf.mxu1 }
 0x201   :  { %v2691_v40 = vadd.f32 %v2641_v16, %v2464_v56 }
 0x205   :  { %v3086_v17 = vpop.f32.mrf.mxu3 }
 0x206   :  { %v3139_v32 = vadd.f32 %v3086_v17, %v2689_v8 }
 0x207   :  { %v9027_v59 = vpop.f32.mrf.mxu0 }
 0x208   :  { %v2643_v20 = vpop.f32.mrf.mxu2  ;;  %v9025_v49 = vadd.f32 %v3408_v27, %v3139_v32  ;;  %v2426_v8 = vpop.f32.mrf.mxu1  ;;  %v8043_v27 = vld [vmem:[#allocation9 + $0x30] sm:$0xff]  ;;  %v8042_v32 = vld [vmem:[#allocation9 + $0x28] sm:$0xff] }
 0x209   :  { %4052 = vmatpush.bf16.msra.mxu1 %v8043_v27  ;;  %v2461_v27 = vadd.f32 %v8990_v54, %v8864_v33 }
 0x20b   :  { %v2688_v46 = vadd.f32 %v2633_v4, %v2461_v27 }
 0x20d   :  { %v3088_v37 = vpop.f32.mrf.mxu3  ;;  %4053 = vmatpush.bf16.msra.mxu1 %v8042_v32 }
 0x20f   :  { %v9029_v58 = vpop.f32.mrf.mxu0 }
 0x210   :  { %v2646_v7 = vpop.f32.mrf.mxu2 }
 0x211   :  { %4054 = vmatpush.bf16.msra.mxu1 %v8041_v38 }
 0x215   :  { %v3091_v3 = vpop.f32.mrf.mxu3 }
 0x216   :  { %v3141_v2 = vadd.f32 %v3091_v3, %v2691_v40 }
 0x217   :  { %v9033_v0 = vpop.f32.mrf.mxu0 }
 0x218   :  { %v9031_v63 = vadd.f32 %v3413_v31, %v3141_v2  ;;  %v2648_v45 = vpop.f32.mrf.mxu2  ;;  %v2429_v31 = vpop.f32.mrf.mxu1 }
 0x21d   :  { %v3093_v36 = vpop.f32.mrf.mxu3 }
 0x21f   :  { %v9035_v11 = vpop.f32.mrf.mxu0 }
 0x220   :  { %v2651_v56 = vpop.f32.mrf.mxu2  ;;  %v9045_v1 = vpop.f32.mrf.mxu1 }
 0x225   :  { %v3096_v55 = vpop.f32.mrf.mxu3 }
 0x227   :  { %v9039_v16 = vpop.f32.mrf.mxu0 }
 0x228   :  { %v9037_v9 = vpop.f32.mrf.mxu2  ;;  %9859 = vst [vmem:[#allocation21_spill] sm:$0xff] %v9039_v16  ;;  %v9055_v43 = vpop.f32.mrf.mxu1  ;;  %v3138_v16 = vadd.f32 %v3083_v15, %v2688_v46  ;;  %v2465_v46 = vadd.f32 %v2416_v25, %v8917_v60  ;;  %v2467_v60 = vadd.f32 %v2421_v23, %v8942_v28  ;;  %v3536_v25 = vmul.f32 %v9021_v14, %v9021_v14 }
 0x229   :  { %v1475_v28 = vadd.f32 %v8975_v24, %v8812_v13  ;;  %v3540_v13 = vmul.f32 %v9031_v63, %v9031_v63 }
 0x22a   :  { %v9066_v33 = vadd.f32 %v9015_v44, %v3138_v16  ;;  %v2692_v15 = vadd.f32 %v2643_v20, %v2465_v46 }
 0x22d   :  { %v3098_v34 = vpop.f32.mrf.mxu3 }
 0x22f   :  { %v9043_v3 = vpop.f32.mrf.mxu0 }
 0x230   :  { %v9041_v17 = vpop.f32.mrf.mxu2  ;;  %9860 = vst [vmem:[#allocation22_spill] sm:$0xff] %v9043_v3  ;;  %v2463_v3 = vadd.f32 %v9011_v10, %v8891_v42  ;;  %v2466_v42 = vadd.f32 %v2419_v30, %v8928_v12  ;;  %v2436_v12 = vpop.f32.mrf.mxu1 }
 0x232   :  { %v2690_v32 = vadd.f32 %v2638_v57, %v2463_v3  ;;  %v1473_v57 = vadd.f32 %v8950_v18, %v8788_v19  ;;  %v2693_v44 = vadd.f32 %v2646_v7, %v2466_v42  ;;  %v3507_v19 = vadd.f32 %v9066_v33, %v9021_v14 }
 0x233   :  { %v3538_v18 = vmul.f32 %v9025_v49, %v9025_v49 }
 0x234   :  { %v3140_v54 = vadd.f32 %v3088_v37, %v2690_v32  ;;  %v3143_v20 = vadd.f32 %v3096_v55, %v2693_v44  ;;  %v3508_v7 = vadd.f32 %v3507_v19, %v9025_v49  ;;  %v9866_v44 = vld [vmem:[#allocation17_spill] sm:$0xff] }
 0x235   :  { %v3101_v40 = vpop.f32.mrf.mxu3 }
 0x236   :  { %v9104_v24 = vadd.f32 %v9029_v58, %v3143_v20 }
 0x237   :  { %v9053_v41 = vpop.f32.mrf.mxu0 }
 0x238   :  { %v9047_v47 = vpop.f32.mrf.mxu2 }
 0x239   :  { %9861 = vst [vmem:[#allocation23_spill] sm:$0xff] %v9047_v47  ;;  %v1471_v47 = vadd.f32 %v8925_v22, %v8752_v39  ;;  %v3537_v39 = vmul.f32 %v9066_v33, %v9066_v33  ;;  %v9078_v22 = vadd.f32 %v9023_v6, %v3140_v54  ;;  %v2694_v6 = vadd.f32 %v2648_v45, %v2467_v60 }
 0x23b   :  { %v1697_v4 = vadd.f32 %v8965_v52, %v1471_v47  ;;  %v3142_v47 = vadd.f32 %v3093_v36, %v2692_v15  ;;  %v1699_v52 = vadd.f32 %v8992_v61, %v1473_v57  ;;  %v3552_v61 = vadd.f32 %v3537_v39, %v3536_v25 }
 0x23c   :  { %v3539_v23 = vmul.f32 %v9078_v22, %v9078_v22  ;;  %v3144_v3 = vadd.f32 %v3098_v34, %v2694_v6  ;;  %v3509_v27 = vadd.f32 %v3508_v7, %v9078_v22  ;;  %v9869_v7 = vld [vmem:[#allocation22_spill] sm:$0xff] }
 0x23d   :  { %v3103_v2 = vpop.f32.mrf.mxu3  ;;  %v2147_v38 = vadd.f32 %v8934_v29, %v1697_v4  ;;  %v2468_v29 = vadd.f32 %v2424_v35, %v8953_v48  ;;  %v9096_v36 = vadd.f32 %v9027_v59, %v3142_v47  ;;  %v2149_v55 = vadd.f32 %v8959_v21, %v1699_v52 }
 0x23e   :  { %v1701_v48 = vadd.f32 %v9007_v50, %v1475_v28  ;;  %v3553_v35 = vadd.f32 %v3552_v61, %v3538_v18  ;;  %v9112_v50 = vadd.f32 %v9033_v0, %v3144_v3  ;;  %v2439_v0 = vpop.f32.mrf.mxu1  ;;  %v9868_v18 = vld [vmem:[#allocation20_spill] sm:$0xff] }
 0x23f   :  { %v9071_v10 = vpop.f32.mrf.mxu0  ;;  %v2695_v16 = vadd.f32 %v2651_v56, %v2468_v29  ;;  %v2469_v45 = vadd.f32 %v2426_v8, %v2147_v38  ;;  %v2470_v56 = vadd.f32 %v2429_v31, %v8982_v51  ;;  %v3510_v8 = vadd.f32 %v3509_v27, %v9031_v63 }
 0x240   :  { %v9059_v53 = vpop.f32.mrf.mxu2  ;;  %v3554_v54 = vadd.f32 %v3553_v35, %v3539_v23  ;;  %v3541_v21 = vmul.f32 %v9096_v36, %v9096_v36  ;;  %v2151_v46 = vadd.f32 %v8984_v26, %v1701_v48  ;;  %v3542_v51 = vmul.f32 %v9104_v24, %v9104_v24  ;;  %v9864_v39 = vld [vmem:[#allocation23_spill] sm:$0xff] }
 0x241   :  { %v2696_v32 = vadd.f32 %v9037_v9, %v2469_v45  ;;  %v3145_v59 = vadd.f32 %v3101_v40, %v2695_v16  ;;  %v2697_v58 = vadd.f32 %v9041_v17, %v2470_v56  ;;  %v2471_v9 = vadd.f32 %v9045_v1, %v2149_v55  ;;  %v9870_v45 = vld [vmem:[#allocation19_spill] sm:$0xff] }
 0x242   :  { %v3555_v40 = vadd.f32 %v3554_v54, %v3540_v13  ;;  %v3511_v15 = vadd.f32 %v3510_v8, %v9096_v36  ;;  %v2472_v1 = vadd.f32 %v9055_v43, %v9866_v44  ;;  %v3543_v52 = vmul.f32 %v9112_v50, %v9112_v50 }
 0x243   :  { %v3146_v34 = vadd.f32 %v3103_v2, %v2696_v32  ;;  %v9121_v31 = vadd.f32 %v9035_v11, %v3145_v59  ;;  %v9863_v2 = vld [vmem:[#allocation16_spill] sm:$0xff]  ;;  %v2698_v26 = vadd.f32 %v9864_v39, %v2471_v9  ;;  %v9867_v11 = vld [vmem:[#allocation21_spill] sm:$0xff]  ;;  %v2473_v29 = vadd.f32 %v2436_v12, %v2151_v46  ;;  %v9871_v32 = vld [vmem:[#allocation18_spill] sm:$0xff] }
 0x244   :  { %v1477_v57 = vadd.f32 %v9863_v2, %v8837_v62  ;;  %v3556_v47 = vadd.f32 %v3555_v40, %v3541_v21  ;;  %v3512_v60 = vadd.f32 %v3511_v15, %v9104_v24  ;;  %v2699_v62 = vadd.f32 %v9059_v53, %v2472_v1 }
 0x245   :  { %v9049_v5 = vpop.f32.mrf.mxu3  ;;  %v9133_v25 = vadd.f32 %v9867_v11, %v3146_v34  ;;  %v3544_v61 = vmul.f32 %v9121_v31, %v9121_v31  ;;  %v2474_v55 = vadd.f32 %v2439_v0, %v9870_v45  ;;  %v8299_v13 = vmov 128.0  }
 0x246   :  { %9862 = vst [vmem:[#allocation24_spill] sm:$0xff] %v9049_v5  ;;  %v1703_v6 = vadd.f32 %v9868_v18, %v1477_v57  ;;  %v3557_v28 = vadd.f32 %v3556_v47, %v3542_v51  ;;  %v3513_v43 = vadd.f32 %v3512_v60, %v9112_v50  ;;  %8182 = vrcp.f32 %v8299_v13 }
 0x247   :  { %v3435_v4 = vpop.f32.mrf.mxu0 }
 0x248   :  { %v2663_v37 = vpop.f32.mrf.mxu2  ;;  %v3558_v48 = vadd.f32 %v3557_v28, %v3543_v52  ;;  %v3514_v35 = vadd.f32 %v3513_v43, %v9121_v31  ;;  %v2153_v59 = vadd.f32 %v9871_v32, %v1703_v6 }
 0x249   :  { %v2700_v16 = vadd.f32 %v2663_v37, %v2473_v29 }
 0x24a   :  { %v3559_v54 = vadd.f32 %v3558_v48, %v3544_v61  ;;  %v3515_v56 = vadd.f32 %v3514_v35, %v9133_v25 }
 0x24d   :  { %v9063_v5 = vpop.f32.mrf.mxu3  ;;  %v9865_v38 = vld [vmem:[#allocation24_spill] sm:$0xff] }
 0x24e   :  { %v3147_v17 = vadd.f32 %v9865_v38, %v2697_v58  ;;  %v3148_v20 = vadd.f32 %v9063_v5, %v2698_v26  ;;  %v3545_v5 = vmul.f32 %v9133_v25, %v9133_v25 }
 0x24f   :  { %v3438_v37 = vpop.f32.mrf.mxu0 }
 0x250   :  { %v2666_v19 = vpop.f32.mrf.mxu2  ;;  %v9142_v23 = vadd.f32 %v9869_v7, %v3147_v17  ;;  %v9149_v53 = vadd.f32 %v9053_v41, %v3148_v20  ;;  %v2441_v41 = vpop.f32.mrf.mxu1  ;;  %v3560_v46 = vadd.f32 %v3559_v54, %v3545_v5 }
 0x251   :  { %v2701_v12 = vadd.f32 %v2666_v19, %v2474_v55  ;;  %v2475_v15 = vadd.f32 %v2441_v41, %v2153_v59 }
 0x252   :  { %v3546_v8 = vmul.f32 %v9142_v23, %v9142_v23  ;;  %v3516_v58 = vadd.f32 %v3515_v56, %v9142_v23  ;;  %v3547_v9 = vmul.f32 %v9149_v53, %v9149_v53 }
 0x254   :  { %v3561_v0 = vadd.f32 %v3560_v46, %v3546_v8  ;;  %v3517_v2 = vadd.f32 %v3516_v58, %v9149_v53 }
 0x255   :  { %v3111_v30 = vpop.f32.mrf.mxu3 }
 0x256   :  { %v3149_v3 = vadd.f32 %v3111_v30, %v2699_v62  ;;  %v3562_v39 = vadd.f32 %v3561_v0, %v3547_v9  ;;  %v8040_v9 = vld [vmem:[#allocation9 + $0x18] sm:$0xff] }
 0x257   :  { %v3440_v11 = vpop.f32.mrf.mxu0  ;;  %4055 = vmatpush.bf16.msra.mxu1 %v8040_v9  ;;  %v8060_v0 = vld [vmem:[#allocation9 + $0xb8] sm:$0xff] }
 0x258   :  { %v9156_v21 = vadd.f32 %v9071_v10, %v3149_v3  ;;  %v2668_v51 = vpop.f32.mrf.mxu2  ;;  %4791 = vmatpush.bf16.msrb.mxu3 %v8060_v0  ;;  %v8046_v0 = vld [vmem:[#allocation9 + $0x48] sm:$0xff] }
 0x259   :  { %v2702_v17 = vadd.f32 %v2668_v51, %v2475_v15  ;;  %v8076_v51 = vld [vmem:[#allocation9 + $0xf8] sm:$0xff] }
 0x25a   :  { %v3548_v10 = vmul.f32 %v9156_v21, %v9156_v21  ;;  %v3518_v26 = vadd.f32 %v3517_v2, %v9156_v21  ;;  %5017 = vmatpush.bf16.msrb.mxu0 %v8076_v51 }
 0x25c   :  { %v3563_v1 = vadd.f32 %v3562_v39, %v3548_v10  ;;  %v8075_v10 = vld [vmem:[#allocation9 + $0xf0] sm:$0xff]  ;;  %v8052_v39 = vld [vmem:[#allocation9 + $0x78] sm:$0xff] }
 0x25d   :  { %v3113_v42 = vpop.f32.mrf.mxu3  ;;  %4469 = vmatpush.bf16.msrb.mxu2 %v8052_v39 }
 0x25e   :  { %v3150_v27 = vadd.f32 %v3113_v42, %v2700_v16  ;;  %v8183_v42 = vpop.eup %8182  ;;  %5018 = vmatpush.bf16.msrb.mxu0 %v8075_v10 }
 0x25f   :  { %v3529_v44 = vmul.f32 128.0, %v8183_v42  ;;  %vm3533_vm12 = vweird.f32 %v8183_v42 }
 0x260   :  { %v9161_v40 = vadd.f32 %v3435_v4, %v3150_v27 }
 0x261   :  { %v3530_v62 = vsub.f32 1.0, %v3529_v44  ;;  %v3577_v44 = vld [vmem:[%s9834_s2] sm:$0x1] }
 0x262   :  { %v3549_v38 = vmul.f32 %v9161_v40, %v9161_v40  ;;  %v3519_v47 = vadd.f32 %v3518_v26, %v9161_v40  ;;  %v8059_v26 = vld [vmem:[#allocation9 + $0xb0] sm:$0xff] }
 0x263   :  { %v3531_v7 = vmul.f32 %v8183_v42, %v3530_v62  ;;  %4792 = vmatpush.bf16.msrb.mxu3 %v8059_v26  ;;  %v3590_v62 = vld [vmem:[%s9835_s3] sm:$0x1] }
 0x264   :  { %v3564_v19 = vadd.f32 %v3563_v1, %v3549_v38 }
 0x265   :  { %v3116_v30 = vpop.f32.mrf.mxu3  ;;  %v3532_v48 = vadd.f32 %v8183_v42, %v3531_v7  ;;  %v8049_v7 = vld [vmem:[#allocation9 + $0x60] sm:$0xff] }
 0x266   :  { %v3151_v34 = vadd.f32 %v3116_v30, %v2701_v12 }
 0x267   :  { %v9180_v13 = vsel %vm3533_vm12, %v8183_v42, %v3532_v48  ;;  %v8039_v42 = vld [vmem:[#allocation9 + $0x10] sm:$0xff]  ;;  %v8056_v48 = vld [vmem:[#allocation9 + $0x98] sm:$0xff] }
 0x268   :  { %v9166_v57 = vadd.f32 %v3438_v37, %v3151_v34  ;;  %4056 = vmatpush.bf16.msra.mxu1 %v8039_v42 }
 0x26a   :  { %v3550_v60 = vmul.f32 %v9166_v57, %v9166_v57  ;;  %v3520_v18 = vadd.f32 %v3519_v47, %v9166_v57  ;;  %v8074_v47 = vld [vmem:[#allocation9 + $0xe8] sm:$0xff] }
 0x26b   :  { %5019 = vmatpush.bf16.msrb.mxu0 %v8074_v47 }
 0x26c   :  { %v3565_v20 = vadd.f32 %v3564_v19, %v3550_v60  ;;  %v8058_v60 = vld [vmem:[#allocation9 + $0xa8] sm:$0xff] }
 0x26d   :  { %v3118_v4 = vpop.f32.mrf.mxu3  ;;  %4793 = vmatpush.bf16.msrb.mxu3 %v8058_v60 }
 0x26e   :  { %v3152_v52 = vadd.f32 %v3118_v4, %v2702_v17  ;;  %v8051_v17 = vld [vmem:[#allocation9 + $0x70] sm:$0xff]  ;;  %v8038_v4 = vld [vmem:[#allocation9 + $0x8] sm:$0xff] }
 0x26f   :  { %4470 = vmatpush.bf16.msrb.mxu2 %v8051_v17  ;;  %4057 = vmatpush.bf16.msra.mxu1 %v8038_v4 }
 0x270   :  { %v9175_v6 = vadd.f32 %v3440_v11, %v3152_v52  ;;  %v8050_v11 = vld [vmem:[#allocation9 + $0x68] sm:$0xff] }
 0x272   :  { %v3521_v29 = vadd.f32 %v3520_v18, %v9175_v6  ;;  %v3551_v28 = vmul.f32 %v9175_v6, %v9175_v6  ;;  %v8037_v18 = vld [vmem:[#allocation9] sm:$0xff] }
 0x273   :  { %4471 = vmatpush.bf16.msrb.mxu2 %v8050_v11  ;;  %4058 = vmatpush.bf16.msra.mxu1 %v8037_v18 }
 0x274   :  { %v3522_v43 = vrot.slane %v3521_v29, 4  ;;  %v3566_v61 = vadd.f32 %v3565_v20, %v3551_v28  ;;  %v8073_v20 = vld [vmem:[#allocation9 + $0xe0] sm:$0xff] }
 0x275   :  { %5020 = vmatpush.bf16.msrb.mxu0 %v8073_v20 }
 0x276   :  { %v3523_v16 = vadd.f32 %v3522_v43, %v3521_v29  ;;  %v3567_v3 = vrot.slane %v3566_v61, 4  ;;  %v8057_v43 = vld [vmem:[#allocation9 + $0xa0] sm:$0xff] }
 0x277   :  { %4794 = vmatpush.bf16.msrb.mxu3 %v8057_v43  ;;  %4472 = vmatpush.bf16.msrb.mxu2 %v8049_v7  ;;  %v3917_v7 = vld [vmem:[#allocation2 + $0x90] sm:$0xf] }
 0x278   :  { %v3524_v45 = vrot.slane %v3523_v16, 2  ;;  %v3568_v55 = vadd.f32 %v3567_v3, %v3566_v61  ;;  %v8084_v61 = vld [vmem:[#allocation9 + $0x138] sm:$0xff] }
 0x279   :  { %v8072_v3 = vld [vmem:[#allocation9 + $0xd8] sm:$0xff]  ;;  %5467 = vmatpush.bf16.msrb.mxu1 %v8084_v61  ;;  %v8083_v61 = vld [vmem:[#allocation9 + $0x130] sm:$0xff] }
 0x27a   :  { %v3525_v35 = vadd.f32 %v3524_v45, %v3523_v16  ;;  %v3569_v5 = vrot.slane %v3568_v55, 2  ;;  %5021 = vmatpush.bf16.msrb.mxu0 %v8072_v3 }
 0x27b   :  { %4795 = vmatpush.bf16.msrb.mxu3 %v8056_v48 }
 0x27c   :  { %v3526_v12 = vrot.slane %v3525_v35, 1  ;;  %v3570_v27 = vadd.f32 %v3569_v5, %v3568_v55 }
 0x27d   :  { %5468 = vmatpush.bf16.msrb.mxu1 %v8083_v61 }
 0x27e   :  { %v3527_v32 = vadd.f32 %v3526_v12, %v3525_v35  ;;  %v3571_v59 = vrot.slane %v3570_v27, 1  ;;  %v8048_v12 = vld [vmem:[#allocation9 + $0x58] sm:$0xff] }
 0x27f   :  { %4473 = vmatpush.bf16.msrb.mxu2 %v8048_v12  ;;  %v3833_v12 = vld [vmem:[#allocation2 + $0x10] sm:$0xf] }
 0x280   :  { %v3535_v54 = vmul.f32 %v9180_v13, %v3527_v32  ;;  %v3572_v37 = vadd.f32 %v3571_v59, %v3570_v27 }
 0x282   :  { %v3573_v30 = vmul.f32 %v3572_v37, %v9180_v13  ;;  %v3574_v56 = vmul.f32 %v3535_v54, %v3535_v54  ;;  %v8055_v37 = vld [vmem:[#allocation9 + $0x90] sm:$0xff] }
 0x283   :  { %4796 = vmatpush.bf16.msrb.mxu3 %v8055_v37  ;;  %v4117_v37 = vld [vmem:[#allocation2 + $0x4] sm:$0x1] }
 0x284   :  { %v3575_v8 = vsub.f32 %v3573_v30, %v3574_v56 }
 0x286   :  { %v3576_v34 = vmax.f32 %v3575_v8, 0.0 }
 0x288   :  { %v3578_v41 = vadd.f32 1e-05, %v3576_v34 }
 0x28a   :  { %8184 = vrsqrt.f32 %v3578_v41  ;;  %vm3585_vm14 = vweird.f32 %v3578_v41 }
 0x290   :  { %v8185_v46 = vpop.eup %8184 }
 0x291   :  { %v3580_v58 = vmul.f32 %v8185_v46, %v3578_v41  ;;  %vm3586_vm13 = vweird.f32 %v8185_v46  ;;  %v4116_v41 = vld [vmem:[#allocation2] sm:$0xf] }
 0x292   :  { %vm3587_vm15 = vmor %vm3585_vm14, %vm3586_vm13  ;;  %v4152_v10 = vshll.u32 %v4116_v41, 16 }
 0x293   :  { %v3581_v15 = vmul.f32 %v8185_v46, %v3580_v58 }
 0x295   :  { %v3582_v2 = vmul.f32 0.5, %v3581_v15  ;;  %v8054_v15 = vld [vmem:[#allocation9 + $0x88] sm:$0xff] }
 0x296   :  { %4797 = vmatpush.bf16.msrb.mxu3 %v8054_v15  ;;  %v3839_v15 = vld [vmem:[#allocation2 + $0x18] sm:$0xf] }
 0x297   :  { %v3583_v38 = vsub.f32 1.5, %v3582_v2  ;;  %v4149_v2 = vshrl.u32 %v4116_v41, 16  ;;  %v4567_v41 = vld [vmem:[#allocation2 + $0x4] sm:$0x1] }
 0x299   :  { %v3584_v1 = vmul.f32 %v8185_v46, %v3583_v38 }
 0x29b   :  { %v3588_v52 = vsel %vm3587_vm15, %v8185_v46, %v3584_v1  ;;  %v8070_v46 = vld [vmem:[#allocation9 + $0xc8] sm:$0xff]  ;;  %v8069_v1 = vld [vmem:[#allocation9 + $0xc0] sm:$0xff] }
 0x29c   :  { %v3589_v19 = vmul.f32 %v3588_v52, %v3577_v44 }
 0x29e   :  { %v3591_v29 = vmul.f32 %v3589_v19, %v3535_v54  ;;  %v9190_v28 = vperm.slane %v3589_v19, 0  ;;  %v3825_v19 = vld [vmem:[#allocation2 + $0x8] sm:$0xf] }
 0x2a0   :  { %v3592_v16 = vsub.f32 %v3590_v62, %v3591_v29  ;;  %v3611_v45 = vmul.f32 %v9190_v28, %v9175_v6  ;;  %v3596_v35 = vmul.f32 %v9190_v28, %v9021_v14  ;;  %v3597_v5 = vmul.f32 %v9190_v28, %v9066_v33  ;;  %v8071_v6 = vld [vmem:[#allocation9 + $0xd0] sm:$0xff]  ;;  %v8053_v29 = vld [vmem:[#allocation9 + $0x80] sm:$0xff] }
 0x2a1   :  { %v8047_v14 = vld [vmem:[#allocation9 + $0x50] sm:$0xff]  ;;  %5022 = vmatpush.bf16.msrb.mxu0 %v8071_v6  ;;  %v3598_v58 = vmul.f32 %v9190_v28, %v9025_v49  ;;  %v3599_v11 = vmul.f32 %v9190_v28, %v9078_v22  ;;  %4798 = vmatpush.bf16.msrb.mxu3 %v8053_v29 }
 0x2a2   :  { %v9194_v55 = vperm.slane %v3592_v16, 0  ;;  %4474 = vmatpush.bf16.msrb.mxu2 %v8047_v14  ;;  %v3920_v16 = vld [vmem:[#allocation2 + $0x94] sm:$0x1] }
 0x2a4   :  { %v3630_v27 = vadd.f32 %v9194_v55, %v3611_v45  ;;  %v3615_v32 = vadd.f32 %v9194_v55, %v3596_v35  ;;  %v3616_v59 = vadd.f32 %v9194_v55, %v3597_v5  ;;  %v3617_v39 = vadd.f32 %v9194_v55, %v3598_v58  ;;  %v8045_v45 = vld [vmem:[#allocation9 + $0x40] sm:$0xff]  ;;  %v3830_v5 = vld [vmem:[#allocation2 + $0xc] sm:$0x1] }
 0x2a5   :  { %5023 = vmatpush.bf16.msrb.mxu0 %v8070_v46  ;;  %v3618_v35 = vadd.f32 %v9194_v55, %v3599_v11  ;;  %v3845_v11 = vld [vmem:[#allocation2 + $0x20] sm:$0xf] }
 0x2a6   :  { %v3646_v54 = vmax.f32 %v3630_v27, 0.0  ;;  %v3631_v30 = vmax.f32 %v3615_v32, 0.0  ;;  %v3632_v56 = vmax.f32 %v3616_v59, 0.0  ;;  %v3633_v52 = vmax.f32 %v3617_v39, 0.0  ;;  %4475 = vmatpush.bf16.msrb.mxu2 %v8046_v0  ;;  %v3836_v59 = vld [vmem:[#allocation2 + $0x14] sm:$0x1] }
 0x2a8   :  { %v3662_v8 = vpack.c.bf16 %v3646_v54, %v3646_v54  ;;  %v3647_v34 = vpack.c.bf16 %v3631_v30, %v3631_v30  ;;  %v3648_v33 = vpack.c.bf16 %v3632_v56, %v3632_v56  ;;  %v3649_v48 = vpack.c.bf16 %v3633_v52, %v3633_v52  ;;  %v4566_v54 = vld [vmem:[#allocation2] sm:$0xe] }
 0x2a9   :  { %5024 = vmatpush.bf16.msrb.mxu0 %v8069_v1  ;;  %v3634_v56 = vmax.f32 %v3618_v35, 0.0  ;;  %v7503_v52 = vld [vmem:[#allocation2] sm:$0xf] }
 0x2aa   :  { %v3784_v9 = vshrl.u32 %v3662_v8, 16  ;;  %v3664_v51 = vshrl.u32 %v3647_v34, 16  ;;  %v3672_v42 = vshrl.u32 %v3648_v33, 16  ;;  %v3787_v49 = vshll.u32 %v3662_v8, 16  ;;  %4476 = vmatpush.bf16.msrb.mxu2 %v8045_v45 }
 0x2ab   :  { %v3667_v4 = vshll.u32 %v3647_v34, 16  ;;  %v3675_v60 = vshll.u32 %v3648_v33, 16  ;;  %v3680_v30 = vshrl.u32 %v3649_v48, 16  ;;  %v4151_v8 = vrot.slane %v4149_v2, 4 }
 0x2ac   :  { %v3786_v38 = vrot.slane %v3784_v9, 7  ;;  %v3666_v17 = vrot.slane %v3664_v51, 7  ;;  %v3674_v47 = vrot.slane %v3672_v42, 7  ;;  %v4154_v34 = vrot.slane %v4152_v10, 5 }
 0x2ad   :  { %v3682_v46 = vrot.slane %v3680_v30, 7  ;;  %v3683_v58 = vshll.u32 %v3649_v48, 16  ;;  %v3650_v9 = vpack.c.bf16 %v3634_v56, %v3634_v56  ;;  %v4158_v42 = vshll.u32 %v4117_v37, 16 }
 0x2ae   :  { %v3789_v18 = vor.u32 %v3787_v49, %v3786_v38  ;;  %v3790_v62 = vrot.slane %v3786_v38, 4  ;;  %v3669_v20 = vor.u32 %v3667_v4, %v3666_v17  ;;  %v3670_v43 = vrot.slane %v3666_v17, 4  ;;  %v3842_v49 = vld [vmem:[#allocation2 + $0x1c] sm:$0x1] }
 0x2af   :  { %v3677_v3 = vor.u32 %v3675_v60, %v3674_v47  ;;  %v3678_v33 = vrot.slane %v3674_v47, 4  ;;  %v3685_v0 = vor.u32 %v3683_v58, %v3682_v46  ;;  %v3688_v39 = vshrl.u32 %v3650_v9, 16 }
 0x2b0   :  { %v3918_v22 = vsel %vm9208_vm4, %v3789_v18, %v3917_v7  ;;  %v3921_v27 = vsel %vm9214_vm5, %v3790_v62, %v3920_v16  ;;  %v3826_v32 = vsel %vm9208_vm4, %v3669_v20, %v3825_v19  ;;  %v3831_v14 = vsel %vm9214_vm5, %v3670_v43, %v3830_v5 }
 0x2b1   :  { %3922 = vst [vmem:[#allocation2 + $0x94] sm:$0x1] %v3921_v27  ;;  %v3834_v6 = vsel %vm9208_vm4, %v3677_v3, %v3833_v12  ;;  %v3837_v51 = vsel %vm9214_vm5, %v3678_v33, %v3836_v59  ;;  %v3686_v38 = vrot.slane %v3682_v46, 4  ;;  %v7597_v2 = vrot.slane %v4566_v54, 9 }
 0x2b2   :  { %3919 = vst [vmem:[#allocation2 + $0x90] sm:$0xf] %v3918_v22  ;;  %v4632_v10 = vrot.slane %v4567_v41, 5  ;;  %v4155_v17 = vor.u32 %v4154_v34, %v4151_v8  ;;  %v3840_v4 = vsel %vm9208_vm4, %v3685_v0, %v3839_v15  ;;  %v9235_v1 = vrot.slane %v3688_v39, 7 }
 0x2b3   :  { %3827 = vst [vmem:[#allocation2 + $0x8] sm:$0xf] %v3826_v32  ;;  %v3691_v47 = vshll.u32 %v3650_v9, 16  ;;  %v3843_v60 = vsel %vm9214_vm5, %v3686_v38, %v3842_v49  ;;  %v4160_v19 = vrot.slane %v4158_v42, 5  ;;  %v3600_v15 = vmul.f32 %v9190_v28, %v9031_v63  ;;  %v8082_v42 = vld [vmem:[#allocation9 + $0x128] sm:$0xff] }
 0x2b4   :  { %3835 = vst [vmem:[#allocation2 + $0x10] sm:$0xf] %v3834_v6  ;;  %v4633_v61 = vsel %vm8640_vm11, %v7597_v2, %v4632_v10  ;;  %v4156_v48 = vrot.slane %v4155_v17, 4  ;;  %5469 = vmatpush.bf16.msrb.mxu1 %v8082_v42 }
 0x2b5   :  { %3832 = vst [vmem:[#allocation2 + $0xc] sm:$0x1] %v3831_v14  ;;  %v3693_v18 = vor.u32 %v3691_v47, %v9235_v1  ;;  %v4711_v54 = vunpack.c.l.b16 %v4633_v61  ;;  %v3619_v63 = vadd.f32 %v9194_v55, %v3600_v15 }
 0x2b6   :  { %3838 = vst [vmem:[#allocation2 + $0x14] sm:$0x1] %v3837_v51  ;;  %v4161_v33 = vsel %vm8497_vm8, %v4156_v48, %v4160_v19  ;;  %v3601_v51 = vmul.f32 %v9190_v28, %v9096_v36 }
 0x2b7   :  { %3841 = vst [vmem:[#allocation2 + $0x18] sm:$0xf] %v3840_v4  ;;  %v3846_v35 = vsel %vm9208_vm4, %v3693_v18, %v3845_v11 }
 0x2b8   :  { %3844 = vst [vmem:[#allocation2 + $0x1c] sm:$0x1] %v3843_v60  ;;  %v3620_v36 = vadd.f32 %v9194_v55, %v3601_v51 }
 0x2b9   :  { %3847 = vst [vmem:[#allocation2 + $0x20] sm:$0xf] %v3846_v35 }
 0x2ba   :  { %v8029_v62 = vld [vmem:[#allocation2 + $0x4] sm:$0xf0] }
 0x2bb   :  { %v7647_v20 = vld [vmem:[#allocation2 + $0x8] sm:$0xf]  ;;  %v7504_v7 = vor.u32 %v8029_v62, %v7503_v52  ;;  %v8061_v16 = vld [vmem:[#allocation2 + $0xc] sm:$0xf0]  ;;  %v4389_v52 = vunpack.c.l.b16 %v4161_v33 }
 0x2bc   :  { %v4568_v29 = vld [vmem:[#allocation2 + $0x8] sm:$0xe]  ;;  %v7648_v5 = vor.u32 %v8061_v16, %v7647_v20  ;;  %v4569_v12 = vld [vmem:[#allocation2 + $0xc] sm:$0x1]  ;;  %v4570_v56 = vld [vmem:[#allocation2 + $0x10] sm:$0xe] }
 0x2bd   :  { %v7598_v3 = vrot.slane %v4568_v29, 9  ;;  %v4118_v45 = vld [vmem:[#allocation2 + $0x8] sm:$0xf]  ;;  %v4119_v22 = vld [vmem:[#allocation2 + $0xc] sm:$0x1]  ;;  %4059 = vmatmul.bf16.vlgmr.msra.gmra.mxu1 %v7504_v7  ;;  %v4636_v59 = vrot.slane %v4569_v12, 5 }
 0x2be   :  { %v4163_v27 = vshrl.u32 %v4118_v45, 16  ;;  %v4166_v32 = vshll.u32 %v4118_v45, 16  ;;  %v4172_v6 = vshll.u32 %v4119_v22, 16  ;;  %5025 = vmatmul.bf16.vlgmr.msrb.gmra.mxu0 %v7648_v5  ;;  %v4571_v14 = vld [vmem:[#allocation2 + $0x14] sm:$0x1]  ;;  %v7599_v39 = vrot.slane %v4570_v56, 9 }
 0x2bf   :  { %v4637_v8 = vsel %vm8640_vm11, %v7598_v3, %v4636_v59  ;;  %v4572_v58 = vld [vmem:[#allocation2 + $0x18] sm:$0xe]  ;;  %v4573_v9 = vld [vmem:[#allocation2 + $0x1c] sm:$0x1]  ;;  %v4640_v38 = vrot.slane %v4571_v14, 5  ;;  %v3636_v59 = vmax.f32 %v3620_v36, 0.0  ;;  %v3603_v36 = vmul.f32 %v9190_v28, %v9112_v50 }
 0x2c0   :  { %v4165_v37 = vrot.slane %v4163_v27, 4  ;;  %v4168_v30 = vrot.slane %v4166_v32, 5  ;;  %v4712_v41 = vunpack.c.l.b16 %v4637_v8  ;;  %v4174_v0 = vrot.slane %v4172_v6, 5  ;;  %v4120_v2 = vld [vmem:[#allocation2 + $0x10] sm:$0xf] }
 0x2c1   :  { %v7600_v49 = vrot.slane %v4572_v58, 9  ;;  %v4644_v4 = vrot.slane %v4573_v9, 5  ;;  %v4122_v47 = vld [vmem:[#allocation2 + $0x18] sm:$0xf]  ;;  %v4177_v60 = vshrl.u32 %v4120_v2, 16  ;;  %v4180_v18 = vshll.u32 %v4120_v2, 16 }
 0x2c2   :  { %v4169_v46 = vor.u32 %v4168_v30, %v4165_v37  ;;  %v4727_v10 = vpack.c.b16 %v4712_v41, %v4711_v54  ;;  %v7507_v11 = vld [vmem:[#allocation2 + $0x10] sm:$0xf]  ;;  %v8030_v19 = vld [vmem:[#allocation2 + $0x14] sm:$0xf0]  ;;  %v4191_v29 = vshrl.u32 %v4122_v47, 16  ;;  %v9258_v7 = vsel %vm8640_vm11, %v7599_v39, %v4640_v38 }
 0x2c3   :  { %v4179_v20 = vrot.slane %v4177_v60, 4  ;;  %v4121_v16 = vld [vmem:[#allocation2 + $0x14] sm:$0x1]  ;;  %v4182_v3 = vrot.slane %v4180_v18, 5  ;;  %v7508_v45 = vor.u32 %v8030_v19, %v7507_v11  ;;  %v4645_v48 = vsel %vm8640_vm11, %v7600_v49, %v4644_v4  ;;  %v4123_v35 = vld [vmem:[#allocation2 + $0x1c] sm:$0x1] }
 0x2c4   :  { %v4170_v17 = vrot.slane %v4169_v46, 4  ;;  %4799 = vmatmul.bf16.vlgmr.msrb.gmra.mxu3 %v4727_v10  ;;  %v4193_v5 = vrot.slane %v4191_v29, 4  ;;  %v4194_v12 = vshll.u32 %v4122_v47, 16  ;;  %v3635_v32 = vmax.f32 %v3619_v63, 0.0  ;;  %v4124_v6 = vld [vmem:[#allocation2 + $0x20] sm:$0xf] }
 0x2c5   :  { %v4183_v27 = vor.u32 %v4182_v3, %v4179_v20  ;;  %v3848_v54 = vld [vmem:[#allocation2 + $0x24] sm:$0x1]  ;;  %v4713_v37 = vunpack.c.l.b16 %v9258_v7  ;;  %v4186_v30 = vshll.u32 %v4121_v16, 16  ;;  %v3694_v14 = vrot.slane %v9235_v1, 4  ;;  %v7651_v8 = vld [vmem:[#allocation2 + $0x18] sm:$0xf] }
 0x2c6   :  { %v4175_v62 = vsel %vm8497_vm8, %v4170_v17, %v4174_v0  ;;  %v4196_v56 = vrot.slane %v4194_v12, 5  ;;  %v8062_v33 = vld [vmem:[#allocation2 + $0x1c] sm:$0xf0]  ;;  %v4714_v41 = vunpack.c.l.b16 %v4645_v48  ;;  %v4200_v46 = vshll.u32 %v4123_v35, 16  ;;  %v3854_v16 = vld [vmem:[#allocation2 + $0x2c] sm:$0x1] }
 0x2c7   :  { %v4390_v61 = vunpack.c.l.b16 %v4175_v62  ;;  %v3651_v58 = vpack.c.bf16 %v3635_v32, %v3635_v32  ;;  %v3652_v9 = vpack.c.bf16 %v3636_v59, %v3636_v59  ;;  %v4184_v15 = vrot.slane %v4183_v27, 4  ;;  %v3851_v62 = vld [vmem:[#allocation2 + $0x28] sm:$0xf]  ;;  %v3857_v3 = vld [vmem:[#allocation2 + $0x30] sm:$0xf] }
 0x2c8   :  { %v4197_v51 = vor.u32 %v4196_v56, %v4193_v5  ;;  %v3849_v42 = vsel %vm9214_vm5, %v3694_v14, %v3848_v54  ;;  %v4205_v0 = vshrl.u32 %v4124_v6, 16  ;;  %v4208_v49 = vshll.u32 %v4124_v6, 16  ;;  %v3860_v12 = vld [vmem:[#allocation2 + $0x34] sm:$0x1]  ;;  %v4574_v59 = vld [vmem:[#allocation2 + $0x20] sm:$0xe] }
 0x2c9   :  { %v4405_v22 = vpack.c.b16 %v4390_v61, %v4389_v52  ;;  %v3696_v39 = vshrl.u32 %v3651_v58, 16  ;;  %v3704_v38 = vshrl.u32 %v3652_v9, 16  ;;  %3850 = vst [vmem:[#allocation2 + $0x24] sm:$0x1] %v3849_v42  ;;  %v3602_v1 = vmul.f32 %v9190_v28, %v9104_v24  ;;  %v8081_v24 = vld [vmem:[#allocation9 + $0x120] sm:$0xff] }
 0x2ca   :  { %v7652_v2 = vor.u32 %v8062_v33, %v7651_v8  ;;  %v4188_v10 = vrot.slane %v4186_v30, 5  ;;  %v4198_v17 = vrot.slane %v4197_v51, 4  ;;  %v3699_v4 = vshll.u32 %v3651_v58, 16  ;;  %5470 = vmatpush.bf16.msrb.mxu1 %v8081_v24  ;;  %v3863_v42 = vld [vmem:[#allocation2 + $0x38] sm:$0xf] }
 0x2cb   :  { %4477 = vmatmul.bf16.vlgmr.msrb.gmra.mxu2 %v4405_v22  ;;  %v3698_v47 = vrot.slane %v3696_v39, 7  ;;  %v3706_v60 = vrot.slane %v3704_v38, 7  ;;  %v3707_v52 = vshll.u32 %v3652_v9, 16  ;;  %v3621_v11 = vadd.f32 %v9194_v55, %v3602_v1  ;;  %v7511_v1 = vld [vmem:[#allocation2 + $0x20] sm:$0xf] }
 0x2cc   :  { %v4189_v19 = vsel %vm8497_vm8, %v4184_v15, %v4188_v10  ;;  %v4202_v18 = vrot.slane %v4200_v46, 5  ;;  %v4207_v63 = vrot.slane %v4205_v0, 4  ;;  %v4210_v7 = vrot.slane %v4208_v49, 5  ;;  %v3866_v49 = vld [vmem:[#allocation2 + $0x3c] sm:$0x1] }
 0x2cd   :  { %4064 = vmatmul.bf16.gmra.mxu1 %v7508_v45  ;;  %v3701_v20 = vor.u32 %v3699_v4, %v3698_v47  ;;  %v3709_v29 = vor.u32 %v3707_v52, %v3706_v60  ;;  %v3702_v61 = vrot.slane %v3698_v47, 4  ;;  %v3637_v48 = vmax.f32 %v3621_v11, 0.0 }
 0x2ce   :  { %5030 = vmatmul.bf16.gmra.mxu0 %v7652_v2  ;;  %v4203_v45 = vsel %vm8497_vm8, %v4198_v17, %v4202_v18  ;;  %v3622_v35 = vadd.f32 %v9194_v55, %v3603_v36  ;;  %v3710_v5 = vrot.slane %v3706_v60, 4  ;;  %v4728_v32 = vpack.c.b16 %v4714_v41, %v4713_v37 }
 0x2cf   :  { %v3852_v50 = vsel %vm9208_vm4, %v3701_v20, %v3851_v62  ;;  %v3858_v22 = vsel %vm9208_vm4, %v3709_v29, %v3857_v3  ;;  %v3855_v27 = vsel %vm9214_vm5, %v3702_v61, %v3854_v16  ;;  %v3653_v54 = vpack.c.bf16 %v3637_v48, %v3637_v48 }
 0x2d0   :  { %3853 = vst [vmem:[#allocation2 + $0x28] sm:$0xf] %v3852_v50  ;;  %v4575_v6 = vld [vmem:[#allocation2 + $0x24] sm:$0x1]  ;;  %v3861_v30 = vsel %vm9214_vm5, %v3710_v5, %v3860_v12  ;;  %v4391_v56 = vunpack.c.l.b16 %v4189_v19  ;;  %v4392_v14 = vunpack.c.l.b16 %v4203_v45  ;;  %v4211_v8 = vor.u32 %v4210_v7, %v4207_v63  ;;  %v3869_v45 = vld [vmem:[#allocation2 + $0x40] sm:$0xf] }
 0x2d1   :  { %3859 = vst [vmem:[#allocation2 + $0x30] sm:$0xf] %v3858_v22  ;;  %v3638_v33 = vmax.f32 %v3622_v35, 0.0  ;;  %v3712_v46 = vshrl.u32 %v3653_v54, 16  ;;  %v7601_v58 = vrot.slane %v4574_v59, 9  ;;  %v4648_v9 = vrot.slane %v4575_v6, 5 }
 0x2d2   :  { %3856 = vst [vmem:[#allocation2 + $0x2c] sm:$0x1] %v3855_v27  ;;  %v4125_v15 = vld [vmem:[#allocation2 + $0x24] sm:$0x1]  ;;  %v3715_v41 = vshll.u32 %v3653_v54, 16  ;;  %v4406_v0 = vpack.c.b16 %v4392_v14, %v4391_v56  ;;  %v4212_v39 = vrot.slane %v4211_v8, 4  ;;  %v3604_v62 = vmul.f32 %v9190_v28, %v9121_v31 }
 0x2d3   :  { %v3654_v51 = vpack.c.bf16 %v3638_v33, %v3638_v33  ;;  %3862 = vst [vmem:[#allocation2 + $0x34] sm:$0x1] %v3861_v30  ;;  %v3714_v37 = vrot.slane %v3712_v46, 7  ;;  %v4214_v2 = vshll.u32 %v4125_v15, 16  ;;  %v4649_v11 = vsel %vm8640_vm11, %v7601_v58, %v4648_v9  ;;  %v8080_v58 = vld [vmem:[#allocation9 + $0x118] sm:$0xff] }
 0x2d4   :  { %4804 = vmatmul.bf16.gmra.mxu3 %v4728_v32  ;;  %v3623_v12 = vadd.f32 %v9194_v55, %v3604_v62  ;;  %v4715_v32 = vunpack.c.l.b16 %v4649_v11  ;;  %5471 = vmatpush.bf16.msrb.mxu1 %v8080_v58  ;;  %v4132_v58 = vld [vmem:[#allocation2 + $0x50] sm:$0xf] }
 0x2d5   :  { %v3720_v38 = vshrl.u32 %v3654_v51, 16  ;;  %v3717_v10 = vor.u32 %v3715_v41, %v3714_v37  ;;  %v3723_v17 = vshll.u32 %v3654_v51, 16  ;;  %v3718_v4 = vrot.slane %v3714_v37, 4 }
 0x2d6   :  { %v4216_v59 = vrot.slane %v4214_v2, 5  ;;  %v3639_v46 = vmax.f32 %v3623_v12, 0.0 }
 0x2d7   :  { %v8031_v47 = vld [vmem:[#allocation2 + $0x24] sm:$0xf0]  ;;  %v3864_v36 = vsel %vm9208_vm4, %v3717_v10, %v3863_v42  ;;  %v9288_v24 = vrot.slane %v3720_v38, 7  ;;  %v3867_v3 = vsel %vm9214_vm5, %v3718_v4, %v3866_v49  ;;  %v3605_v38 = vmul.f32 %v9190_v28, %v9133_v25 }
 0x2d8   :  { %v7655_v60 = vld [vmem:[#allocation2 + $0x28] sm:$0xf]  ;;  %v8063_v19 = vld [vmem:[#allocation2 + $0x2c] sm:$0xf0]  ;;  %v7512_v20 = vor.u32 %v8031_v47, %v7511_v1  ;;  %3865 = vst [vmem:[#allocation2 + $0x38] sm:$0xf] %v3864_v36  ;;  %v4217_v8 = vsel %vm8497_vm8, %v4212_v39, %v4216_v59 }
 0x2d9   :  { %v4576_v52 = vld [vmem:[#allocation2 + $0x28] sm:$0xe]  ;;  %v4577_v29 = vld [vmem:[#allocation2 + $0x2c] sm:$0x1]  ;;  %v7656_v48 = vor.u32 %v8063_v19, %v7655_v60  ;;  %v3725_v5 = vor.u32 %v3723_v17, %v9288_v24  ;;  %3868 = vst [vmem:[#allocation2 + $0x3c] sm:$0x1] %v3867_v3  ;;  %v4393_v1 = vunpack.c.l.b16 %v4217_v8  ;;  %v3624_v60 = vadd.f32 %v9194_v55, %v3605_v38 }
 0x2da   :  { %v7602_v18 = vrot.slane %v4576_v52, 9  ;;  %v4126_v63 = vld [vmem:[#allocation2 + $0x28] sm:$0xf]  ;;  %v4127_v61 = vld [vmem:[#allocation2 + $0x2c] sm:$0x1]  ;;  %v4652_v35 = vrot.slane %v4577_v29, 5 }
 0x2db   :  { %4482 = vmatmul.bf16.gmra.mxu2 %v4406_v0  ;;  %v4219_v7 = vshrl.u32 %v4126_v63, 16  ;;  %v4222_v16 = vshll.u32 %v4126_v63, 16  ;;  %v4228_v31 = vshll.u32 %v4127_v61, 16  ;;  %v3870_v6 = vsel %vm9208_vm4, %v3725_v5, %v3869_v45  ;;  %v4128_v54 = vld [vmem:[#allocation2 + $0x30] sm:$0xf] }
 0x2dc   :  { %v4653_v27 = vsel %vm8640_vm11, %v7602_v18, %v4652_v35  ;;  %3871 = vst [vmem:[#allocation2 + $0x40] sm:$0xf] %v3870_v6  ;;  %v4233_v14 = vshrl.u32 %v4128_v54, 16  ;;  %v4236_v33 = vshll.u32 %v4128_v54, 16  ;;  %v4578_v41 = vld [vmem:[#allocation2 + $0x30] sm:$0xe]  ;;  %v3655_v0 = vpack.c.bf16 %v3639_v46, %v3639_v46 }
 0x2dd   :  { %4069 = vmatmul.bf16.gmra.mxu1 %v7512_v20  ;;  %v4221_v50 = vrot.slane %v4219_v7, 4  ;;  %v4224_v22 = vrot.slane %v4222_v16, 5  ;;  %v4716_v30 = vunpack.c.l.b16 %v4653_v27  ;;  %v4230_v15 = vrot.slane %v4228_v31, 5  ;;  %v4579_v2 = vld [vmem:[#allocation2 + $0x34] sm:$0x1] }
 0x2de   :  { %5035 = vmatmul.bf16.gmra.mxu0 %v7656_v48  ;;  %v4235_v51 = vrot.slane %v4233_v14, 4  ;;  %v4238_v42 = vrot.slane %v4236_v33, 5  ;;  %v4129_v10 = vld [vmem:[#allocation2 + $0x34] sm:$0x1]  ;;  %v3728_v63 = vshrl.u32 %v3655_v0, 16  ;;  %v7603_v25 = vrot.slane %v4578_v41, 9 }
 0x2df   :  { %v4225_v56 = vor.u32 %v4224_v22, %v4221_v50  ;;  %v4729_v37 = vpack.c.b16 %v4716_v30, %v4715_v32  ;;  %v4580_v39 = vld [vmem:[#allocation2 + $0x38] sm:$0xe]  ;;  %v4656_v36 = vrot.slane %v4579_v2, 5  ;;  %v4242_v20 = vshll.u32 %v4129_v10, 16  ;;  %v7515_v61 = vld [vmem:[#allocation2 + $0x30] sm:$0xf] }
 0x2e0   :  { %v4581_v4 = vld [vmem:[#allocation2 + $0x3c] sm:$0x1]  ;;  %v4130_v47 = vld [vmem:[#allocation2 + $0x38] sm:$0xf]  ;;  %v4239_v11 = vor.u32 %v4238_v42, %v4235_v51  ;;  %v7604_v62 = vrot.slane %v4580_v39, 9  ;;  %v3730_v35 = vrot.slane %v3728_v63, 7 }
 0x2e1   :  { %v4226_v9 = vrot.slane %v4225_v56, 4  ;;  %v4131_v52 = vld [vmem:[#allocation2 + $0x3c] sm:$0x1]  ;;  %v4247_v19 = vshrl.u32 %v4130_v47, 16  ;;  %v4250_v18 = vshll.u32 %v4130_v47, 16  ;;  %v4660_v7 = vrot.slane %v4581_v4, 5 }
 0x2e2   :  { %v8032_v45 = vld [vmem:[#allocation2 + $0x34] sm:$0xf0]  ;;  %v4256_v48 = vshll.u32 %v4131_v52, 16  ;;  %v3731_v5 = vshll.u32 %v3655_v0, 16  ;;  %v4240_v22 = vrot.slane %v4239_v11, 4  ;;  %v3640_v27 = vmax.f32 %v3624_v60, 0.0 }
 0x2e3   :  { %v4231_v49 = vsel %vm8497_vm8, %v4226_v9, %v4230_v15  ;;  %v4249_v16 = vrot.slane %v4247_v19, 4  ;;  %v4252_v3 = vrot.slane %v4250_v18, 5  ;;  %v7659_v12 = vld [vmem:[#allocation2 + $0x38] sm:$0xf]  ;;  %v8064_v50 = vld [vmem:[#allocation2 + $0x3c] sm:$0xf0]  ;;  %v4657_v59 = vsel %vm8640_vm11, %v7603_v25, %v4656_v36 }
 0x2e4   :  { %4809 = vmatmul.bf16.gmra.mxu3 %v4729_v37  ;;  %v4394_v17 = vunpack.c.l.b16 %v4231_v49  ;;  %v3875_v32 = vld [vmem:[#allocation2 + $0x58] sm:$0xf]  ;;  %v4244_v6 = vrot.slane %v4242_v20, 5  ;;  %v3733_v54 = vor.u32 %v3731_v5, %v3730_v35  ;;  %v3734_v30 = vrot.slane %v3730_v35, 4  ;;  %v3878_v56 = vld [vmem:[#allocation2 + $0x5c] sm:$0x1] }
 0x2e5   :  { %v4253_v31 = vor.u32 %v4252_v3, %v4249_v16  ;;  %v7516_v14 = vor.u32 %v8032_v45, %v7515_v61  ;;  %v4661_v8 = vsel %vm8640_vm11, %v7604_v62, %v4660_v7  ;;  %v3656_v46 = vpack.c.bf16 %v3640_v27, %v3640_v27  ;;  %v4582_v41 = vld [vmem:[#allocation2 + $0x50] sm:$0xe]  ;;  %v4583_v49 = vld [vmem:[#allocation2 + $0x54] sm:$0x1] }
 0x2e6   :  { %v4407_v29 = vpack.c.b16 %v4394_v17, %v4393_v1  ;;  %v7660_v9 = vor.u32 %v8064_v50, %v7659_v12  ;;  %v4258_v15 = vrot.slane %v4256_v48, 5  ;;  %v3876_v51 = vsel %vm9208_vm4, %v3733_v54, %v3875_v32  ;;  %v8079_v17 = vld [vmem:[#allocation9 + $0x110] sm:$0xff] }
 0x2e7   :  { %v4254_v33 = vrot.slane %v4253_v31, 4  ;;  %v3879_v37 = vsel %vm9214_vm5, %v3734_v30, %v3878_v56  ;;  %v4717_v42 = vunpack.c.l.b16 %v4657_v59  ;;  %v4245_v0 = vsel %vm8497_vm8, %v4240_v22, %v4244_v6  ;;  %3877 = vst [vmem:[#allocation2 + $0x58] sm:$0xf] %v3876_v51  ;;  %5472 = vmatpush.bf16.msrb.mxu1 %v8079_v17  ;;  %v4133_v25 = vld [vmem:[#allocation2 + $0x54] sm:$0x1] }
 0x2e8   :  { %v3736_v38 = vshrl.u32 %v3656_v46, 16  ;;  %v4718_v1 = vunpack.c.l.b16 %v4661_v8  ;;  %3880 = vst [vmem:[#allocation2 + $0x5c] sm:$0x1] %v3879_v37  ;;  %v4261_v39 = vshrl.u32 %v4132_v58, 16  ;;  %v4264_v10 = vshll.u32 %v4132_v58, 16 }
 0x2e9   :  { %v4259_v2 = vsel %vm8497_vm8, %v4254_v33, %v4258_v15  ;;  %v3739_v47 = vshll.u32 %v3656_v46, 16  ;;  %v3606_v60 = vmul.f32 %v9190_v28, %v9142_v23  ;;  %v3607_v52 = vmul.f32 %v9190_v28, %v9149_v53  ;;  %v3884_v23 = vld [vmem:[#allocation2 + $0x64] sm:$0x1]  ;;  %v7519_v12 = vld [vmem:[#allocation2 + $0x50] sm:$0xf] }
 0x2ea   :  { %v3738_v4 = vrot.slane %v3736_v38, 7  ;;  %v4395_v11 = vunpack.c.l.b16 %v4245_v0  ;;  %v7605_v19 = vrot.slane %v4582_v41, 9  ;;  %v4664_v18 = vrot.slane %v4583_v49, 5 }
 0x2eb   :  { %4487 = vmatmul.bf16.gmra.mxu2 %v4407_v29  ;;  %v3625_v36 = vadd.f32 %v9194_v55, %v3606_v60  ;;  %v3626_v62 = vadd.f32 %v9194_v55, %v3607_v52  ;;  %v3881_v29 = vld [vmem:[#allocation2 + $0x60] sm:$0xf]  ;;  %v4730_v61 = vpack.c.b16 %v4718_v1, %v4717_v42  ;;  %v4396_v7 = vunpack.c.l.b16 %v4259_v2  ;;  %v3887_v2 = vld [vmem:[#allocation2 + $0x68] sm:$0xf] }
 0x2ec   :  { %v3741_v63 = vor.u32 %v3739_v47, %v3738_v4  ;;  %v3742_v20 = vrot.slane %v3738_v4, 4  ;;  %v4263_v16 = vrot.slane %v4261_v39, 4  ;;  %v4266_v3 = vrot.slane %v4264_v10, 5  ;;  %v3890_v47 = vld [vmem:[#allocation2 + $0x6c] sm:$0x1] }
 0x2ed   :  { %4074 = vmatmul.bf16.gmra.mxu1 %v7516_v14  ;;  %v3641_v45 = vmax.f32 %v3625_v36, 0.0  ;;  %v3642_v48 = vmax.f32 %v3626_v62, 0.0  ;;  %v4270_v35 = vshll.u32 %v4133_v25, 16  ;;  %v9331_v31 = vsel %vm8640_vm11, %v7605_v19, %v4664_v18 }
 0x2ee   :  { %5040 = vmatmul.bf16.gmra.mxu0 %v7660_v9  ;;  %v3882_v53 = vsel %vm9208_vm4, %v3741_v63, %v3881_v29  ;;  %v3885_v5 = vsel %vm9214_vm5, %v3742_v20, %v3884_v23  ;;  %v4584_v50 = vld [vmem:[#allocation2 + $0x58] sm:$0xe]  ;;  %v4408_v6 = vpack.c.b16 %v4396_v7, %v4395_v11  ;;  %v4267_v56 = vor.u32 %v4266_v3, %v4263_v16  ;;  %v3893_v63 = vld [vmem:[#allocation2 + $0x70] sm:$0xf] }
 0x2ef   :  { %3883 = vst [vmem:[#allocation2 + $0x60] sm:$0xf] %v3882_v53  ;;  %v4585_v22 = vld [vmem:[#allocation2 + $0x5c] sm:$0x1]  ;;  %v4134_v27 = vld [vmem:[#allocation2 + $0x58] sm:$0xf]  ;;  %v3657_v32 = vpack.c.bf16 %v3641_v45, %v3641_v45  ;;  %v3658_v59 = vpack.c.bf16 %v3642_v48, %v3642_v48  ;;  %v3608_v4 = vmul.f32 %v9190_v28, %v9156_v21  ;;  %v4719_v16 = vunpack.c.l.b16 %v9331_v31 }
 0x2f0   :  { %v8033_v54 = vld [vmem:[#allocation2 + $0x54] sm:$0xf0]  ;;  %v4135_v30 = vld [vmem:[#allocation2 + $0x5c] sm:$0x1]  ;;  %v4275_v14 = vshrl.u32 %v4134_v27, 16  ;;  %v4278_v8 = vshll.u32 %v4134_v27, 16  ;;  %v3609_v23 = vmul.f32 %v9190_v28, %v9161_v40 }
 0x2f1   :  { %v7606_v33 = vrot.slane %v4584_v50, 9  ;;  %v4668_v46 = vrot.slane %v4585_v22, 5  ;;  %v3744_v58 = vshrl.u32 %v3657_v32, 16  ;;  %v3752_v9 = vshrl.u32 %v3658_v59, 16  ;;  %3886 = vst [vmem:[#allocation2 + $0x64] sm:$0x1] %v3885_v5 }
 0x2f2   :  { %v4272_v15 = vrot.slane %v4270_v35, 5  ;;  %v4277_v51 = vrot.slane %v4275_v14, 4  ;;  %v4280_v37 = vrot.slane %v4278_v8, 5  ;;  %v4284_v41 = vshll.u32 %v4135_v30, 16  ;;  %v7663_v42 = vld [vmem:[#allocation2 + $0x58] sm:$0xf] }
 0x2f3   :  { %v3746_v0 = vrot.slane %v3744_v58, 7  ;;  %v3747_v38 = vshll.u32 %v3657_v32, 16  ;;  %v3754_v49 = vrot.slane %v3752_v9, 7  ;;  %v3755_v1 = vshll.u32 %v3658_v59, 16  ;;  %v8078_v35 = vld [vmem:[#allocation9 + $0x108] sm:$0xff]  ;;  %v8116_v22 = vld [vmem:[#allocation9 + $0x1f8] sm:$0xff] }
 0x2f4   :  { %4814 = vmatmul.bf16.gmra.mxu3 %v4730_v61  ;;  %v7520_v39 = vor.u32 %v8033_v54, %v7519_v12  ;;  %v4268_v10 = vrot.slane %v4267_v56, 4  ;;  %v4281_v17 = vor.u32 %v4280_v37, %v4277_v51  ;;  %v4669_v52 = vsel %vm8640_vm11, %v7606_v33, %v4668_v46  ;;  %v3896_v27 = vld [vmem:[#allocation2 + $0x74] sm:$0x1]  ;;  %5473 = vmatpush.bf16.msrb.mxu1 %v8078_v35 }
 0x2f5   :  { %v3749_v11 = vor.u32 %v3747_v38, %v3746_v0  ;;  %v3757_v19 = vor.u32 %v3755_v1, %v3754_v49  ;;  %v3750_v18 = vrot.slane %v3746_v0, 4  ;;  %v3627_v20 = vadd.f32 %v9194_v55, %v3608_v4  ;;  %6465 = vmatpush.bf16.msra.mxu0 %v8116_v22  ;;  %v8115_v9 = vld [vmem:[#allocation9 + $0x1f0] sm:$0xff]  ;;  %v3902_v22 = vld [vmem:[#allocation2 + $0x7c] sm:$0x1] }
 0x2f6   :  { %v8065_v60 = vld [vmem:[#allocation2 + $0x5c] sm:$0xf0]  ;;  %v4282_v36 = vrot.slane %v4281_v17, 4  ;;  %v4286_v29 = vrot.slane %v4284_v41, 5  ;;  %v4720_v3 = vunpack.c.l.b16 %v4669_v52  ;;  %v4273_v53 = vsel %vm8497_vm8, %v4268_v10, %v4272_v15  ;;  %v8108_v15 = vld [vmem:[#allocation9 + $0x1b8] sm:$0xff] }
 0x2f7   :  { %v7664_v25 = vor.u32 %v8065_v60, %v7663_v42  ;;  %v4136_v62 = vld [vmem:[#allocation2 + $0x60] sm:$0xf]  ;;  %v3888_v61 = vsel %vm9208_vm4, %v3749_v11, %v3887_v2  ;;  %v3894_v21 = vsel %vm9208_vm4, %v3757_v19, %v3893_v63  ;;  %v3891_v7 = vsel %vm9214_vm5, %v3750_v18, %v3890_v47  ;;  %6015 = vmatpush.bf16.msra.mxu3 %v8108_v15  ;;  %v8114_v63 = vld [vmem:[#allocation9 + $0x1e8] sm:$0xff] }
 0x2f8   :  { %3889 = vst [vmem:[#allocation2 + $0x68] sm:$0xf] %v3888_v61  ;;  %v4287_v45 = vsel %vm8497_vm8, %v4282_v36, %v4286_v29  ;;  %v4289_v48 = vshrl.u32 %v4136_v62, 16  ;;  %v4292_v5 = vshll.u32 %v4136_v62, 16  ;;  %v3643_v12 = vmax.f32 %v3627_v20, 0.0  ;;  %v8107_v61 = vld [vmem:[#allocation9 + $0x1b0] sm:$0xff] }
 0x2f9   :  { %3895 = vst [vmem:[#allocation2 + $0x70] sm:$0xf] %v3894_v21  ;;  %v3628_v50 = vadd.f32 %v9194_v55, %v3609_v23  ;;  %v3758_v31 = vrot.slane %v3754_v49, 4  ;;  %v4731_v32 = vpack.c.b16 %v4720_v3, %v4719_v16  ;;  %v4586_v40 = vld [vmem:[#allocation2 + $0x60] sm:$0xe]  ;;  %v4397_v30 = vunpack.c.l.b16 %v4273_v53  ;;  %6466 = vmatpush.bf16.msra.mxu0 %v8115_v9  ;;  %v8092_v53 = vld [vmem:[#allocation9 + $0x178] sm:$0xff] }
 0x2fa   :  { %3892 = vst [vmem:[#allocation2 + $0x6c] sm:$0x1] %v3891_v7  ;;  %v4587_v59 = vld [vmem:[#allocation2 + $0x64] sm:$0x1]  ;;  %v4398_v56 = vunpack.c.l.b16 %v4287_v45  ;;  %v4291_v8 = vrot.slane %v4289_v48, 4  ;;  %v4294_v46 = vrot.slane %v4292_v5, 5  ;;  %5789 = vmatpush.bf16.msra.mxu2 %v8092_v53 }
 0x2fb   :  { %4492 = vmatmul.bf16.gmra.mxu2 %v4408_v6  ;;  %v3659_v6 = vpack.c.bf16 %v3643_v12, %v3643_v12  ;;  %v3644_v54 = vmax.f32 %v3628_v50, 0.0  ;;  %v9352_v14 = vld [vmem:[#allocation2 + $0x64] sm:$0x1]  ;;  %v3897_v33 = vsel %vm9214_vm5, %v3758_v31, %v3896_v27  ;;  %v7523_v51 = vld [vmem:[#allocation2 + $0x60] sm:$0xf]  ;;  %v7607_v41 = vrot.slane %v4586_v40, 9  ;;  %6016 = vmatpush.bf16.msra.mxu3 %v8107_v61 }
 0x2fc   :  { %3898 = vst [vmem:[#allocation2 + $0x74] sm:$0x1] %v3897_v33  ;;  %v4672_v42 = vrot.slane %v4587_v59, 5  ;;  %v4298_v2 = vshll.u32 %v9352_v14, 16  ;;  %v4295_v11 = vor.u32 %v4294_v46, %v4291_v8  ;;  %v3899_v45 = vld [vmem:[#allocation2 + $0x78] sm:$0xf] }
 0x2fd   :  { %4079 = vmatmul.bf16.gmra.mxu1 %v7520_v39  ;;  %v3760_v58 = vshrl.u32 %v3659_v6, 16  ;;  %v3660_v0 = vpack.c.bf16 %v3644_v54, %v3644_v54  ;;  %v4409_v39 = vpack.c.b16 %v4398_v56, %v4397_v30  ;;  %v3763_v18 = vshll.u32 %v3659_v6, 16  ;;  %6467 = vmatpush.bf16.msra.mxu0 %v8114_v63  ;;  %v8113_v50 = vld [vmem:[#allocation9 + $0x1e0] sm:$0xff]  ;;  %v8106_v59 = vld [vmem:[#allocation9 + $0x1a8] sm:$0xff]  ;;  %v8111_v53 = vld [vmem:[#allocation9 + $0x1d0] sm:$0xff] }
 0x2fe   :  { %5045 = vmatmul.bf16.gmra.mxu0 %v7664_v25  ;;  %v4673_v36 = vsel %vm8640_vm11, %v7607_v41, %v4672_v42  ;;  %v4296_v27 = vrot.slane %v4295_v11, 4  ;;  %v3905_v6 = vld [vmem:[#allocation2 + $0x80] sm:$0xf]  ;;  %v4300_v33 = vrot.slane %v4298_v2, 5  ;;  %v8091_v41 = vld [vmem:[#allocation9 + $0x170] sm:$0xff]  ;;  %v8112_v42 = vld [vmem:[#allocation9 + $0x1d8] sm:$0xff] }
 0x2ff   :  { %v4588_v37 = vld [vmem:[#allocation2 + $0x68] sm:$0xe]  ;;  %v3762_v19 = vrot.slane %v3760_v58, 7  ;;  %v3768_v29 = vshrl.u32 %v3660_v0, 16  ;;  %v3771_v5 = vshll.u32 %v3660_v0, 16  ;;  %v4721_v54 = vunpack.c.l.b16 %v4673_v36  ;;  %v8077_v9 = vld [vmem:[#allocation9 + $0x100] sm:$0xff]  ;;  %6017 = vmatpush.bf16.msra.mxu3 %v8106_v59  ;;  %5790 = vmatpush.bf16.msra.mxu2 %v8091_v41 }
 0x300   :  { %v8034_v38 = vld [vmem:[#allocation2 + $0x64] sm:$0xf0]  ;;  %v7608_v49 = vrot.slane %v4588_v37, 9  ;;  %v8066_v25 = vld [vmem:[#allocation2 + $0x6c] sm:$0xf0]  ;;  %v3610_v37 = vmul.f32 %v9190_v28, %v9166_v57  ;;  %v8105_v0 = vld [vmem:[#allocation9 + $0x1a0] sm:$0xff]  ;;  %5474 = vmatpush.bf16.msrb.mxu1 %v8077_v9 }
 0x301   :  { %v4138_v1 = vld [vmem:[#allocation2 + $0x68] sm:$0xf]  ;;  %v4589_v10 = vld [vmem:[#allocation2 + $0x6c] sm:$0x1]  ;;  %v7524_v21 = vor.u32 %v8034_v38, %v7523_v51  ;;  %v3765_v3 = vor.u32 %v3763_v18, %v3762_v19  ;;  %v4140_v23 = vld [vmem:[#allocation2 + $0x70] sm:$0xf]  ;;  %6468 = vmatpush.bf16.msra.mxu0 %v8113_v50 }
 0x302   :  { %v4139_v17 = vld [vmem:[#allocation2 + $0x6c] sm:$0x1]  ;;  %v4303_v4 = vshrl.u32 %v4138_v1, 16  ;;  %v4306_v47 = vshll.u32 %v4138_v1, 16  ;;  %v7667_v60 = vld [vmem:[#allocation2 + $0x68] sm:$0xf] }
 0x303   :  { %v4676_v52 = vrot.slane %v4589_v10, 5  ;;  %v4312_v16 = vshll.u32 %v4139_v17, 16  ;;  %v3770_v35 = vrot.slane %v3768_v29, 7  ;;  %v3766_v12 = vrot.slane %v3762_v19, 4  ;;  %v3908_v38 = vld [vmem:[#allocation2 + $0x84] sm:$0x1]  ;;  %6018 = vmatpush.bf16.msra.mxu3 %v8105_v0 }
 0x304   :  { %4819 = vmatmul.bf16.gmra.mxu3 %v4731_v32  ;;  %v4305_v62 = vrot.slane %v4303_v4, 4  ;;  %v4308_v20 = vrot.slane %v4306_v47, 5  ;;  %v7668_v31 = vor.u32 %v8066_v25, %v7667_v60  ;;  %v3900_v32 = vsel %vm9208_vm4, %v3765_v3, %v3899_v45  ;;  %v4590_v10 = vld [vmem:[#allocation2 + $0x70] sm:$0xe]  ;;  %v4591_v17 = vld [vmem:[#allocation2 + $0x74] sm:$0x1] }
 0x305   :  { %v4677_v7 = vsel %vm8640_vm11, %v7608_v49, %v4676_v52  ;;  %v4317_v40 = vshrl.u32 %v4140_v23, 16  ;;  %3901 = vst [vmem:[#allocation2 + $0x78] sm:$0xf] %v3900_v32  ;;  %v3773_v56 = vor.u32 %v3771_v5, %v3770_v35  ;;  %v3903_v14 = vsel %vm9214_vm5, %v3766_v12, %v3902_v22  ;;  %v8090_v57 = vld [vmem:[#allocation9 + $0x168] sm:$0xff]  ;;  %v4141_v47 = vld [vmem:[#allocation2 + $0x74] sm:$0x1]  ;;  %6469 = vmatpush.bf16.msra.mxu0 %v8112_v42 }
 0x306   :  { %v4309_v48 = vor.u32 %v4308_v20, %v4305_v62  ;;  %v4722_v8 = vunpack.c.l.b16 %v4677_v7  ;;  %v4314_v46 = vrot.slane %v4312_v16, 5  ;;  %3904 = vst [vmem:[#allocation2 + $0x7c] sm:$0x1] %v3903_v14  ;;  %v4320_v58 = vshll.u32 %v4140_v23, 16  ;;  %v7527_v62 = vld [vmem:[#allocation2 + $0x70] sm:$0xf]  ;;  %5791 = vmatpush.bf16.msra.mxu2 %v8090_v57 }
 0x307   :  { %v3906_v15 = vsel %vm9208_vm4, %v3773_v56, %v3905_v6  ;;  %v4319_v51 = vrot.slane %v4317_v40, 4  ;;  %v4301_v49 = vsel %vm8497_vm8, %v4296_v27, %v4300_v33  ;;  %v3629_v4 = vadd.f32 %v9194_v55, %v3610_v37  ;;  %v8104_v50 = vld [vmem:[#allocation9 + $0x198] sm:$0xff]  ;;  %v8103_v56 = vld [vmem:[#allocation9 + $0x190] sm:$0xff]  ;;  %v3911_v14 = vld [vmem:[#allocation2 + $0x88] sm:$0xf] }
 0x308   :  { %v4310_v30 = vrot.slane %v4309_v48, 4  ;;  %3907 = vst [vmem:[#allocation2 + $0x80] sm:$0xf] %v3906_v15  ;;  %v4322_v2 = vrot.slane %v4320_v58, 5  ;;  %v4732_v28 = vpack.c.b16 %v4722_v8, %v4721_v54  ;;  %v4399_v52 = vunpack.c.l.b16 %v4301_v49  ;;  %6019 = vmatpush.bf16.msra.mxu3 %v8104_v50  ;;  %v8089_v54 = vld [vmem:[#allocation9 + $0x160] sm:$0xff]  ;;  %v8088_v0 = vld [vmem:[#allocation9 + $0x158] sm:$0xff] }
 0x309   :  { %v3645_v18 = vmax.f32 %v3629_v4, 0.0  ;;  %v7609_v25 = vrot.slane %v4590_v10, 9  ;;  %v4680_v36 = vrot.slane %v4591_v17, 5  ;;  %v4326_v61 = vshll.u32 %v4141_v47, 16  ;;  %6470 = vmatpush.bf16.msra.mxu0 %v8111_v53  ;;  %v3914_v15 = vld [vmem:[#allocation2 + $0x8c] sm:$0x1] }
 0x30a   :  { %v4315_v1 = vsel %vm8497_vm8, %v4310_v30, %v4314_v46  ;;  %v4323_v19 = vor.u32 %v4322_v2, %v4319_v51  ;;  %v8110_v30 = vld [vmem:[#allocation9 + $0x1c8] sm:$0xff]  ;;  %5792 = vmatpush.bf16.msra.mxu2 %v8089_v54 }
 0x30b   :  { %4497 = vmatmul.bf16.gmra.mxu2 %v4409_v39  ;;  %v3774_v39 = vrot.slane %v3770_v35, 4  ;;  %v4400_v11 = vunpack.c.l.b16 %v4315_v1  ;;  %v4328_v40 = vrot.slane %v4326_v61, 5  ;;  %v4681_v33 = vsel %vm8640_vm11, %v7609_v25, %v4680_v36  ;;  %v5114_v10 = vld [vmem:[#allocation2 + $0x8] sm:$0xf]  ;;  %v8087_v36 = vld [vmem:[#allocation9 + $0x150] sm:$0xff] }
 0x30c   :  { %v4592_v63 = vld [vmem:[#allocation2 + $0x78] sm:$0xe]  ;;  %v4324_v35 = vrot.slane %v4323_v19, 4  ;;  %v4723_v17 = vunpack.c.l.b16 %v4681_v33  ;;  %6020 = vmatpush.bf16.msra.mxu3 %v8103_v56  ;;  %v5147_v25 = vshrl.u32 %v5114_v10, 16  ;;  %v5150_v26 = vshll.u32 %v5114_v10, 16  ;;  %v8086_v50 = vld [vmem:[#allocation9 + $0x148] sm:$0xff] }
 0x30d   :  { %4084 = vmatmul.bf16.gmra.mxu1 %v7524_v21  ;;  %v3909_v60 = vsel %vm9214_vm5, %v3774_v39, %v3908_v38  ;;  %v4593_v55 = vld [vmem:[#allocation2 + $0x7c] sm:$0x1]  ;;  %v7610_v20 = vrot.slane %v4592_v63, 9  ;;  %v4142_v29 = vld [vmem:[#allocation2 + $0x78] sm:$0xf]  ;;  %v3661_v21 = vpack.c.bf16 %v3645_v18, %v3645_v18  ;;  %v4410_v45 = vpack.c.b16 %v4400_v11, %v4399_v52  ;;  %6471 = vmatpush.bf16.msra.mxu0 %v8110_v30  ;;  %v8109_v39 = vld [vmem:[#allocation9 + $0x1c0] sm:$0xff] }
 0x30e   :  { %5050 = vmatmul.bf16.gmra.mxu0 %v7668_v31  ;;  %3910 = vst [vmem:[#allocation2 + $0x84] sm:$0x1] %v3909_v60  ;;  %v4684_v7 = vrot.slane %v4593_v55, 5  ;;  %v4143_v16 = vld [vmem:[#allocation2 + $0x7c] sm:$0x1]  ;;  %v4331_v3 = vshrl.u32 %v4142_v29, 16  ;;  %v4329_v51 = vsel %vm8497_vm8, %v4324_v35, %v4328_v40  ;;  %5793 = vmatpush.bf16.msra.mxu2 %v8088_v0 }
 0x30f   :  { %v4334_v23 = vshll.u32 %v4142_v29, 16  ;;  %v8035_v48 = vld [vmem:[#allocation2 + $0x74] sm:$0xf0]  ;;  %v4340_v5 = vshll.u32 %v4143_v16, 16  ;;  %v3776_v12 = vshrl.u32 %v3661_v21, 16  ;;  %v3779_v6 = vshll.u32 %v3661_v21, 16 }
 0x310   :  { %v7671_v22 = vld [vmem:[#allocation2 + $0x78] sm:$0xf]  ;;  %v8067_v31 = vld [vmem:[#allocation2 + $0x7c] sm:$0xf0]  ;;  %v4333_v27 = vrot.slane %v4331_v3, 4  ;;  %v7528_v8 = vor.u32 %v8035_v48, %v7527_v62  ;;  %v4685_v46 = vsel %vm8640_vm11, %v7610_v20, %v4684_v7  ;;  %v8102_v60 = vld [vmem:[#allocation9 + $0x188] sm:$0xff]  ;;  %v4401_v63 = vunpack.c.l.b16 %v4329_v51 }
 0x311   :  { %v4336_v32 = vrot.slane %v4334_v23, 5  ;;  %v3778_v59 = vrot.slane %v3776_v12, 7  ;;  %v4144_v9 = vld [vmem:[#allocation2 + $0x80] sm:$0xf]  ;;  %v4342_v37 = vrot.slane %v4340_v5, 5  ;;  %v7672_v38 = vor.u32 %v8067_v31, %v7671_v22  ;;  %v8124_v18 = vld [vmem:[#allocation9 + $0x238] sm:$0xff]  ;;  %6472 = vmatpush.bf16.msra.mxu0 %v8109_v39  ;;  %6021 = vmatpush.bf16.msra.mxu3 %v8102_v60 }
 0x312   :  { %v4345_v1 = vshrl.u32 %v4144_v9, 16  ;;  %v4348_v2 = vshll.u32 %v4144_v9, 16  ;;  %v4724_v4 = vunpack.c.l.b16 %v4685_v46  ;;  %v4594_v47 = vld [vmem:[#allocation2 + $0x80] sm:$0xe]  ;;  %v5116_v52 = vld [vmem:[#allocation2 + $0x10] sm:$0xf]  ;;  %6787 = vmatpush.bf16.msra.mxu1 %v8124_v18  ;;  %5794 = vmatpush.bf16.msra.mxu2 %v8087_v36 }
 0x313   :  { %v4337_v58 = vor.u32 %v4336_v32, %v4333_v27  ;;  %v3781_v41 = vor.u32 %v3779_v6, %v3778_v59  ;;  %v3782_v42 = vrot.slane %v3778_v59, 4  ;;  %v5161_v20 = vshrl.u32 %v5116_v52, 16  ;;  %v8101_v23 = vld [vmem:[#allocation9 + $0x180] sm:$0xff]  ;;  %v6112_v5 = vld [vmem:[#allocation2 + $0x10] sm:$0xf] }
 0x314   :  { %4824 = vmatmul.bf16.gmra.mxu3 %v4732_v28  ;;  %v4347_v62 = vrot.slane %v4345_v1, 4  ;;  %v4350_v55 = vrot.slane %v4348_v2, 5  ;;  %v5164_v29 = vshll.u32 %v5116_v52, 16  ;;  %v4733_v61 = vpack.c.b16 %v4724_v4, %v4723_v17  ;;  %v5115_v12 = vld [vmem:[#allocation2 + $0xc] sm:$0x1]  ;;  %v8085_v2 = vld [vmem:[#allocation9 + $0x140] sm:$0xff] }
 0x315   :  { %v4338_v49 = vrot.slane %v4337_v58, 4  ;;  %v3912_v57 = vsel %vm9208_vm4, %v3781_v41, %v3911_v14  ;;  %v3915_v28 = vsel %vm9214_vm5, %v3782_v42, %v3914_v15  ;;  %v4595_v19 = vld [vmem:[#allocation2 + $0x84] sm:$0x1]  ;;  %v7611_v7 = vrot.slane %v4594_v47, 9  ;;  %v5117_v27 = vld [vmem:[#allocation2 + $0x14] sm:$0x1]  ;;  %6022 = vmatpush.bf16.msra.mxu3 %v8101_v23 }
 0x316   :  { %3913 = vst [vmem:[#allocation2 + $0x88] sm:$0xf] %v3912_v57  ;;  %v4688_v16 = vrot.slane %v4595_v19, 5  ;;  %v4145_v3 = vld [vmem:[#allocation2 + $0x84] sm:$0x1]  ;;  %v5149_v53 = vrot.slane %v5147_v25, 4  ;;  %v4351_v22 = vor.u32 %v4350_v55, %v4347_v62  ;;  %5795 = vmatpush.bf16.msra.mxu2 %v8086_v50 }
 0x317   :  { %v4343_v11 = vsel %vm8497_vm8, %v4338_v49, %v4342_v37  ;;  %3916 = vst [vmem:[#allocation2 + $0x8c] sm:$0x1] %v3915_v28  ;;  %v5163_v48 = vrot.slane %v5161_v20, 4  ;;  %v5166_v35 = vrot.slane %v5164_v29, 5  ;;  %v4354_v31 = vshll.u32 %v4145_v3, 16  ;;  %v8123_v50 = vld [vmem:[#allocation9 + $0x230] sm:$0xff] }
 0x318   :  { %v4402_v21 = vunpack.c.l.b16 %v4343_v11  ;;  %v9390_v40 = vsel %vm8640_vm11, %v7611_v7, %v4688_v16  ;;  %v6114_v59 = vld [vmem:[#allocation2 + $0x18] sm:$0xf]  ;;  %v6145_v6 = vshrl.u32 %v6112_v5, 16  ;;  %v6148_v54 = vshll.u32 %v6112_v5, 16  ;;  %v7531_v56 = vld [vmem:[#allocation2 + $0x80] sm:$0xf]  ;;  %6788 = vmatpush.bf16.msra.mxu1 %v8123_v50 }
 0x319   :  { %v5156_v46 = vshll.u32 %v5115_v12, 16  ;;  %v5167_v58 = vor.u32 %v5166_v35, %v5163_v48  ;;  %v8068_v9 = vld [vmem:[#allocation2 + $0x8c] sm:$0xf0]  ;;  %v5170_v49 = vshll.u32 %v5117_v27, 16  ;;  %v6159_v1 = vshrl.u32 %v6114_v59, 16 }
 0x31a   :  { %v4411_v30 = vpack.c.b16 %v4402_v21, %v4401_v63  ;;  %v6147_v4 = vrot.slane %v6145_v6, 4  ;;  %v6150_v57 = vrot.slane %v6148_v54, 5  ;;  %v4725_v28 = vunpack.c.l.b16 %v9390_v40  ;;  %v6113_v25 = vld [vmem:[#allocation2 + $0x14] sm:$0x1]  ;;  %5796 = vmatpush.bf16.msra.mxu2 %v8085_v2  ;;  %v6115_v62 = vld [vmem:[#allocation2 + $0x1c] sm:$0x1] }
 0x31b   :  { %4502 = vmatmul.bf16.gmra.mxu2 %v4410_v45  ;;  %v5152_v45 = vrot.slane %v5150_v26, 5  ;;  %v4356_v47 = vrot.slane %v4354_v31, 5  ;;  %v5168_v63 = vrot.slane %v5167_v58, 4  ;;  %v5158_v36 = vrot.slane %v5156_v46, 5  ;;  %v5120_v12 = vld [vmem:[#allocation2 + $0x20] sm:$0xf] }
 0x31c   :  { %v6161_v55 = vrot.slane %v6159_v1, 4  ;;  %v6162_v20 = vshll.u32 %v6114_v59, 16  ;;  %v5172_v21 = vrot.slane %v5170_v49, 5  ;;  %v6151_v7 = vor.u32 %v6150_v57, %v6147_v4  ;;  %v5565_v40 = vld [vmem:[#allocation2 + $0xc] sm:$0x1] }
 0x31d   :  { %4089 = vmatmul.bf16.gmra.mxu1 %v7528_v8  ;;  %v4596_v32 = vld [vmem:[#allocation2 + $0x88] sm:$0xe]  ;;  %v5153_v33 = vor.u32 %v5152_v45, %v5149_v53  ;;  %v5118_v45 = vld [vmem:[#allocation2 + $0x18] sm:$0xf]  ;;  %v6154_v35 = vshll.u32 %v6113_v25, 16  ;;  %v6168_v5 = vshll.u32 %v6115_v62, 16 }
 0x31e   :  { %5055 = vmatmul.bf16.gmra.mxu0 %v7672_v38  ;;  %v4597_v14 = vld [vmem:[#allocation2 + $0x8c] sm:$0x1]  ;;  %v4146_v8 = vld [vmem:[#allocation2 + $0x88] sm:$0xf]  ;;  %v7612_v15 = vrot.slane %v4596_v32, 9  ;;  %v4352_v38 = vrot.slane %v4351_v22, 4  ;;  %v5173_v48 = vsel %vm8497_vm8, %v5168_v63, %v5172_v21 }
 0x31f   :  { %v4692_v51 = vrot.slane %v4597_v14, 5  ;;  %v4147_v37 = vld [vmem:[#allocation2 + $0x8c] sm:$0x1]  ;;  %v4359_v41 = vshrl.u32 %v4146_v8, 16  ;;  %v4362_v42 = vshll.u32 %v4146_v8, 16  ;;  %v5154_v52 = vrot.slane %v5153_v33, 4 }
 0x320   :  { %v8036_v0 = vld [vmem:[#allocation2 + $0x84] sm:$0xf0]  ;;  %v4368_v60 = vshll.u32 %v4147_v37, 16  ;;  %v4357_v29 = vsel %vm8497_vm8, %v4352_v38, %v4356_v47  ;;  %v6164_v53 = vrot.slane %v6162_v20, 5  ;;  %v5566_v59 = vld [vmem:[#allocation2 + $0x10] sm:$0xe]  ;;  %v5388_v33 = vunpack.c.l.b16 %v5173_v48 }
 0x321   :  { %v7675_v39 = vld [vmem:[#allocation2 + $0x88] sm:$0xf]  ;;  %v4361_v10 = vrot.slane %v4359_v41, 4  ;;  %v4364_v17 = vrot.slane %v4362_v42, 5  ;;  %v7532_v11 = vor.u32 %v8036_v0, %v7531_v56  ;;  %v4693_v19 = vsel %vm8640_vm11, %v7612_v15, %v4692_v51  ;;  %v6116_v14 = vld [vmem:[#allocation2 + $0x20] sm:$0xf] }
 0x322   :  { %v7676_v26 = vor.u32 %v8068_v9, %v7675_v39  ;;  %v4726_v16 = vunpack.c.l.b16 %v4693_v19  ;;  %v4370_v3 = vrot.slane %v4368_v60, 5  ;;  %v5159_v23 = vsel %vm8497_vm8, %v5154_v52, %v5158_v36  ;;  %v5564_v32 = vld [vmem:[#allocation2 + $0x8] sm:$0xe]  ;;  %v5567_v42 = vld [vmem:[#allocation2 + $0x14] sm:$0x1] }
 0x323   :  { %v4365_v18 = vor.u32 %v4364_v17, %v4361_v10  ;;  %v4403_v31 = vunpack.c.l.b16 %v4357_v29  ;;  %v6165_v27 = vor.u32 %v6164_v53, %v6161_v55  ;;  %v5387_v6 = vunpack.c.l.b16 %v5159_v23  ;;  %v6118_v41 = vld [vmem:[#allocation2 + $0x28] sm:$0xf]  ;;  %v5119_v36 = vld [vmem:[#allocation2 + $0x1c] sm:$0x1]  ;;  %v5121_v62 = vld [vmem:[#allocation2 + $0x24] sm:$0x1] }
 0x324   :  { %4829 = vmatmul.bf16.gmra.mxu3 %v4733_v61  ;;  %v6152_v54 = vrot.slane %v6151_v7, 4  ;;  %v5178_v56 = vshll.u32 %v5118_v45, 16  ;;  %v4734_v8 = vpack.c.b16 %v4726_v16, %v4725_v28  ;;  %v5189_v58 = vshrl.u32 %v5120_v12, 16  ;;  %v6117_v7 = vld [vmem:[#allocation2 + $0x24] sm:$0x1] }
 0x325   :  { %v4366_v61 = vrot.slane %v4365_v18, 4  ;;  %v6166_v46 = vrot.slane %v6165_v27, 4  ;;  %v6156_v15 = vrot.slane %v6154_v35, 5  ;;  %v6170_v51 = vrot.slane %v6168_v5, 5  ;;  %v6119_v16 = vld [vmem:[#allocation2 + $0x2c] sm:$0x1] }
 0x326   :  { %v5192_v37 = vshll.u32 %v5120_v12, 16  ;;  %v7741_v0 = vrot.slane %v5564_v32, 9  ;;  %v5630_v38 = vrot.slane %v5565_v40, 5  ;;  %v7742_v49 = vrot.slane %v5566_v59, 9  ;;  %v5122_v59 = vld [vmem:[#allocation2 + $0x28] sm:$0xf] }
 0x327   :  { %v4371_v22 = vsel %vm8497_vm8, %v4366_v61, %v4370_v3  ;;  %v6173_v1 = vshrl.u32 %v6116_v14, 16  ;;  %v6157_v2 = vsel %vm8497_vm8, %v6152_v54, %v6156_v15  ;;  %v6171_v39 = vsel %vm8497_vm8, %v6166_v46, %v6170_v51  ;;  %v6120_v46 = vld [vmem:[#allocation2 + $0x30] sm:$0xf] }
 0x328   :  { %v4404_v9 = vunpack.c.l.b16 %v4371_v22  ;;  %v5180_v17 = vrot.slane %v5178_v56, 5  ;;  %v5191_v4 = vrot.slane %v5189_v58, 4  ;;  %v5194_v57 = vrot.slane %v5192_v37, 5  ;;  %v7791_v22 = vld [vmem:[#allocation2 + $0x10] sm:$0xf]  ;;  %v8122_v56 = vld [vmem:[#allocation9 + $0x228] sm:$0xff] }
 0x329   :  { %v6176_v28 = vshll.u32 %v6116_v14, 16  ;;  %v6187_v47 = vshrl.u32 %v6118_v41, 16  ;;  %v5634_v52 = vrot.slane %v5567_v42, 5  ;;  %v6190_v19 = vshll.u32 %v6118_v41, 16  ;;  %v6122_v37 = vld [vmem:[#allocation2 + $0x38] sm:$0xf]  ;;  %6789 = vmatpush.bf16.msra.mxu1 %v8122_v56 }
 0x32a   :  { %v4412_v60 = vpack.c.b16 %v4404_v9, %v4403_v31  ;;  %v6385_v18 = vunpack.c.l.b16 %v6157_v2  ;;  %v6386_v63 = vunpack.c.l.b16 %v6171_v39  ;;  %v5403_v29 = vpack.c.b16 %v5388_v33, %v5387_v6  ;;  %v8093_v6 = vld [vmem:[#allocation2 + $0x14] sm:$0xf0]  ;;  %v5124_v33 = vld [vmem:[#allocation2 + $0x30] sm:$0xf]  ;;  %v5569_v2 = vld [vmem:[#allocation2 + $0x1c] sm:$0x1] }
 0x32b   :  { %4507 = vmatmul.bf16.gmra.mxu2 %v4411_v30  ;;  %v5175_v30 = vshrl.u32 %v5118_v45, 16  ;;  %v6178_v25 = vrot.slane %v6176_v28, 5  ;;  %v6192_v55 = vrot.slane %v6190_v19, 5  ;;  %v5195_v21 = vor.u32 %v5194_v57, %v5191_v4  ;;  %v5571_v4 = vld [vmem:[#allocation2 + $0x24] sm:$0x1] }
 0x32c   :  { %v5631_v3 = vsel %vm8640_vm11, %v7741_v0, %v5630_v38  ;;  %v5635_v23 = vsel %vm8640_vm11, %v7742_v49, %v5634_v52  ;;  %v6401_v48 = vpack.c.b16 %v6386_v63, %v6385_v18  ;;  %v5184_v35 = vshll.u32 %v5119_v36, 16 }
 0x32d   :  { %4094 = vmatmul.bf16.gmra.mxu1 %v7532_v11  ;;  %v5177_v10 = vrot.slane %v5175_v30, 4  ;;  %v6175_v11 = vrot.slane %v6173_v1, 4  ;;  %v5198_v5 = vshll.u32 %v5121_v62, 16  ;;  %v6182_v12 = vshll.u32 %v6117_v7, 16  ;;  %v5568_v1 = vld [vmem:[#allocation2 + $0x18] sm:$0xe] }
 0x32e   :  { %5060 = vmatmul.bf16.gmra.mxu0 %v7676_v26  ;;  %v6189_v26 = vrot.slane %v6187_v47, 4  ;;  %v6196_v50 = vshll.u32 %v6119_v16, 16  ;;  %v5709_v31 = vunpack.c.l.b16 %v5631_v3  ;;  %v5710_v27 = vunpack.c.l.b16 %v5635_v23  ;;  %v5123_v7 = vld [vmem:[#allocation2 + $0x2c] sm:$0x1] }
 0x32f   :  { %v5181_v61 = vor.u32 %v5180_v17, %v5177_v10  ;;  %v6179_v53 = vor.u32 %v6178_v25, %v6175_v11  ;;  %v5196_v40 = vrot.slane %v5195_v21, 4  ;;  %v5186_v14 = vrot.slane %v5184_v35, 5  ;;  %v5570_v17 = vld [vmem:[#allocation2 + $0x20] sm:$0xe]  ;;  %v3872_v35 = vld [vmem:[#allocation2 + $0x44] sm:$0x1] }
 0x330   :  { %v6193_v45 = vor.u32 %v6192_v55, %v6189_v26  ;;  %v6184_v58 = vrot.slane %v6182_v12, 5  ;;  %v6198_v9 = vrot.slane %v6196_v50, 5  ;;  %v5203_v15 = vshrl.u32 %v5122_v59, 16 }
 0x331   :  { %v5182_v32 = vrot.slane %v5181_v61, 4  ;;  %v6180_v54 = vrot.slane %v6179_v53, 4  ;;  %v5206_v51 = vshll.u32 %v5122_v59, 16  ;;  %v7792_v42 = vor.u32 %v8093_v6, %v7791_v22  ;;  %v7795_v6 = vld [vmem:[#allocation2 + $0x20] sm:$0xf] }
 0x332   :  { %v6194_v30 = vrot.slane %v6193_v45, 4  ;;  %v5725_v0 = vpack.c.b16 %v5710_v27, %v5709_v31  ;;  %v5217_v57 = vshrl.u32 %v5124_v33, 16  ;;  %v5220_v28 = vshll.u32 %v5124_v33, 16  ;;  %v8094_v33 = vld [vmem:[#allocation2 + $0x24] sm:$0xf0] }
 0x333   :  { %v5187_v38 = vsel %vm8497_vm8, %v5182_v32, %v5186_v14  ;;  %v6185_v39 = vsel %vm8497_vm8, %v6180_v54, %v6184_v58  ;;  %v6201_v47 = vshrl.u32 %v6120_v46, 16  ;;  %v6215_v52 = vshrl.u32 %v6122_v37, 16  ;;  %v6121_v32 = vld [vmem:[#allocation2 + $0x34] sm:$0x1]  ;;  %v5126_v14 = vld [vmem:[#allocation2 + $0x38] sm:$0xf] }
 0x334   :  { %4834 = vmatmul.bf16.gmra.mxu3 %v4734_v8  ;;  %v5200_v8 = vrot.slane %v5198_v5, 5  ;;  %v6199_v10 = vsel %vm8497_vm8, %v6194_v30, %v6198_v9  ;;  %v6218_v11 = vshll.u32 %v6122_v37, 16  ;;  %v5389_v19 = vunpack.c.l.b16 %v5187_v38  ;;  %v5125_v5 = vld [vmem:[#allocation2 + $0x34] sm:$0x1]  ;;  %v5573_v38 = vld [vmem:[#allocation2 + $0x2c] sm:$0x1] }
 0x335   :  { %v7743_v18 = vrot.slane %v5568_v1, 9  ;;  %v5205_v63 = vrot.slane %v5203_v15, 4  ;;  %v5208_v25 = vrot.slane %v5206_v51, 5  ;;  %v5638_v36 = vrot.slane %v5569_v2, 5 }
 0x336   :  { %v5201_v49 = vsel %vm8497_vm8, %v5196_v40, %v5200_v8  ;;  %v7744_v62 = vrot.slane %v5570_v17, 9  ;;  %v5642_v55 = vrot.slane %v5571_v4, 5  ;;  %v6387_v61 = vunpack.c.l.b16 %v6185_v39  ;;  %v6123_v40 = vld [vmem:[#allocation2 + $0x3c] sm:$0x1]  ;;  %v5574_v4 = vld [vmem:[#allocation2 + $0x30] sm:$0xe] }
 0x337   :  { %v5390_v26 = vunpack.c.l.b16 %v5201_v49  ;;  %v6388_v21 = vunpack.c.l.b16 %v6199_v10  ;;  %v5219_v16 = vrot.slane %v5217_v57, 4  ;;  %v5222_v3 = vrot.slane %v5220_v28, 5  ;;  %v8121_v57 = vld [vmem:[#allocation9 + $0x220] sm:$0xff] }
 0x338   :  { %v6203_v23 = vrot.slane %v6201_v47, 4  ;;  %v6217_v45 = vrot.slane %v6215_v52, 4  ;;  %v5209_v12 = vor.u32 %v5208_v25, %v5205_v63  ;;  %v3726_v50 = vrot.slane %v9288_v24, 4  ;;  %v5575_v52 = vld [vmem:[#allocation2 + $0x34] sm:$0x1]  ;;  %6790 = vmatpush.bf16.msra.mxu1 %v8121_v57 }
 0x339   :  { %v9428_v31 = vsel %vm8640_vm11, %v7743_v18, %v5638_v36  ;;  %v5212_v27 = vshll.u32 %v5123_v7, 16  ;;  %v5404_v59 = vpack.c.b16 %v5390_v26, %v5389_v19  ;;  %v5643_v54 = vsel %vm8640_vm11, %v7744_v62, %v5642_v55  ;;  %v6124_v26 = vld [vmem:[#allocation2 + $0x40] sm:$0xf]  ;;  %v7799_v57 = vld [vmem:[#allocation2 + $0x30] sm:$0xf] }
 0x33a   :  { %v9407_v20 = vpop.f32.mrf.mxu1  ;;  %v5223_v30 = vor.u32 %v5222_v3, %v5219_v16  ;;  %v3873_v56 = vsel %vm9214_vm5, %v3726_v50, %v3872_v35  ;;  %v6402_v8 = vpack.c.b16 %v6388_v21, %v6387_v61  ;;  %v5210_v51 = vrot.slane %v5209_v12, 4  ;;  %v6126_v21 = vld [vmem:[#allocation2 + $0x48] sm:$0xf]  ;;  %v5127_v50 = vld [vmem:[#allocation2 + $0x3c] sm:$0x1] }
 0x33b   :  { %4512 = vmatmul.bf16.gmra.mxu2 %v4412_v60  ;;  %v6204_v60 = vshll.u32 %v6120_v46, 16  ;;  %v5226_v46 = vshll.u32 %v5125_v5, 16  ;;  %3874 = vst [vmem:[#allocation2 + $0x44] sm:$0x1] %v3873_v56  ;;  %v6210_v37 = vshll.u32 %v6121_v32, 16  ;;  %v5231_v49 = vshrl.u32 %v5126_v14, 16 }
 0x33c   :  { %v5234_v44 = vshll.u32 %v5126_v14, 16  ;;  %v7796_v39 = vor.u32 %v8094_v33, %v7795_v6  ;;  %v5214_v10 = vrot.slane %v5212_v27, 5  ;;  %v5224_v17 = vrot.slane %v5223_v30, 4 }
 0x33d   :  { %5475 = vmatmul.bf16.vlgmr.msrb.gmra.mxu1 %v5403_v29  ;;  %v6206_v53 = vrot.slane %v6204_v60, 5  ;;  %v5711_v28 = vunpack.c.l.b16 %v9428_v31  ;;  %v5228_v18 = vrot.slane %v5226_v46, 5  ;;  %v6212_v63 = vrot.slane %v6210_v37, 5 }
 0x33e   :  { %6473 = vmatmul.bf16.vlgmr.msra.gmra.mxu0 %v6401_v48  ;;  %v6220_v48 = vrot.slane %v6218_v11, 5  ;;  %v5128_v11 = vld [vmem:[#allocation2 + $0x40] sm:$0xf]  ;;  %v5215_v19 = vsel %vm8497_vm8, %v5210_v51, %v5214_v10  ;;  %v5646_v55 = vrot.slane %v5573_v38, 5  ;;  %v5236_v61 = vrot.slane %v5234_v44, 5 }
 0x33f   :  { %v6207_v58 = vor.u32 %v6206_v53, %v6203_v23  ;;  %v5229_v7 = vsel %vm8497_vm8, %v5224_v17, %v5228_v18  ;;  %v7746_v16 = vrot.slane %v5574_v4, 9  ;;  %v5245_v3 = vshrl.u32 %v5128_v11, 16 }
 0x340   :  { %v6221_v9 = vor.u32 %v6220_v48, %v6217_v45  ;;  %v5248_v23 = vshll.u32 %v5128_v11, 16  ;;  %v5650_v35 = vrot.slane %v5575_v52, 5  ;;  %v6229_v5 = vshrl.u32 %v6124_v26, 16  ;;  %v8095_v52 = vld [vmem:[#allocation2 + $0x34] sm:$0xf0] }
 0x341   :  { %v6208_v47 = vrot.slane %v6207_v58, 4  ;;  %v6232_v31 = vshll.u32 %v6124_v26, 16  ;;  %v6243_v27 = vshrl.u32 %v6126_v21, 16  ;;  %v6246_v32 = vshll.u32 %v6126_v21, 16  ;;  %v5130_v21 = vld [vmem:[#allocation2 + $0x58] sm:$0xf] }
 0x342   :  { %v9413_v41 = vpop.f32.mrf.mxu1  ;;  %v6222_v60 = vrot.slane %v6221_v9, 4  ;;  %v5392_v6 = vunpack.c.l.b16 %v5229_v7  ;;  %v5240_v58 = vshll.u32 %v5127_v50, 16  ;;  %v6127_v9 = vld [vmem:[#allocation2 + $0x4c] sm:$0x1]  ;;  %v5129_v38 = vld [vmem:[#allocation2 + $0x44] sm:$0x1] }
 0x343   :  { %v6213_v45 = vsel %vm8497_vm8, %v6208_v47, %v6212_v63  ;;  %v6234_v51 = vrot.slane %v6232_v31, 5  ;;  %v6245_v37 = vrot.slane %v6243_v27, 4  ;;  %v6125_v10 = vld [vmem:[#allocation2 + $0x44] sm:$0x1]  ;;  %v6252_v47 = vshll.u32 %v6127_v9, 16 }
 0x344   :  { %6023 = vmatmul.bf16.vlgmr.msra.gmra.mxu3 %v7792_v42  ;;  %v6224_v42 = vshll.u32 %v6123_v40, 16  ;;  %v6389_v33 = vunpack.c.l.b16 %v6213_v45  ;;  %v5254_v11 = vshll.u32 %v5129_v38, 16  ;;  %v5576_v63 = vld [vmem:[#allocation2 + $0x38] sm:$0xe]  ;;  %v6238_v26 = vshll.u32 %v6125_v10, 16 }
 0x345   :  { %v5132_v7 = vld [vmem:[#allocation2 + $0x60] sm:$0xf]  ;;  %v7747_v45 = vrot.slane %v5576_v63, 9  ;;  %v6130_v31 = vld [vmem:[#allocation2 + $0x68] sm:$0xf] }
 0x346   :  { %v6226_v25 = vrot.slane %v6224_v42, 5  ;;  %v6248_v42 = vrot.slane %v6246_v32, 5  ;;  %v6240_v32 = vrot.slane %v6238_v26, 5  ;;  %v6274_v9 = vshll.u32 %v6130_v31, 16 }
 0x347   :  { %v4800_v29 = vpop.f32.mrf.mxu3 }
 0x348   :  { %v6227_v48 = vsel %vm8497_vm8, %v6222_v60, %v6226_v25  ;;  %v6249_v18 = vor.u32 %v6248_v42, %v6245_v37 }
 0x349   :  { %v6390_v46 = vunpack.c.l.b16 %v6227_v48  ;;  %v6128_v48 = vld [vmem:[#allocation2 + $0x60] sm:$0xf] }
 0x34a   :  { %v9424_v22 = vpop.f32.mrf.mxu1  ;;  %v6250_v50 = vrot.slane %v6249_v18, 4  ;;  %v5133_v18 = vld [vmem:[#allocation2 + $0x64] sm:$0x1] }
 0x34b   :  { %5797 = vmatmul.bf16.vlgmr.msra.gmra.mxu2 %v5725_v0  ;;  %v5572_v0 = vld [vmem:[#allocation2 + $0x28] sm:$0xe]  ;;  %v6403_v4 = vpack.c.b16 %v6390_v46, %v6389_v33 }
 0x34c   :  { %v7745_v62 = vrot.slane %v5572_v0, 9 }
 0x34d   :  { %5480 = vmatmul.bf16.gmra.mxu1 %v5404_v59  ;;  %v5391_v59 = vunpack.c.l.b16 %v5215_v19 }
 0x34e   :  { %v4478_v24 = vpop.f32.mrf.mxu2  ;;  %6478 = vmatmul.bf16.gmra.mxu0 %v6402_v8  ;;  %v5647_v14 = vsel %vm8640_vm11, %v7745_v62, %v5646_v55  ;;  %v5250_v8 = vrot.slane %v5248_v23, 5  ;;  %v6254_v23 = vrot.slane %v6252_v47, 5 }
 0x34f   :  { %v4534_v15 = vadd.f32 %v4478_v24, %v9407_v20  ;;  %v4802_v2 = vpop.f32.mrf.mxu3  ;;  %v5712_v20 = vunpack.c.l.b16 %v5643_v54  ;;  %v5247_v24 = vrot.slane %v5245_v3, 4  ;;  %v5405_v44 = vpack.c.b16 %v5392_v6, %v5391_v59 }
 0x350   :  { %v5259_v59 = vshrl.u32 %v5130_v21, 16  ;;  %v5262_v6 = vshll.u32 %v5130_v21, 16  ;;  %v6255_v37 = vsel %vm8497_vm8, %v6250_v50, %v6254_v23 }
 0x351   :  { %v9435_v1 = vadd.f32 %v4800_v29, %v4534_v15  ;;  %v5233_v29 = vrot.slane %v5231_v49, 4  ;;  %v5726_v40 = vpack.c.b16 %v5712_v20, %v5711_v28  ;;  %v6231_v15 = vrot.slane %v6229_v5, 4 }
 0x352   :  { %v9440_v36 = vpop.f32.mrf.mxu1  ;;  %v5242_v20 = vrot.slane %v5240_v58, 5  ;;  %v6271_v58 = vshrl.u32 %v6130_v31, 16 }
 0x353   :  { %v5237_v54 = vor.u32 %v5236_v61, %v5233_v29  ;;  %v6235_v19 = vor.u32 %v6234_v51, %v6231_v15  ;;  %v5577_v61 = vld [vmem:[#allocation2 + $0x3c] sm:$0x1] }
 0x354   :  { %6028 = vmatmul.bf16.gmra.mxu3 %v7796_v39  ;;  %v5251_v39 = vor.u32 %v5250_v8, %v5247_v24  ;;  %v6257_v24 = vshrl.u32 %v6128_v48, 16  ;;  %v6260_v8 = vshll.u32 %v6128_v48, 16  ;;  %v5654_v46 = vrot.slane %v5577_v61, 5  ;;  %v6131_v61 = vld [vmem:[#allocation2 + $0x6c] sm:$0x1] }
 0x355   :  { %v5238_v49 = vrot.slane %v5237_v54, 4  ;;  %v5273_v54 = vshrl.u32 %v5132_v7, 16  ;;  %v6273_v47 = vrot.slane %v6271_v58, 4  ;;  %v6280_v31 = vshll.u32 %v6131_v61, 16  ;;  %v6132_v58 = vld [vmem:[#allocation2 + $0x70] sm:$0xf] }
 0x356   :  { %v4480_v53 = vpop.f32.mrf.mxu2  ;;  %v5252_v29 = vrot.slane %v5251_v39, 4 }
 0x357   :  { %v4535_v12 = vadd.f32 %v4480_v53, %v9413_v41  ;;  %v4805_v56 = vpop.f32.mrf.mxu3  ;;  %v5651_v41 = vsel %vm8640_vm11, %v7746_v16, %v5650_v35  ;;  %v5243_v25 = vsel %vm8497_vm8, %v5238_v49, %v5242_v20  ;;  %v8120_v16 = vld [vmem:[#allocation9 + $0x218] sm:$0xff]  ;;  %v5578_v53 = vld [vmem:[#allocation2 + $0x40] sm:$0xe]  ;;  %v5256_v35 = vrot.slane %v5254_v11, 5 }
 0x358   :  { %v5714_v28 = vunpack.c.l.b16 %v5651_v41  ;;  %v5393_v5 = vunpack.c.l.b16 %v5243_v25  ;;  %6791 = vmatpush.bf16.msra.mxu1 %v8120_v16  ;;  %v7748_v41 = vrot.slane %v5578_v53, 9  ;;  %v5261_v49 = vrot.slane %v5259_v59, 4  ;;  %v6129_v25 = vld [vmem:[#allocation2 + $0x64] sm:$0x1]  ;;  %v8096_v59 = vld [vmem:[#allocation2 + $0x44] sm:$0xf0] }
 0x359   :  { %v9449_v30 = vadd.f32 %v4802_v2, %v4535_v12  ;;  %v5713_v2 = vunpack.c.l.b16 %v5647_v14  ;;  %v6236_v12 = vrot.slane %v6235_v19, 4  ;;  %v5276_v14 = vshll.u32 %v5132_v7, 16 }
 0x35a   :  { %v9455_v0 = vpop.f32.mrf.mxu1  ;;  %v6392_v20 = vunpack.c.l.b16 %v6255_v37  ;;  %v5655_v19 = vsel %vm8640_vm11, %v7747_v45, %v5654_v46  ;;  %v5282_v53 = vshll.u32 %v5133_v18, 16  ;;  %v6266_v48 = vshll.u32 %v6129_v25, 16  ;;  %v5134_v45 = vld [vmem:[#allocation2 + $0x68] sm:$0xf] }
 0x35b   :  { %5802 = vmatmul.bf16.gmra.mxu2 %v5726_v40  ;;  %v5727_v3 = vpack.c.b16 %v5714_v28, %v5713_v2  ;;  %v5579_v40 = vld [vmem:[#allocation2 + $0x44] sm:$0x1]  ;;  %v6241_v51 = vsel %vm8497_vm8, %v6236_v12, %v6240_v32  ;;  %v5275_v2 = vrot.slane %v5273_v54, 4  ;;  %v9473_v28 = vpop.f32.mrf.mxu0  ;;  %v5715_v12 = vunpack.c.l.b16 %v5655_v19 }
 0x35c   :  { %v5658_v42 = vrot.slane %v5579_v40, 5  ;;  %v5284_v46 = vrot.slane %v5282_v53, 5  ;;  %v6285_v19 = vshrl.u32 %v6132_v58, 16  ;;  %v6288_v25 = vshll.u32 %v6132_v58, 16 }
 0x35d   :  { %5485 = vmatmul.bf16.gmra.mxu1 %v5405_v44  ;;  %v5264_v44 = vrot.slane %v5262_v6, 5 }
 0x35e   :  { %v4483_v17 = vpop.f32.mrf.mxu2  ;;  %6483 = vmatmul.bf16.gmra.mxu0 %v6403_v4  ;;  %v6259_v4 = vrot.slane %v6257_v24, 4 }
 0x35f   :  { %v4536_v60 = vadd.f32 %v4483_v17, %v9424_v22  ;;  %v4807_v55 = vpop.f32.mrf.mxu3  ;;  %v7800_v22 = vor.u32 %v8095_v52, %v7799_v57  ;;  %v5278_v17 = vrot.slane %v5276_v14, 5  ;;  %v6262_v57 = vrot.slane %v6260_v8, 5  ;;  %v5131_v52 = vld [vmem:[#allocation2 + $0x5c] sm:$0x1] }
 0x360   :  { %v5265_v63 = vor.u32 %v5264_v44, %v5261_v49  ;;  %v5287_v8 = vshrl.u32 %v5134_v45, 16  ;;  %v5580_v49 = vld [vmem:[#allocation2 + $0x58] sm:$0xe] }
 0x361   :  { %v9460_v62 = vadd.f32 %v4805_v56, %v4536_v60  ;;  %v5257_v56 = vsel %vm8497_vm8, %v5252_v29, %v5256_v35  ;;  %v6276_v60 = vrot.slane %v6274_v9, 5  ;;  %v5279_v29 = vor.u32 %v5278_v17, %v5275_v2  ;;  %v7803_v35 = vld [vmem:[#allocation2 + $0x40] sm:$0xf]  ;;  %v6134_v44 = vld [vmem:[#allocation2 + $0x78] sm:$0xf] }
 0x362   :  { %v9462_v27 = vpop.f32.mrf.mxu1  ;;  %v5394_v38 = vunpack.c.l.b16 %v5257_v56  ;;  %v6263_v21 = vor.u32 %v6262_v57, %v6259_v4  ;;  %v5266_v50 = vrot.slane %v5265_v63, 4  ;;  %v8119_v56 = vld [vmem:[#allocation9 + $0x210] sm:$0xff]  ;;  %v5581_v17 = vld [vmem:[#allocation2 + $0x5c] sm:$0x1]  ;;  %v5582_v4 = vld [vmem:[#allocation2 + $0x60] sm:$0xe] }
 0x363   :  { %v5280_v6 = vrot.slane %v5279_v29, 4  ;;  %6792 = vmatpush.bf16.msra.mxu1 %v8119_v56  ;;  %v9484_v9 = vpop.f32.mrf.mxu0  ;;  %v5583_v63 = vld [vmem:[#allocation2 + $0x64] sm:$0x1]  ;;  %v7749_v61 = vrot.slane %v5580_v49, 9  ;;  %v6133_v56 = vld [vmem:[#allocation2 + $0x74] sm:$0x1] }
 0x364   :  { %6033 = vmatmul.bf16.gmra.mxu3 %v7800_v22  ;;  %v5406_v26 = vpack.c.b16 %v5394_v38, %v5393_v5  ;;  %v5268_v22 = vshll.u32 %v5131_v52, 16  ;;  %v6264_v54 = vrot.slane %v6263_v21, 4  ;;  %v6282_v38 = vrot.slane %v6280_v31, 5  ;;  %v8097_v49 = vld [vmem:[#allocation2 + $0x64] sm:$0xf0] }
 0x365   :  { %v5285_v2 = vsel %vm8497_vm8, %v5280_v6, %v5284_v46  ;;  %v5662_v21 = vrot.slane %v5581_v17, 5  ;;  %v6290_v31 = vrot.slane %v6288_v25, 5  ;;  %v6136_v25 = vld [vmem:[#allocation2 + $0x80] sm:$0xf] }
 0x366   :  { %v4485_v33 = vpop.f32.mrf.mxu2  ;;  %v5270_v14 = vrot.slane %v5268_v22, 5 }
 0x367   :  { %v4537_v15 = vadd.f32 %v4485_v33, %v9440_v36  ;;  %v4810_v10 = vpop.f32.mrf.mxu3  ;;  %v6391_v36 = vunpack.c.l.b16 %v6241_v51  ;;  %v5290_v33 = vshll.u32 %v5134_v45, 16  ;;  %v7804_v51 = vor.u32 %v8096_v59, %v7803_v35 }
 0x368   :  { %v5666_v35 = vrot.slane %v5583_v63, 5 }
 0x369   :  { %v9471_v39 = vadd.f32 %v4807_v55, %v4537_v15  ;;  %v5659_v55 = vsel %vm8640_vm11, %v7748_v41, %v5658_v42  ;;  %v6404_v16 = vpack.c.b16 %v6392_v20, %v6391_v36  ;;  %v6268_v41 = vrot.slane %v6266_v48, 5 }
 0x36a   :  { %v9475_v11 = vpop.f32.mrf.mxu1  ;;  %v5716_v5 = vunpack.c.l.b16 %v5659_v55  ;;  %v5271_v42 = vsel %vm8497_vm8, %v5266_v50, %v5270_v14  ;;  %v5292_v52 = vrot.slane %v5290_v33, 5  ;;  %v6302_v55 = vshll.u32 %v6134_v44, 16 }
 0x36b   :  { %5807 = vmatmul.bf16.gmra.mxu2 %v5727_v3  ;;  %v6277_v3 = vor.u32 %v6276_v60, %v6273_v47  ;;  %v5289_v60 = vrot.slane %v5287_v8, 4  ;;  %v5395_v29 = vunpack.c.l.b16 %v5271_v42  ;;  %v6287_v50 = vrot.slane %v6285_v19, 4  ;;  %v6135_v8 = vld [vmem:[#allocation2 + $0x7c] sm:$0x1]  ;;  %v9503_v33 = vpop.f32.mrf.mxu0 }
 0x36c   :  { %v5728_v37 = vpack.c.b16 %v5716_v5, %v5715_v12  ;;  %v5135_v12 = vld [vmem:[#allocation2 + $0x6c] sm:$0x1]  ;;  %v6304_v6 = vrot.slane %v6302_v55, 5  ;;  %v5663_v14 = vsel %vm8640_vm11, %v7749_v61, %v5662_v21  ;;  %v6308_v17 = vshll.u32 %v6135_v8, 16  ;;  %v6138_v21 = vld [vmem:[#allocation2 + $0x88] sm:$0xf] }
 0x36d   :  { %5490 = vmatmul.bf16.gmra.mxu1 %v5406_v26  ;;  %v6278_v24 = vrot.slane %v6277_v3, 4  ;;  %v6299_v26 = vshrl.u32 %v6134_v44, 16  ;;  %v5396_v3 = vunpack.c.l.b16 %v5285_v2  ;;  %v5293_v5 = vor.u32 %v5292_v52, %v5289_v60  ;;  %v5140_v60 = vld [vmem:[#allocation2 + $0x80] sm:$0xf]  ;;  %v8118_v52 = vld [vmem:[#allocation9 + $0x208] sm:$0xff] }
 0x36e   :  { %v4488_v7 = vpop.f32.mrf.mxu2  ;;  %6488 = vmatmul.bf16.gmra.mxu0 %v6404_v16  ;;  %v6291_v44 = vor.u32 %v6290_v31, %v6287_v50  ;;  %v6294_v2 = vshll.u32 %v6133_v56, 16  ;;  %6793 = vmatpush.bf16.msra.mxu1 %v8118_v52  ;;  %v6327_v50 = vshrl.u32 %v6138_v21, 16  ;;  %v6330_v31 = vshll.u32 %v6138_v21, 16  ;;  %v5585_v8 = vld [vmem:[#allocation2 + $0x6c] sm:$0x1] }
 0x36f   :  { %v4538_v23 = vadd.f32 %v4488_v7, %v9455_v0  ;;  %v4812_v40 = vpop.f32.mrf.mxu3  ;;  %v5136_v0 = vld [vmem:[#allocation2 + $0x70] sm:$0xf]  ;;  %v6283_v47 = vsel %vm8497_vm8, %v6278_v24, %v6282_v38  ;;  %v7750_v7 = vrot.slane %v5582_v4, 9  ;;  %v6301_v59 = vrot.slane %v6299_v26, 4  ;;  %v7807_v38 = vld [vmem:[#allocation2 + $0x60] sm:$0xf] }
 0x370   :  { %v5301_v57 = vshrl.u32 %v5136_v0, 16  ;;  %v5304_v36 = vshll.u32 %v5136_v0, 16  ;;  %v6394_v45 = vunpack.c.l.b16 %v6283_v47  ;;  %v5296_v24 = vshll.u32 %v5135_v12, 16  ;;  %v5138_v4 = vld [vmem:[#allocation2 + $0x78] sm:$0xf] }
 0x371   :  { %v9482_v32 = vadd.f32 %v4810_v10, %v4538_v23  ;;  %v6269_v10 = vsel %vm8497_vm8, %v6264_v54, %v6268_v41  ;;  %v5667_v58 = vsel %vm8640_vm11, %v7750_v7, %v5666_v35  ;;  %v7808_v19 = vor.u32 %v8097_v49, %v7807_v38 }
 0x372   :  { %v9486_v15 = vpop.f32.mrf.mxu1  ;;  %v5303_v23 = vrot.slane %v5301_v57, 4  ;;  %v5306_v53 = vrot.slane %v5304_v36, 5  ;;  %v6393_v48 = vunpack.c.l.b16 %v6269_v10  ;;  %v6305_v10 = vor.u32 %v6304_v6, %v6301_v59 }
 0x373   :  { %v5718_v63 = vunpack.c.l.b16 %v5667_v58  ;;  %v6292_v55 = vrot.slane %v6291_v44, 4  ;;  %v6313_v35 = vshrl.u32 %v6136_v25, 16  ;;  %v6316_v12 = vshll.u32 %v6136_v25, 16 }
 0x374   :  { %6038 = vmatmul.bf16.gmra.mxu3 %v7804_v51  ;;  %v5307_v0 = vor.u32 %v5306_v53, %v5303_v23  ;;  %v6405_v41 = vpack.c.b16 %v6394_v45, %v6393_v48  ;;  %v5294_v51 = vrot.slane %v5293_v5, 4  ;;  %v6306_v61 = vrot.slane %v6305_v10, 4  ;;  %v5587_v10 = vld [vmem:[#allocation2 + $0x74] sm:$0x1] }
 0x375   :  { %v5318_v23 = vshll.u32 %v5138_v4, 16  ;;  %v5329_v53 = vshrl.u32 %v5140_v60, 16  ;;  %v5332_v45 = vshll.u32 %v5140_v60, 16  ;;  %v6315_v38 = vrot.slane %v6313_v35, 4  ;;  %v8098_v35 = vld [vmem:[#allocation2 + $0x74] sm:$0xf0] }
 0x376   :  { %v4490_v20 = vpop.f32.mrf.mxu2  ;;  %v5308_v47 = vrot.slane %v5307_v0, 4  ;;  %v6318_v49 = vrot.slane %v6316_v12, 5  ;;  %v5674_v25 = vrot.slane %v5587_v10, 5  ;;  %v6142_v10 = vld [vmem:[#allocation2 + $0x98] sm:$0xf] }
 0x377   :  { %v4539_v18 = vadd.f32 %v4490_v20, %v9462_v27  ;;  %v4815_v22 = vpop.f32.mrf.mxu3  ;;  %v5137_v27 = vld [vmem:[#allocation2 + $0x74] sm:$0x1]  ;;  %v5298_v20 = vrot.slane %v5296_v24, 5  ;;  %v9521_v24 = vpop.f32.mrf.mxu0  ;;  %v5331_v58 = vrot.slane %v5329_v53, 4 }
 0x379   :  { %v9497_v16 = vadd.f32 %v4812_v40, %v4539_v18  ;;  %v5407_v40 = vpack.c.b16 %v5396_v3, %v5395_v29  ;;  %v5717_v18 = vunpack.c.l.b16 %v5663_v14  ;;  %v5299_v26 = vsel %vm8497_vm8, %v5294_v51, %v5298_v20  ;;  %v5584_v14 = vld [vmem:[#allocation2 + $0x68] sm:$0xe]  ;;  %v5139_v20 = vld [vmem:[#allocation2 + $0x7c] sm:$0x1] }
 0x37a   :  { %v9499_v54 = vpop.f32.mrf.mxu1  ;;  %v6296_v29 = vrot.slane %v6294_v2, 5  ;;  %v5315_v3 = vshrl.u32 %v5138_v4, 16  ;;  %v5397_v6 = vunpack.c.l.b16 %v5299_v26  ;;  %v6332_v4 = vrot.slane %v6330_v31, 5 }
 0x37b   :  { %5812 = vmatmul.bf16.gmra.mxu2 %v5728_v37  ;;  %v5310_v37 = vshll.u32 %v5137_v27, 16  ;;  %v5729_v27 = vpack.c.b16 %v5718_v63, %v5717_v18  ;;  %v7751_v52 = vrot.slane %v5584_v14, 9  ;;  %v6137_v63 = vld [vmem:[#allocation2 + $0x84] sm:$0x1] }
 0x37c   :  { %v6297_v56 = vsel %vm8497_vm8, %v6292_v55, %v6296_v29  ;;  %v6139_v55 = vld [vmem:[#allocation2 + $0x8c] sm:$0x1]  ;;  %v6319_v29 = vor.u32 %v6318_v49, %v6315_v38 }
 0x37d   :  { %5495 = vmatmul.bf16.gmra.mxu1 %v5407_v40  ;;  %v6395_v44 = vunpack.c.l.b16 %v6297_v56 }
 0x37e   :  { %v4493_v46 = vpop.f32.mrf.mxu2  ;;  %6493 = vmatmul.bf16.gmra.mxu0 %v6405_v41  ;;  %v5320_v41 = vrot.slane %v5318_v23, 5  ;;  %v6320_v56 = vrot.slane %v6319_v29, 4 }
 0x37f   :  { %v4540_v42 = vadd.f32 %v4493_v46, %v9475_v11  ;;  %v4817_v36 = vpop.f32.mrf.mxu3  ;;  %v5312_v11 = vrot.slane %v5310_v37, 5  ;;  %v5317_v46 = vrot.slane %v5315_v3, 4 }
 0x381   :  { %v9508_v57 = vadd.f32 %v4815_v22, %v4540_v42  ;;  %v6310_v22 = vrot.slane %v6308_v17, 5  ;;  %v5313_v48 = vsel %vm8497_vm8, %v5308_v47, %v5312_v11  ;;  %v5586_v42 = vld [vmem:[#allocation2 + $0x70] sm:$0xe]  ;;  %v6329_v17 = vrot.slane %v6327_v50, 4  ;;  %v5141_v47 = vld [vmem:[#allocation2 + $0x84] sm:$0x1] }
 0x382   :  { %v9512_v7 = vpop.f32.mrf.mxu1  ;;  %v5398_v0 = vunpack.c.l.b16 %v5313_v48  ;;  %v7752_v18 = vrot.slane %v5586_v42, 9  ;;  %v5338_v53 = vshll.u32 %v5141_v47, 16  ;;  %v6322_v48 = vshll.u32 %v6137_v63, 16  ;;  %v5144_v42 = vld [vmem:[#allocation2 + $0x90] sm:$0xf] }
 0x383   :  { %v6311_v40 = vsel %vm8497_vm8, %v6306_v61, %v6310_v22  ;;  %v5324_v22 = vshll.u32 %v5139_v20, 16  ;;  %v6333_v3 = vor.u32 %v6332_v4, %v6329_v17 }
 0x384   :  { %6043 = vmatmul.bf16.gmra.mxu3 %v7808_v19  ;;  %v6396_v2 = vunpack.c.l.b16 %v6311_v40  ;;  %v5670_v19 = vrot.slane %v5585_v8, 5  ;;  %v5408_v11 = vpack.c.b16 %v5398_v0, %v5397_v6  ;;  %v9534_v40 = vpop.f32.mrf.mxu0  ;;  %v5142_v8 = vld [vmem:[#allocation2 + $0x88] sm:$0xf] }
 0x385   :  { %v5326_v14 = vrot.slane %v5324_v22, 5  ;;  %v6334_v0 = vrot.slane %v6333_v3, 4  ;;  %v5343_v20 = vshrl.u32 %v5142_v8, 16  ;;  %v5346_v47 = vshll.u32 %v5142_v8, 16  ;;  %v5143_v8 = vld [vmem:[#allocation2 + $0x8c] sm:$0x1] }
 0x386   :  { %v4495_v5 = vpop.f32.mrf.mxu2  ;;  %v6406_v21 = vpack.c.b16 %v6396_v2, %v6395_v44  ;;  %v5671_v12 = vsel %vm8640_vm11, %v7751_v52, %v5670_v19 }
 0x387   :  { %v4541_v59 = vadd.f32 %v4495_v5, %v9486_v15  ;;  %v4820_v37 = vpop.f32.mrf.mxu3  ;;  %v5334_v15 = vrot.slane %v5332_v45, 5  ;;  %v7811_v45 = vld [vmem:[#allocation2 + $0x70] sm:$0xf]  ;;  %v5719_v38 = vunpack.c.l.b16 %v5671_v12  ;;  %v5590_v12 = vld [vmem:[#allocation2 + $0x80] sm:$0xe] }
 0x389   :  { %v9523_v51 = vadd.f32 %v4817_v36, %v4541_v59  ;;  %v5321_v36 = vor.u32 %v5320_v41, %v5317_v46  ;;  %v5335_v26 = vor.u32 %v5334_v15, %v5331_v58  ;;  %v5675_v59 = vsel %vm8640_vm11, %v7752_v18, %v5674_v25  ;;  %v6140_v15 = vld [vmem:[#allocation2 + $0x90] sm:$0xf] }
 0x38a   :  { %v9525_v60 = vpop.f32.mrf.mxu1  ;;  %v7812_v46 = vor.u32 %v8098_v35, %v7811_v45  ;;  %v5340_v41 = vrot.slane %v5338_v53, 5  ;;  %v6324_v58 = vrot.slane %v6322_v48, 5  ;;  %v5720_v49 = vunpack.c.l.b16 %v5675_v59  ;;  %v5588_v53 = vld [vmem:[#allocation2 + $0x78] sm:$0xe]  ;;  %v5589_v48 = vld [vmem:[#allocation2 + $0x7c] sm:$0x1] }
 0x38b   :  { %5817 = vmatmul.bf16.gmra.mxu2 %v5729_v27  ;;  %v5322_v5 = vrot.slane %v5321_v36, 4  ;;  %v6336_v27 = vshll.u32 %v6139_v55, 16  ;;  %v5336_v6 = vrot.slane %v5335_v26, 4  ;;  %v5357_v18 = vshrl.u32 %v5144_v42, 16 }
 0x38c   :  { %v6325_v4 = vsel %vm8497_vm8, %v6320_v56, %v6324_v58  ;;  %v5360_v36 = vshll.u32 %v5144_v42, 16  ;;  %v6341_v63 = vshrl.u32 %v6140_v15, 16  ;;  %v6344_v25 = vshll.u32 %v6140_v15, 16 }
 0x38d   :  { %5500 = vmatmul.bf16.gmra.mxu1 %v5408_v11  ;;  %v5327_v44 = vsel %vm8497_vm8, %v5322_v5, %v5326_v14  ;;  %v6338_v2 = vrot.slane %v6336_v27, 5  ;;  %v5341_v17 = vsel %vm8497_vm8, %v5336_v6, %v5340_v41  ;;  %v6355_v26 = vshrl.u32 %v6142_v10, 16 }
 0x38e   :  { %v4498_v61 = vpop.f32.mrf.mxu2  ;;  %6498 = vmatmul.bf16.gmra.mxu0 %v6406_v21  ;;  %v6358_v55 = vshll.u32 %v6142_v10, 16  ;;  %v5730_v29 = vpack.c.b16 %v5720_v49, %v5719_v38  ;;  %v5400_v3 = vunpack.c.l.b16 %v5341_v17  ;;  %v5345_v45 = vrot.slane %v5343_v20, 4  ;;  %v5145_v38 = vld [vmem:[#allocation2 + $0x94] sm:$0x1] }
 0x38f   :  { %v4542_v23 = vadd.f32 %v4498_v61, %v9499_v54  ;;  %v4822_v31 = vpop.f32.mrf.mxu3  ;;  %v8117_v54 = vld [vmem:[#allocation9 + $0x200] sm:$0xff]  ;;  %v6339_v19 = vsel %vm8497_vm8, %v6334_v0, %v6338_v2  ;;  %v5399_v61 = vunpack.c.l.b16 %v5327_v44  ;;  %v5348_v5 = vrot.slane %v5346_v47, 5  ;;  %v9549_v0 = vpop.f32.mrf.mxu0 }
 0x390   :  { %6794 = vmatpush.bf16.msra.mxu1 %v8117_v54  ;;  %v6398_v35 = vunpack.c.l.b16 %v6339_v19  ;;  %v5359_v27 = vrot.slane %v5357_v18, 4  ;;  %v5362_v59 = vrot.slane %v5360_v36, 5  ;;  %v6343_v6 = vrot.slane %v6341_v63, 4 }
 0x391   :  { %v9530_v50 = vadd.f32 %v4820_v37, %v4542_v23  ;;  %v6397_v23 = vunpack.c.l.b16 %v6325_v4  ;;  %v6346_v56 = vrot.slane %v6344_v25, 5  ;;  %v6357_v54 = vrot.slane %v6355_v26, 4  ;;  %v6141_v4 = vld [vmem:[#allocation2 + $0x94] sm:$0x1]  ;;  %v7815_v25 = vld [vmem:[#allocation2 + $0x80] sm:$0xf] }
 0x392   :  { %v9536_v37 = vpop.f32.mrf.mxu1  ;;  %v6360_v14 = vrot.slane %v6358_v55, 5  ;;  %v5409_v41 = vpack.c.b16 %v5400_v3, %v5399_v61  ;;  %v7753_v58 = vrot.slane %v5588_v53, 9  ;;  %v5678_v42 = vrot.slane %v5589_v48, 5  ;;  %v8099_v26 = vld [vmem:[#allocation2 + $0x84] sm:$0xf0] }
 0x393   :  { %v7754_v15 = vrot.slane %v5590_v12, 9  ;;  %v6407_v44 = vpack.c.b16 %v6398_v35, %v6397_v23  ;;  %v5349_v10 = vor.u32 %v5348_v5, %v5345_v45  ;;  %v5363_v17 = vor.u32 %v5362_v59, %v5359_v27 }
 0x394   :  { %6048 = vmatmul.bf16.gmra.mxu3 %v7812_v46  ;;  %v6143_v46 = vld [vmem:[#allocation2 + $0x9c] sm:$0x1]  ;;  %v6347_v47 = vor.u32 %v6346_v56, %v6343_v6  ;;  %v5352_v18 = vshll.u32 %v5143_v8, 16  ;;  %v5366_v36 = vshll.u32 %v5145_v38, 16  ;;  %v6350_v55 = vshll.u32 %v6141_v4, 16 }
 0x395   :  { %v6364_v19 = vshll.u32 %v6143_v46, 16  ;;  %v5364_v3 = vrot.slane %v5363_v17, 4  ;;  %v7816_v35 = vor.u32 %v8099_v26, %v7815_v25  ;;  %v5594_v17 = vld [vmem:[#allocation2 + $0x90] sm:$0xe]  ;;  %v5595_v4 = vld [vmem:[#allocation2 + $0x94] sm:$0x1] }
 0x396   :  { %v4500_v52 = vpop.f32.mrf.mxu2  ;;  %v6348_v23 = vrot.slane %v6347_v47, 4  ;;  %v5354_v12 = vrot.slane %v5352_v18, 5  ;;  %v6352_v59 = vrot.slane %v6350_v55, 5  ;;  %v7756_v18 = vrot.slane %v5594_v17, 9  ;;  %v6563_v26 = vld [vmem:[#allocation2 + $0x14] sm:$0x1] }
 0x397   :  { %v4543_v11 = vadd.f32 %v4500_v52, %v9512_v7  ;;  %v4825_v22 = vpop.f32.mrf.mxu3  ;;  %v5591_v7 = vld [vmem:[#allocation2 + $0x84] sm:$0x1]  ;;  %v6361_v52 = vor.u32 %v6360_v14, %v6357_v54  ;;  %v6366_v48 = vrot.slane %v6364_v19, 5  ;;  %v6564_v55 = vld [vmem:[#allocation2 + $0x18] sm:$0xe] }
 0x398   :  { %v5682_v2 = vrot.slane %v5591_v7, 5  ;;  %v9560_v7 = vpop.f32.mrf.mxu0  ;;  %v6353_v8 = vsel %vm8497_vm8, %v6348_v23, %v6352_v59  ;;  %v7819_v23 = vld [vmem:[#allocation2 + $0x90] sm:$0xf] }
 0x399   :  { %v9547_v21 = vadd.f32 %v4822_v31, %v4543_v11  ;;  %v6362_v53 = vrot.slane %v6361_v52, 4 }
 0x39a   :  { %v9551_v31 = vpop.f32.mrf.mxu1  ;;  %v5683_v61 = vsel %vm8640_vm11, %v7754_v15, %v5682_v2  ;;  %v5592_v2 = vld [vmem:[#allocation2 + $0x88] sm:$0xe] }
 0x39b   :  { %5822 = vmatmul.bf16.gmra.mxu2 %v5730_v29  ;;  %v5679_v29 = vsel %vm8640_vm11, %v7753_v58, %v5678_v42  ;;  %v5722_v27 = vunpack.c.l.b16 %v5683_v61  ;;  %v6367_v46 = vsel %vm8497_vm8, %v6362_v53, %v6366_v48  ;;  %v7755_v47 = vrot.slane %v5592_v2, 9  ;;  %v8100_v53 = vld [vmem:[#allocation2 + $0x94] sm:$0xf0] }
 0x39c   :  { %v5721_v5 = vunpack.c.l.b16 %v5679_v29  ;;  %v6565_v29 = vld [vmem:[#allocation2 + $0x1c] sm:$0x1]  ;;  %v7820_v59 = vor.u32 %v8100_v53, %v7819_v23 }
 0x39d   :  { %5505 = vmatmul.bf16.gmra.mxu1 %v5409_v41 }
 0x39e   :  { %v4503_v49 = vpop.f32.mrf.mxu2  ;;  %6503 = vmatmul.bf16.gmra.mxu0 %v6407_v44  ;;  %v5731_v42 = vpack.c.b16 %v5722_v27, %v5721_v5  ;;  %v6400_v44 = vunpack.c.l.b16 %v6367_v46  ;;  %v6632_v5 = vrot.slane %v6565_v29, 5 }
 0x39f   :  { %v4544_v20 = vadd.f32 %v4503_v49, %v9525_v60  ;;  %v4827_v11 = vpop.f32.mrf.mxu3  ;;  %v5350_v60 = vrot.slane %v5349_v10, 4  ;;  %v6399_v49 = vunpack.c.l.b16 %v6353_v8  ;;  %v5593_v10 = vld [vmem:[#allocation2 + $0x8c] sm:$0x1] }
 0x3a0   :  { %v5686_v52 = vrot.slane %v5593_v10, 5  ;;  %v9574_v61 = vpop.f32.mrf.mxu0 }
 0x3a1   :  { %v9554_v63 = vadd.f32 %v4825_v22, %v4544_v20  ;;  %v5368_v22 = vrot.slane %v5366_v36, 5  ;;  %v5355_v56 = vsel %vm8497_vm8, %v5350_v60, %v5354_v12  ;;  %v6408_v34 = vpack.c.b16 %v6400_v44, %v6399_v49 }
 0x3a2   :  { %v4092_v45 = vpop.f32.mrf.mxu1  ;;  %v5401_v15 = vunpack.c.l.b16 %v5355_v56  ;;  %v5690_v36 = vrot.slane %v5595_v4, 5  ;;  %v5687_v48 = vsel %vm8640_vm11, %v7755_v47, %v5686_v52  ;;  %v5082_v44 = vadd.f32 %v9473_v28, %v9435_v1  ;;  %v6567_v52 = vld [vmem:[#allocation2 + $0x24] sm:$0x1] }
 0x3a3   :  { %v5369_v54 = vsel %vm8497_vm8, %v5364_v3, %v5368_v22  ;;  %v7886_v22 = vrot.slane %v6564_v55, 9  ;;  %v5083_v1 = vadd.f32 %v9484_v9, %v9449_v30  ;;  %v5084_v30 = vadd.f32 %v9503_v33, %v9460_v62 }
 0x3a4   :  { %6053 = vmatmul.bf16.gmra.mxu3 %v7816_v35  ;;  %v5402_v38 = vunpack.c.l.b16 %v5369_v54  ;;  %v5691_v12 = vsel %vm8640_vm11, %v7756_v18, %v5690_v36  ;;  %v5085_v62 = vadd.f32 %v9521_v24, %v9471_v39 }
 0x3a5   :  { %v5724_v56 = vunpack.c.l.b16 %v5691_v12  ;;  %v6633_v8 = vsel %vm8640_vm11, %v7886_v22, %v6632_v5 }
 0x3a6   :  { %v4505_v6 = vpop.f32.mrf.mxu2  ;;  %v5410_v20 = vpack.c.b16 %v5402_v38, %v5401_v15  ;;  %v6708_v49 = vunpack.c.l.b16 %v6633_v8  ;;  %v6572_v8 = vld [vmem:[#allocation2 + $0x38] sm:$0xe] }
 0x3a7   :  { %v4545_v14 = vadd.f32 %v4505_v6, %v9536_v37  ;;  %v4830_v58 = vpop.f32.mrf.mxu3  ;;  %v5723_v6 = vunpack.c.l.b16 %v5687_v48 }
 0x3a9   :  { %v9571_v41 = vadd.f32 %v4827_v11, %v4545_v14  ;;  %v6562_v11 = vld [vmem:[#allocation2 + $0x10] sm:$0xe]  ;;  %v5732_v15 = vpack.c.b16 %v5724_v56, %v5723_v6 }
 0x3aa   :  { %v4095_v37 = vpop.f32.mrf.mxu1  ;;  %v7885_v35 = vrot.slane %v6562_v11, 9  ;;  %v6570_v56 = vld [vmem:[#allocation2 + $0x30] sm:$0xe] }
 0x3ab   :  { %5827 = vmatmul.bf16.gmra.mxu2 %v5731_v42 }
 0x3ad   :  { %5510 = vmatmul.bf16.gmra.mxu1 %v5410_v20  ;;  %v6566_v20 = vld [vmem:[#allocation2 + $0x20] sm:$0xe] }
 0x3ae   :  { %v4508_v19 = vpop.f32.mrf.mxu2  ;;  %6508 = vmatmul.bf16.gmra.mxu0 %v6408_v34  ;;  %v9590_v34 = vpop.f32.mrf.mxu0  ;;  %v7887_v11 = vrot.slane %v6566_v20, 9 }
 0x3af   :  { %v4546_v25 = vadd.f32 %v4508_v19, %v9551_v31  ;;  %v4832_v3 = vpop.f32.mrf.mxu3  ;;  %v6628_v31 = vrot.slane %v6563_v26, 5  ;;  %v6568_v19 = vld [vmem:[#allocation2 + $0x28] sm:$0xe] }
 0x3b0   :  { %v7888_v26 = vrot.slane %v6568_v19, 9 }
 0x3b1   :  { %v9576_v60 = vadd.f32 %v4830_v58, %v4546_v25  ;;  %v6629_v14 = vsel %vm8640_vm11, %v7885_v35, %v6628_v31  ;;  %v6636_v25 = vrot.slane %v6567_v52, 5 }
 0x3b2   :  { %v4097_v27 = vpop.f32.mrf.mxu1  ;;  %v6707_v38 = vunpack.c.l.b16 %v6629_v14  ;;  %v6571_v14 = vld [vmem:[#allocation2 + $0x34] sm:$0x1] }
 0x3b4   :  { %6058 = vmatmul.bf16.gmra.mxu3 %v7820_v59  ;;  %v6723_v17 = vpack.c.b16 %v6708_v49, %v6707_v38  ;;  %v6644_v38 = vrot.slane %v6571_v14, 5  ;;  %v7890_v49 = vrot.slane %v6572_v8, 9 }
 0x3b6   :  { %v4510_v54 = vpop.f32.mrf.mxu2  ;;  %v9602_v22 = vpop.f32.mrf.mxu0 }
 0x3b7   :  { %v4547_v46 = vadd.f32 %v4510_v54, %v4092_v45  ;;  %v4835_v42 = vpop.f32.mrf.mxu3  ;;  %v6569_v45 = vld [vmem:[#allocation2 + $0x2c] sm:$0x1] }
 0x3b8   :  { %v6640_v55 = vrot.slane %v6569_v45, 5 }
 0x3b9   :  { %v9586_v58 = vadd.f32 %v4832_v3, %v4547_v46 }
 0x3ba   :  { %v5476_v2 = vpop.f32.mrf.mxu1  ;;  %v6641_v23 = vsel %vm8640_vm11, %v7888_v26, %v6640_v55 }
 0x3bb   :  { %5832 = vmatmul.bf16.gmra.mxu2 %v5732_v15  ;;  %v5532_v10 = vadd.f32 %v5476_v2, %v5082_v44  ;;  %v6710_v31 = vunpack.c.l.b16 %v6641_v23  ;;  %v7889_v15 = vrot.slane %v6570_v56, 9 }
 0x3bd   :  { %6795 = vmatmul.bf16.vlgmr.msra.gmra.mxu1 %v6723_v17 }
 0x3be   :  { %v4513_v4 = vpop.f32.mrf.mxu2  ;;  %v9610_v33 = vpop.f32.mrf.mxu0 }
 0x3bf   :  { %v4548_v47 = vadd.f32 %v4513_v4, %v4095_v37  ;;  %v4837_v36 = vpop.f32.mrf.mxu3  ;;  %v6637_v37 = vsel %vm8640_vm11, %v7887_v11, %v6636_v25 }
 0x3c0   :  { %v6709_v12 = vunpack.c.l.b16 %v6637_v37  ;;  %v6576_v37 = vld [vmem:[#allocation2 + $0x48] sm:$0xe] }
 0x3c1   :  { %v9592_v18 = vadd.f32 %v4835_v42, %v4548_v47 }
 0x3c2   :  { %v5478_v28 = vpop.f32.mrf.mxu1  ;;  %v6724_v59 = vpack.c.b16 %v6710_v31, %v6709_v12  ;;  %v7892_v12 = vrot.slane %v6576_v37, 9 }
 0x3c3   :  { %v5533_v29 = vadd.f32 %v5478_v28, %v5083_v1  ;;  %v6574_v1 = vld [vmem:[#allocation2 + $0x40] sm:$0xe] }
 0x3c6   :  { %v4515_v3 = vpop.f32.mrf.mxu2  ;;  %v9620_v26 = vpop.f32.mrf.mxu0 }
 0x3c7   :  { %v4549_v53 = vadd.f32 %v4515_v3, %v4097_v27  ;;  %v6024_v35 = vpop.f32.mrf.mxu3  ;;  %v6573_v27 = vld [vmem:[#allocation2 + $0x3c] sm:$0x1]  ;;  %v6575_v3 = vld [vmem:[#allocation2 + $0x44] sm:$0x1] }
 0x3c8   :  { %v6648_v44 = vrot.slane %v6573_v27, 5 }
 0x3c9   :  { %v9600_v48 = vadd.f32 %v4837_v36, %v4549_v53  ;;  %v5086_v36 = vadd.f32 %v9534_v40, %v9482_v32  ;;  %v7891_v53 = vrot.slane %v6574_v1, 9  ;;  %v5087_v32 = vadd.f32 %v9549_v0, %v9497_v16 }
 0x3ca   :  { %v5481_v9 = vpop.f32.mrf.mxu1  ;;  %v6649_v20 = vsel %vm8640_vm11, %v7890_v49, %v6648_v44  ;;  %v5088_v16 = vadd.f32 %v9560_v7, %v9508_v57  ;;  %v6578_v49 = vld [vmem:[#allocation2 + $0x60] sm:$0xe]  ;;  %v5089_v7 = vadd.f32 %v9574_v61, %v9523_v51  ;;  %v5090_v1 = vadd.f32 %v9590_v34, %v9530_v50  ;;  %v6582_v61 = vld [vmem:[#allocation2 + $0x70] sm:$0xe] }
 0x3cb   :  { %v5534_v5 = vadd.f32 %v5481_v9, %v5084_v30  ;;  %v6712_v45 = vunpack.c.l.b16 %v6649_v20 }
 0x3cd   :  { %6800 = vmatmul.bf16.gmra.mxu1 %v6724_v59 }
 0x3ce   :  { %v5798_v6 = vpop.f32.mrf.mxu2 }
 0x3cf   :  { %v5854_v54 = vadd.f32 %v5798_v6, %v5532_v10  ;;  %v6026_v42 = vpop.f32.mrf.mxu3  ;;  %v6645_v10 = vsel %vm8640_vm11, %v7889_v15, %v6644_v38 }
 0x3d0   :  { %v6711_v19 = vunpack.c.l.b16 %v6645_v10 }
 0x3d1   :  { %v9606_v46 = vadd.f32 %v6024_v35, %v5854_v54  ;;  %v6652_v35 = vrot.slane %v6575_v3, 5  ;;  %v9632_v54 = vpop.f32.mrf.mxu0 }
 0x3d2   :  { %v5483_v2 = vpop.f32.mrf.mxu1  ;;  %v6725_v25 = vpack.c.b16 %v6712_v45, %v6711_v19 }
 0x3d3   :  { %v5535_v17 = vadd.f32 %v5483_v2, %v5085_v62  ;;  %v6579_v62 = vld [vmem:[#allocation2 + $0x64] sm:$0x1]  ;;  %v6580_v2 = vld [vmem:[#allocation2 + $0x68] sm:$0xe] }
 0x3d4   :  { %v6660_v19 = vrot.slane %v6579_v62, 5  ;;  %v7894_v45 = vrot.slane %v6580_v2, 9 }
 0x3d6   :  { %v5800_v4 = vpop.f32.mrf.mxu2 }
 0x3d7   :  { %v5855_v47 = vadd.f32 %v5800_v4, %v5533_v29  ;;  %v6029_v39 = vpop.f32.mrf.mxu3  ;;  %v6577_v29 = vld [vmem:[#allocation2 + $0x4c] sm:$0x1] }
 0x3d8   :  { %v6656_v31 = vrot.slane %v6577_v29, 5  ;;  %v6583_v29 = vld [vmem:[#allocation2 + $0x74] sm:$0x1] }
 0x3d9   :  { %v9616_v52 = vadd.f32 %v6026_v42, %v5855_v47  ;;  %v9642_v20 = vpop.f32.mrf.mxu0  ;;  %v7893_v47 = vrot.slane %v6578_v49, 9  ;;  %v6589_v49 = vld [vmem:[#allocation2 + $0x8c] sm:$0x1] }
 0x3da   :  { %v5486_v24 = vpop.f32.mrf.mxu1  ;;  %v6657_v6 = vsel %vm8640_vm11, %v7892_v12, %v6656_v31  ;;  %v7895_v12 = vrot.slane %v6582_v61, 9  ;;  %v6668_v31 = vrot.slane %v6583_v29, 5 }
 0x3db   :  { %v5536_v11 = vadd.f32 %v5486_v24, %v5086_v36  ;;  %v6714_v27 = vunpack.c.l.b16 %v6657_v6  ;;  %v6661_v24 = vsel %vm8640_vm11, %v7893_v47, %v6660_v19  ;;  %v5093_v47 = vadd.f32 %v9620_v26, %v9571_v41  ;;  %v6590_v41 = vld [vmem:[#allocation2 + $0x90] sm:$0xe]  ;;  %v6591_v26 = vld [vmem:[#allocation2 + $0x94] sm:$0x1] }
 0x3dc   :  { %v6684_v61 = vrot.slane %v6591_v26, 5 }
 0x3dd   :  { %6805 = vmatmul.bf16.gmra.mxu1 %v6725_v25  ;;  %v6715_v25 = vunpack.c.l.b16 %v6661_v24  ;;  %v5094_v24 = vadd.f32 %v9632_v54, %v9576_v60 }
 0x3de   :  { %v5803_v55 = vpop.f32.mrf.mxu2 }
 0x3df   :  { %v5856_v28 = vadd.f32 %v5803_v55, %v5534_v5  ;;  %v6031_v9 = vpop.f32.mrf.mxu3  ;;  %v6653_v5 = vsel %vm8640_vm11, %v7891_v53, %v6652_v35  ;;  %v6584_v53 = vld [vmem:[#allocation2 + $0x78] sm:$0xe]  ;;  %v6585_v35 = vld [vmem:[#allocation2 + $0x7c] sm:$0x1] }
 0x3e0   :  { %v6713_v8 = vunpack.c.l.b16 %v6653_v5  ;;  %v6669_v5 = vsel %vm8640_vm11, %v7895_v12, %v6668_v31 }
 0x3e1   :  { %v9622_v23 = vadd.f32 %v6029_v39, %v5856_v28  ;;  %v9654_v28 = vpop.f32.mrf.mxu0 }
 0x3e2   :  { %v5488_v40 = vpop.f32.mrf.mxu1  ;;  %v6726_v15 = vpack.c.b16 %v6714_v27, %v6713_v8  ;;  %v5092_v27 = vadd.f32 %v9610_v33, %v9554_v63 }
 0x3e3   :  { %v9626_v30 = vadd.f32 %v5488_v40, %v5087_v32  ;;  %v7896_v32 = vrot.slane %v6584_v53, 9  ;;  %v6672_v40 = vrot.slane %v6585_v35, 5  ;;  %v5095_v35 = vadd.f32 %v9642_v20, %v9586_v58 }
 0x3e5   :  { %v6673_v6 = vsel %vm8640_vm11, %v7896_v32, %v6672_v40 }
 0x3e6   :  { %v5805_v59 = vpop.f32.mrf.mxu2  ;;  %v6718_v8 = vunpack.c.l.b16 %v6673_v6 }
 0x3e7   :  { %v5857_v56 = vadd.f32 %v5805_v59, %v5535_v17  ;;  %v6581_v17 = vld [vmem:[#allocation2 + $0x6c] sm:$0x1]  ;;  %v6034_v4 = vpop.f32.mrf.mxu3 }
 0x3e8   :  { %v6664_v57 = vrot.slane %v6581_v17, 5 }
 0x3e9   :  { %v9634_v14 = vadd.f32 %v6031_v9, %v5857_v56  ;;  %v5091_v9 = vadd.f32 %v9602_v22, %v9547_v21  ;;  %v5063_v34 = vpop.f32.mrf.mxu0  ;;  %v6717_v56 = vunpack.c.l.b16 %v6669_v5  ;;  %v6586_v21 = vld [vmem:[#allocation2 + $0x80] sm:$0xe]  ;;  %v6587_v22 = vld [vmem:[#allocation2 + $0x84] sm:$0x1] }
 0x3ea   :  { %v5491_v0 = vpop.f32.mrf.mxu1  ;;  %v7897_v62 = vrot.slane %v6586_v21, 9  ;;  %v6676_v2 = vrot.slane %v6587_v22, 5  ;;  %v5097_v20 = vadd.f32 %v5063_v34, %v9600_v48 }
 0x3eb   :  { %v9638_v42 = vadd.f32 %v5491_v0, %v5088_v16 }
 0x3ec   :  { %v6677_v63 = vsel %vm8640_vm11, %v7897_v62, %v6676_v2 }
 0x3ed   :  { %6810 = vmatmul.bf16.gmra.mxu1 %v6726_v15  ;;  %v6728_v15 = vpack.c.b16 %v6718_v8, %v6717_v56 }
 0x3ee   :  { %v5808_v38 = vpop.f32.mrf.mxu2 }
 0x3ef   :  { %v5858_v44 = vadd.f32 %v5808_v38, %v5536_v11  ;;  %v6665_v11 = vsel %vm8640_vm11, %v7894_v45, %v6664_v57  ;;  %v6588_v38 = vld [vmem:[#allocation2 + $0x88] sm:$0xe]  ;;  %v6719_v57 = vunpack.c.l.b16 %v6677_v63  ;;  %v6036_v62 = vpop.f32.mrf.mxu3 }
 0x3f0   :  { %v6716_v55 = vunpack.c.l.b16 %v6665_v11  ;;  %v7898_v17 = vrot.slane %v6588_v38, 9 }
 0x3f1   :  { %v9640_v10 = vadd.f32 %v6034_v4, %v5858_v44  ;;  %v6474_v44 = vpop.f32.mrf.mxu0  ;;  %v6680_v4 = vrot.slane %v6589_v49, 5 }
 0x3f2   :  { %v5493_v36 = vpop.f32.mrf.mxu1  ;;  %v6727_v51 = vpack.c.b16 %v6716_v55, %v6715_v25 }
 0x3f3   :  { %v9646_v39 = vadd.f32 %v5493_v36, %v5089_v7  ;;  %v6681_v33 = vsel %vm8640_vm11, %v7898_v17, %v6680_v4 }
 0x3f4   :  { %v6720_v7 = vunpack.c.l.b16 %v6681_v33 }
 0x3f6   :  { %v6729_v55 = vpack.c.b16 %v6720_v7, %v6719_v57 }
 0x3f9   :  { %v6476_v36 = vpop.f32.mrf.mxu0 }
 0x3fa   :  { %v5496_v3 = vpop.f32.mrf.mxu1 }
 0x3fb   :  { %v9656_v37 = vadd.f32 %v5496_v3, %v5090_v1  ;;  %v6592_v1 = vld [vmem:[#allocation2 + $0x98] sm:$0xe]  ;;  %v6593_v3 = vld [vmem:[#allocation2 + $0x9c] sm:$0x1] }
 0x3fc   :  { %v7900_v29 = vrot.slane %v6592_v1, 9  ;;  %v6688_v53 = vrot.slane %v6593_v3, 5 }
 0x3fd   :  { %6815 = vmatmul.bf16.gmra.mxu1 %v6727_v51  ;;  %v7899_v51 = vrot.slane %v6590_v41, 9 }
 0x3fe   :  { %v6689_v54 = vsel %vm8640_vm11, %v7900_v29, %v6688_v53 }
 0x3ff   :  { %v6685_v60 = vsel %vm8640_vm11, %v7899_v51, %v6684_v61 }
 0x400   :  { %v6721_v40 = vunpack.c.l.b16 %v6685_v60 }
 0x401   :  { %v6479_v12 = vpop.f32.mrf.mxu0 }
 0x402   :  { %v5498_v59 = vpop.f32.mrf.mxu1  ;;  %v6532_v48 = vadd.f32 %v6479_v12, %v9622_v23 }
 0x403   :  { %v9660_v50 = vadd.f32 %v5498_v59, %v5091_v9  ;;  %v6722_v9 = vunpack.c.l.b16 %v6689_v54  ;;  %v5096_v59 = vadd.f32 %v9654_v28, %v9592_v18  ;;  %v5810_v18 = vpop.f32.mrf.mxu2  ;;  %v6531_v28 = vadd.f32 %v6476_v36, %v9616_v52 }
 0x405   :  { %v6730_v56 = vpack.c.b16 %v6722_v9, %v6721_v40  ;;  %v5859_v9 = vadd.f32 %v5810_v18, %v9626_v30 }
 0x409   :  { %v6481_v58 = vpop.f32.mrf.mxu0 }
 0x40a   :  { %v5501_v16 = vpop.f32.mrf.mxu1 }
 0x40b   :  { %v9668_v0 = vadd.f32 %v5501_v16, %v5092_v27  ;;  %v5813_v2 = vpop.f32.mrf.mxu2 }
 0x40d   :  { %6820 = vmatmul.bf16.gmra.mxu1 %v6728_v15  ;;  %v6530_v15 = vadd.f32 %v6474_v44, %v9606_v46  ;;  %v6533_v46 = vadd.f32 %v6481_v58, %v9634_v14 }
 0x411   :  { %v6484_v16 = vpop.f32.mrf.mxu0 }
 0x412   :  { %v5503_v19 = vpop.f32.mrf.mxu1  ;;  %v6534_v43 = vadd.f32 %v6484_v16, %v9640_v10  ;;  %v6039_v10 = vpop.f32.mrf.mxu3 }
 0x413   :  { %v9672_v45 = vadd.f32 %v5503_v19, %v5093_v47  ;;  %v5815_v19 = vpop.f32.mrf.mxu2 }
 0x419   :  { %v6486_v4 = vpop.f32.mrf.mxu0 }
 0x41a   :  { %v5506_v11 = vpop.f32.mrf.mxu1  ;;  %v6041_v33 = vpop.f32.mrf.mxu3 }
 0x41b   :  { %v9680_v25 = vadd.f32 %v5506_v11, %v5094_v24  ;;  %v5818_v7 = vpop.f32.mrf.mxu2 }
 0x41c   :  { %v5862_v16 = vadd.f32 %v5818_v7, %v9656_v37 }
 0x41d   :  { %6825 = vmatmul.bf16.gmra.mxu1 %v6729_v55 }
 0x421   :  { %v6489_v63 = vpop.f32.mrf.mxu0 }
 0x422   :  { %v5508_v31 = vpop.f32.mrf.mxu1  ;;  %v6044_v24 = vpop.f32.mrf.mxu3 }
 0x423   :  { %v9684_v32 = vadd.f32 %v5508_v31, %v5095_v35  ;;  %v5820_v11 = vpop.f32.mrf.mxu2 }
 0x429   :  { %v6491_v36 = vpop.f32.mrf.mxu0 }
 0x42a   :  { %v5511_v5 = vpop.f32.mrf.mxu1  ;;  %v6046_v26 = vpop.f32.mrf.mxu3 }
 0x42b   :  { %v9692_v6 = vadd.f32 %v5511_v5, %v5096_v59  ;;  %v5823_v3 = vpop.f32.mrf.mxu2  ;;  %v5860_v5 = vadd.f32 %v5813_v2, %v9638_v42 }
 0x42d   :  { %6830 = vmatmul.bf16.gmra.mxu1 %v6730_v56 }
 0x431   :  { %v6494_v55 = vpop.f32.mrf.mxu0 }
 0x432   :  { %v5513_v8 = vpop.f32.mrf.mxu1  ;;  %v6049_v51 = vpop.f32.mrf.mxu3 }
 0x433   :  { %v9695_v27 = vadd.f32 %v5513_v8, %v5097_v20  ;;  %v5825_v29 = vpop.f32.mrf.mxu2  ;;  %v6085_v20 = vadd.f32 %v6036_v62, %v5859_v9  ;;  %v5861_v8 = vadd.f32 %v5815_v19, %v9646_v39  ;;  %v6088_v62 = vadd.f32 %v6044_v24, %v5862_v16 }
 0x435   :  { %v6087_v30 = vadd.f32 %v6041_v33, %v5861_v8 }
 0x437   :  { %v6537_v24 = vadd.f32 %v6491_v36, %v6087_v30 }
 0x439   :  { %v6496_v14 = vpop.f32.mrf.mxu0 }
 0x43a   :  { %v6796_v21 = vpop.f32.mrf.mxu1  ;;  %v6051_v12 = vpop.f32.mrf.mxu3 }
 0x43b   :  { %v9699_v22 = vadd.f32 %v6796_v21, %v6530_v15  ;;  %v5828_v31 = vpop.f32.mrf.mxu2  ;;  %v5863_v21 = vadd.f32 %v5820_v11, %v9660_v50  ;;  %v5865_v11 = vadd.f32 %v5825_v29, %v9672_v45 }
 0x43d   :  { %v6922_v42 = vmul.f32 %v9699_v22, %v9699_v22  ;;  %v6091_v29 = vadd.f32 %v6051_v12, %v5865_v11 }
 0x441   :  { %v9712_v53 = vpop.f32.mrf.mxu0 }
 0x442   :  { %v6798_v38 = vpop.f32.mrf.mxu1  ;;  %v6054_v40 = vpop.f32.mrf.mxu3 }
 0x443   :  { %v9702_v49 = vadd.f32 %v6798_v38, %v6531_v28  ;;  %v5830_v59 = vpop.f32.mrf.mxu2  ;;  %v6535_v38 = vadd.f32 %v6486_v4, %v6085_v20 }
 0x444   :  { %v5867_v16 = vadd.f32 %v5830_v59, %v9684_v32 }
 0x445   :  { %v6923_v15 = vmul.f32 %v9702_v49, %v9702_v49  ;;  %v6900_v39 = vadd.f32 %v9702_v49, %v9699_v22 }
 0x447   :  { %v6938_v37 = vadd.f32 %v6923_v15, %v6922_v42 }
 0x449   :  { %v9714_v60 = vpop.f32.mrf.mxu0 }
 0x44a   :  { %v6801_v34 = vpop.f32.mrf.mxu1  ;;  %v6056_v28 = vpop.f32.mrf.mxu3 }
 0x44b   :  { %v9705_v17 = vadd.f32 %v6801_v34, %v6532_v48  ;;  %v6093_v59 = vadd.f32 %v6056_v28, %v5867_v16 }
 0x44d   :  { %v6924_v18 = vmul.f32 %v9705_v17, %v9705_v17  ;;  %v6901_v19 = vadd.f32 %v6900_v39, %v9705_v17 }
 0x44f   :  { %v6939_v4 = vadd.f32 %v6938_v37, %v6924_v18 }
 0x451   :  { %v9720_v56 = vpop.f32.mrf.mxu0 }
 0x452   :  { %v6803_v44 = vpop.f32.mrf.mxu1 }
 0x453   :  { %v9708_v47 = vadd.f32 %v6803_v44, %v6533_v46  ;;  %v5864_v46 = vadd.f32 %v5823_v3, %v9668_v0  ;;  %v5833_v44 = vpop.f32.mrf.mxu2  ;;  %v6538_v3 = vadd.f32 %v6494_v55, %v6088_v62 }
 0x455   :  { %v6925_v48 = vmul.f32 %v9708_v47, %v9708_v47  ;;  %v6090_v9 = vadd.f32 %v6049_v51, %v5864_v46 }
 0x45a   :  { %v6806_v52 = vpop.f32.mrf.mxu1 }
 0x45b   :  { %v9710_v57 = vadd.f32 %v6806_v52, %v6534_v43  ;;  %v6086_v43 = vadd.f32 %v6039_v10, %v5860_v5  ;;  %v6089_v10 = vadd.f32 %v6046_v26, %v5863_v21  ;;  %v6506_v52 = vpop.f32.mrf.mxu0  ;;  %v5866_v5 = vadd.f32 %v5828_v31, %v9680_v25  ;;  %v5835_v30 = vpop.f32.mrf.mxu2 }
 0x45c   :  { %v5868_v21 = vadd.f32 %v5833_v44, %v9692_v6  ;;  %v5869_v37 = vadd.f32 %v5835_v30, %v9695_v27 }
 0x45d   :  { %v6536_v50 = vadd.f32 %v6489_v63, %v6086_v43  ;;  %v6926_v33 = vmul.f32 %v9710_v57, %v9710_v57  ;;  %v6940_v63 = vadd.f32 %v6939_v4, %v6925_v48  ;;  %v6539_v45 = vadd.f32 %v6496_v14, %v6089_v10  ;;  %v6059_v43 = vpop.f32.mrf.mxu3 }
 0x45e   :  { %v6092_v31 = vadd.f32 %v6054_v40, %v5866_v5  ;;  %v6540_v14 = vadd.f32 %v9712_v53, %v6090_v9  ;;  %v6094_v62 = vadd.f32 %v6059_v43, %v5868_v21  ;;  %v6543_v10 = vadd.f32 %v6506_v52, %v6093_v59 }
 0x45f   :  { %v6941_v8 = vadd.f32 %v6940_v63, %v6926_v33 }
 0x460   :  { %v6542_v28 = vadd.f32 %v9720_v56, %v6092_v31 }
 0x462   :  { %v6808_v23 = vpop.f32.mrf.mxu1 }
 0x463   :  { %v9737_v34 = vadd.f32 %v6808_v23, %v6535_v38  ;;  %v6902_v23 = vadd.f32 %v6901_v19, %v9708_v47  ;;  %v6509_v40 = vpop.f32.mrf.mxu0 }
 0x464   :  { %v6544_v27 = vadd.f32 %v6509_v40, %v6094_v62 }
 0x465   :  { %v6927_v26 = vmul.f32 %v9737_v34, %v9737_v34  ;;  %v6903_v20 = vadd.f32 %v6902_v23, %v9710_v57  ;;  %v6061_v19 = vpop.f32.mrf.mxu3 }
 0x466   :  { %v6095_v33 = vadd.f32 %v6061_v19, %v5869_v37 }
 0x467   :  { %v6942_v15 = vadd.f32 %v6941_v8, %v6927_v26 }
 0x46a   :  { %v6811_v41 = vpop.f32.mrf.mxu1 }
 0x46b   :  { %v9743_v7 = vadd.f32 %v6811_v41, %v6536_v50 }
 0x46d   :  { %v6928_v36 = vmul.f32 %v9743_v7, %v9743_v7 }
 0x46f   :  { %v6943_v12 = vadd.f32 %v6942_v15, %v6928_v36 }
 0x472   :  { %v6813_v1 = vpop.f32.mrf.mxu1 }
 0x473   :  { %v9749_v0 = vadd.f32 %v6813_v1, %v6537_v24  ;;  %v6904_v1 = vadd.f32 %v6903_v20, %v9737_v34 }
 0x475   :  { %v6929_v55 = vmul.f32 %v9749_v0, %v9749_v0 }
 0x477   :  { %v6944_v38 = vadd.f32 %v6943_v12, %v6929_v55 }
 0x47a   :  { %v6816_v61 = vpop.f32.mrf.mxu1 }
 0x47b   :  { %v9755_v41 = vadd.f32 %v6816_v61, %v6538_v3  ;;  %v6905_v61 = vadd.f32 %v6904_v1, %v9743_v7  ;;  %v6511_v3 = vpop.f32.mrf.mxu0 }
 0x47c   :  { %v6545_v8 = vadd.f32 %v6511_v3, %v6095_v33 }
 0x47d   :  { %v6930_v32 = vmul.f32 %v9755_v41, %v9755_v41  ;;  %v6906_v42 = vadd.f32 %v6905_v61, %v9749_v0 }
 0x47f   :  { %v6907_v53 = vadd.f32 %v6906_v42, %v9755_v41  ;;  %v6945_v48 = vadd.f32 %v6944_v38, %v6930_v32 }
 0x482   :  { %v6818_v35 = vpop.f32.mrf.mxu1 }
 0x483   :  { %v9761_v25 = vadd.f32 %v6818_v35, %v6539_v45  ;;  %v6541_v35 = vadd.f32 %v9714_v60, %v6091_v29 }
 0x485   :  { %v6931_v6 = vmul.f32 %v9761_v25, %v9761_v25 }
 0x487   :  { %v6946_v46 = vadd.f32 %v6945_v48, %v6931_v6 }
 0x48a   :  { %v9716_v54 = vpop.f32.mrf.mxu1 }
 0x48b   :  { %v9770_v18 = vadd.f32 %v9716_v54, %v6540_v14  ;;  %v6908_v54 = vadd.f32 %v6907_v53, %v9761_v25 }
 0x48d   :  { %v6932_v60 = vmul.f32 %v9770_v18, %v9770_v18  ;;  %v6909_v4 = vadd.f32 %v6908_v54, %v9770_v18 }
 0x48f   :  { %v6947_v24 = vadd.f32 %v6946_v46, %v6932_v60 }
 0x492   :  { %v9722_v58 = vpop.f32.mrf.mxu1 }
 0x493   :  { %v9777_v39 = vadd.f32 %v9722_v58, %v6541_v35 }
 0x495   :  { %v6933_v58 = vmul.f32 %v9777_v39, %v9777_v39  ;;  %v6910_v11 = vadd.f32 %v6909_v4, %v9777_v39 }
 0x497   :  { %v6948_v52 = vadd.f32 %v6947_v24, %v6933_v58  ;;  %v6976_v58 = vld [vmem:[%s9838_s6] sm:$0x1] }
 0x49a   :  { %v6826_v2 = vpop.f32.mrf.mxu1 }
 0x49b   :  { %v9784_v50 = vadd.f32 %v6826_v2, %v6542_v28 }
 0x49d   :  { %v6934_v2 = vmul.f32 %v9784_v50, %v9784_v50  ;;  %v6911_v63 = vadd.f32 %v6910_v11, %v9784_v50 }
 0x49f   :  { %v6949_v9 = vadd.f32 %v6948_v52, %v6934_v2 }
 0x4a2   :  { %v6828_v51 = vpop.f32.mrf.mxu1 }
 0x4a3   :  { %v9789_v56 = vadd.f32 %v6828_v51, %v6543_v10 }
 0x4a5   :  { %v6935_v26 = vmul.f32 %v9789_v56, %v9789_v56  ;;  %v6912_v5 = vadd.f32 %v6911_v63, %v9789_v56 }
 0x4a7   :  { %v6950_v45 = vadd.f32 %v6949_v9, %v6935_v26 }
 0x4aa   :  { %v6831_v44 = vpop.f32.mrf.mxu1 }
 0x4ab   :  { %v9794_v23 = vadd.f32 %v6831_v44, %v6544_v27  ;;  %v6963_v44 = vld [vmem:[%s9837_s5] sm:$0x1]  ;;  %s8300_s5 = smov [#allocation10]  }
 0x4ac   :  { %s7053_s6 = sshll.u32 %s8300_s5, 4  ;;  %s7054_s6 = int_to_ptr.vmem [resolvable:$true] %s7053_s6 }
 0x4ad   :  { %v6936_v20 = vmul.f32 %v9794_v23, %v9794_v23  ;;  %v6913_v29 = vadd.f32 %v6912_v5, %v9794_v23 }
 0x4af   :  { %v6951_v43 = vadd.f32 %v6950_v45, %v6936_v20 }
 0x4b2   :  { %v6833_v36 = vpop.f32.mrf.mxu1 }
 0x4b3   :  { %v6867_v16 = vadd.f32 %v6833_v36, %v6545_v8 }
 0x4b5   :  { %v6914_v1 = vadd.f32 %v6913_v29, %v6867_v16  ;;  %v6937_v15 = vmul.f32 %v6867_v16, %v6867_v16 }
 0x4b7   :  { %v6915_v55 = vrot.slane %v6914_v1, 4  ;;  %v6952_v51 = vadd.f32 %v6951_v43, %v6937_v15 }
 0x4b9   :  { %v6916_v31 = vadd.f32 %v6915_v55, %v6914_v1  ;;  %v6953_v21 = vrot.slane %v6952_v51, 4 }
 0x4bb   :  { %v6917_v61 = vrot.slane %v6916_v31, 2  ;;  %v6954_v14 = vadd.f32 %v6953_v21, %v6952_v51 }
 0x4bd   :  { %v6918_v12 = vadd.f32 %v6917_v61, %v6916_v31  ;;  %v6955_v32 = vrot.slane %v6954_v14, 2 }
 0x4bf   :  { %v6919_v59 = vrot.slane %v6918_v12, 1  ;;  %v6956_v30 = vadd.f32 %v6955_v32, %v6954_v14 }
 0x4c1   :  { %v6920_v42 = vadd.f32 %v6919_v59, %v6918_v12  ;;  %v6957_v35 = vrot.slane %v6956_v30, 1 }
 0x4c3   :  { %v6921_v40 = vmul.f32 %v6920_v42, %v9180_v13  ;;  %v6958_v38 = vadd.f32 %v6957_v35, %v6956_v30 }
 0x4c5   :  { %v6959_v6 = vmul.f32 %v6958_v38, %v9180_v13  ;;  %v6960_v62 = vmul.f32 %v6921_v40, %v6921_v40 }
 0x4c7   :  { %v6961_v53 = vsub.f32 %v6959_v6, %v6960_v62 }
 0x4c9   :  { %v6962_v28 = vmax.f32 %v6961_v53, 0.0 }
 0x4cb   :  { %v6964_v37 = vadd.f32 1e-05, %v6962_v28 }
 0x4cd   :  { %8186 = vrsqrt.f32 %v6964_v37  ;;  %vm6971_vm3 = vweird.f32 %v6964_v37 }
 0x4d3   :  { %v8187_v48 = vpop.eup %8186 }
 0x4d4   :  { %v6966_v54 = vmul.f32 %v8187_v48, %v6964_v37  ;;  %vm6972_vm1 = vweird.f32 %v8187_v48 }
 0x4d5   :  { %vm6973_vm6 = vmor %vm6971_vm3, %vm6972_vm1 }
 0x4d6   :  { %v6967_v60 = vmul.f32 %v8187_v48, %v6966_v54 }
 0x4d8   :  { %v6968_v10 = vmul.f32 0.5, %v6967_v60 }
 0x4da   :  { %v6969_v46 = vsub.f32 1.5, %v6968_v10 }
 0x4dc   :  { %v6970_v19 = vmul.f32 %v8187_v48, %v6969_v46 }
 0x4de   :  { %v6974_v4 = vsel %vm6973_vm6, %v8187_v48, %v6970_v19 }
 0x4df   :  { %v6975_v13 = vmul.f32 %v6974_v4, %v6963_v44 }
 0x4e1   :  { %v6977_v27 = vmul.f32 %v6975_v13, %v6921_v40  ;;  %v6980_v33 = vperm.slane %v6975_v13, 0 }
 0x4e3   :  { %v6978_v24 = vsub.f32 %v6976_v58, %v6977_v27  ;;  %v6997_v11 = vmul.f32 %v6980_v33, %v6867_v16  ;;  %v6982_v2 = vmul.f32 %v6980_v33, %v9699_v22  ;;  %v6983_v52 = vmul.f32 %v6980_v33, %v9702_v49 }
 0x4e4   :  { %v6984_v63 = vmul.f32 %v6980_v33, %v9705_v17  ;;  %v6985_v26 = vmul.f32 %v6980_v33, %v9708_v47  ;;  %v6986_v3 = vmul.f32 %v6980_v33, %v9710_v57  ;;  %v6987_v9 = vmul.f32 %v6980_v33, %v9737_v34 }
 0x4e5   :  { %v6999_v5 = vperm.slane %v6978_v24, 0  ;;  %v6988_v20 = vmul.f32 %v6980_v33, %v9743_v7  ;;  %v6989_v8 = vmul.f32 %v6980_v33, %v9749_v0  ;;  %v6990_v36 = vmul.f32 %v6980_v33, %v9755_v41 }
 0x4e6   :  { %v6991_v45 = vmul.f32 %v6980_v33, %v9761_v25  ;;  %v6992_v22 = vmul.f32 %v6980_v33, %v9770_v18  ;;  %v6993_v49 = vmul.f32 %v6980_v33, %v9777_v39  ;;  %v6994_v17 = vmul.f32 %v6980_v33, %v9784_v50 }
 0x4e7   :  { %v7016_v47 = vadd.f32 %v6999_v5, %v6997_v11  ;;  %v6995_v57 = vmul.f32 %v6980_v33, %v9789_v56  ;;  %v6996_v34 = vmul.f32 %v6980_v33, %v9794_v23  ;;  %v7001_v29 = vadd.f32 %v6999_v5, %v6982_v2 }
 0x4e8   :  { %v7002_v16 = vadd.f32 %v6999_v5, %v6983_v52  ;;  %v7003_v7 = vadd.f32 %v6999_v5, %v6984_v63  ;;  %v7004_v43 = vadd.f32 %v6999_v5, %v6985_v26  ;;  %v7005_v0 = vadd.f32 %v6999_v5, %v6986_v3 }
 0x4e9   :  { %v7032_v1 = vmax.f32 %v7016_v47, 0.0  ;;  %v7006_v41 = vadd.f32 %v6999_v5, %v6987_v9  ;;  %v7007_v15 = vadd.f32 %v6999_v5, %v6988_v20  ;;  %v7008_v25 = vadd.f32 %v6999_v5, %v6989_v8 }
 0x4ea   :  { %v7009_v55 = vadd.f32 %v6999_v5, %v6990_v36  ;;  %v7010_v18 = vadd.f32 %v6999_v5, %v6991_v45  ;;  %v7011_v51 = vadd.f32 %v6999_v5, %v6992_v22  ;;  %v7012_v39 = vadd.f32 %v6999_v5, %v6993_v49 }
 0x4eb   :  { %7048 = vst [vmem:[#allocation10 + $0x78] sm:$0xff] %v7032_v1  ;;  %v7013_v50 = vadd.f32 %v6999_v5, %v6994_v17  ;;  %v7014_v31 = vadd.f32 %v6999_v5, %v6995_v57  ;;  %v7015_v21 = vadd.f32 %v6999_v5, %v6996_v34  ;;  %v7017_v56 = vmax.f32 %v7001_v29, 0.0 }
 0x4ec   :  { %v7018_v61 = vmax.f32 %v7002_v16, 0.0  ;;  %v7019_v23 = vmax.f32 %v7003_v7, 0.0  ;;  %v7020_v14 = vmax.f32 %v7004_v43, 0.0  ;;  %v7021_v12 = vmax.f32 %v7005_v0, 0.0 }
 0x4ed   :  { %7033 = vst [vmem:[#allocation10] sm:$0xff] %v7017_v56  ;;  %v7022_v32 = vmax.f32 %v7006_v41, 0.0  ;;  %v7023_v59 = vmax.f32 %v7007_v15, 0.0  ;;  %v7024_v30 = vmax.f32 %v7008_v25, 0.0  ;;  %v7025_v42 = vmax.f32 %v7009_v55, 0.0 }
 0x4ee   :  { %7034 = vst [vmem:[#allocation10 + $0x8] sm:$0xff] %v7018_v61  ;;  %v7026_v35 = vmax.f32 %v7010_v18, 0.0  ;;  %v7027_v40 = vmax.f32 %v7011_v51, 0.0  ;;  %v7028_v38 = vmax.f32 %v7012_v39, 0.0  ;;  %v7029_v6 = vmax.f32 %v7013_v50, 0.0 }
 0x4ef   :  { %7035 = vst [vmem:[#allocation10 + $0x10] sm:$0xff] %v7019_v23  ;;  %v7030_v62 = vmax.f32 %v7014_v31, 0.0  ;;  %v7031_v53 = vmax.f32 %v7015_v21, 0.0 }
 0x4f0   :  { %7036 = vst [vmem:[#allocation10 + $0x18] sm:$0xff] %v7020_v14 }
 0x4f1   :  { %7037 = vst [vmem:[#allocation10 + $0x20] sm:$0xff] %v7021_v12 }
 0x4f2   :  { %7038 = vst [vmem:[#allocation10 + $0x28] sm:$0xff] %v7022_v32 }
 0x4f3   :  { %7039 = vst [vmem:[#allocation10 + $0x30] sm:$0xff] %v7023_v59 }
 0x4f4   :  { %7040 = vst [vmem:[#allocation10 + $0x38] sm:$0xff] %v7024_v30 }
 0x4f5   :  { %7041 = vst [vmem:[#allocation10 + $0x40] sm:$0xff] %v7025_v42 }
 0x4f6   :  { %7042 = vst [vmem:[#allocation10 + $0x48] sm:$0xff] %v7026_v35 }
 0x4f7   :  { %7043 = vst [vmem:[#allocation10 + $0x50] sm:$0xff] %v7027_v40 }
 0x4f8   :  { %7044 = vst [vmem:[#allocation10 + $0x58] sm:$0xff] %v7028_v38 }
 0x4f9   :  { %7045 = vst [vmem:[#allocation10 + $0x60] sm:$0xff] %v7029_v6 }
 0x4fa   :  { %7046 = vst [vmem:[#allocation10 + $0x68] sm:$0xff] %v7030_v62 }
 0x4fb   :  { %7047 = vst [vmem:[#allocation10 + $0x70] sm:$0xff] %v7031_v53 }
 0x4fc   :  { %7061 = dma.vmem_to_hbm [thread:$0]  %s7054_s6, 2048, %s7056_s26, [#allocation6], %s8294_s13, %s8294_s13, %s8295_s14  }
 0x4fd   :  { %8288 = dma.done.wait [#allocation6], 2048  }
 0x4fe   :  { %8289 = vsyncadd [#allocation6], 4294965248 }
 0x4ff   :  { %7066 = vsyncpa [#allocation5], 1 }
 0x500   :  { %7067 = vsyncpa [#allocation8], 1 }
 0x501   :  { %7068 = vsyncpa [#allocation6], 1 }

</bundles_post_ra>
